<compile_context>
chip_gen: v5e
topology: v5e:2x2
jax: 0.10.0
libtpu: 0.0.40
codegen_flags: <defaults>
</compile_context>

<pallas_src>
import jax
import jax.numpy as jnp
from jax import lax
from jax.experimental import pallas as pl
from jax.experimental.pallas import tpu as pltpu

BATCH_TILE = 8   # images per grid step (batch is zero-padded to a multiple)


# ------------------------------ Pallas kernel --------------------------------

def _lenet_kernel(x_ref, a1_ref, b1_ref, pw1_ref, ph1_ref,
                  a2_ref, b2_ref, pw2_ref, sh2_ref, ph2_ref, fh_ref,
                  fw1_ref, fb1_ref, fw2_ref, fb2_ref, fw3_ref, fb3_ref,
                  out_ref):
    f32 = jnp.float32

    def mm(a, b):
        return jnp.dot(a, b, preferred_element_type=f32)

    # conv1 (5x5, 1->6) + bias + ReLU.
    # x_ref[kh] is the kh-row-shifted input slab: rows = b*24 + h, lanes = w.
    # a1[kh] folds the (kw -> c1, w_out) lane mixing; result lanes = c1*24 + w.
    acc1 = mm(x_ref[0], a1_ref[0])
    for kh in range(1, 5):
        acc1 = acc1 + mm(x_ref[kh], a1_ref[kh])
    r1 = jnp.maximum(acc1 + b1_ref[...], 0.0)                      # (B*24, 144)

    # 2x2 max pool #1: W via lane selectors (right mm), H via block-diagonal
    # per-image row selectors (left mm) -- no cross-sublane shuffles.
    wp1 = jnp.maximum(mm(r1, pw1_ref[0]), mm(r1, pw1_ref[1]))      # (B*24, 72)
    p1 = jnp.maximum(mm(ph1_ref[0], wp1), mm(ph1_ref[1], wp1))     # (B*12, 72)

    # conv2 (5x5, 6->16) + bias + ReLU.  kh row window via block-diagonal
    # selectors; (kw, c_in) -> (c2, w_out) mixing via a2.  Lanes = c2*8 + w.
    acc2 = mm(mm(sh2_ref[0], p1), a2_ref[0])
    for kh in range(1, 5):
        acc2 = acc2 + mm(mm(sh2_ref[kh], p1), a2_ref[kh])
    r2 = jnp.maximum(acc2 + b2_ref[...], 0.0)                      # (B*8, 128)

    # 2x2 max pool #2.
    wp2 = jnp.maximum(mm(r2, pw2_ref[0]), mm(r2, pw2_ref[1]))      # (B*8, 64)
    p2 = jnp.maximum(mm(ph2_ref[0], wp2), mm(ph2_ref[1], wp2))     # (B*4, 64)

    # fc1 (256->120): PyTorch NCHW flatten order folded into per-pooled-row
    # weight slabs fw1[h]; per-image row h picked with the tiny fh selectors.
    accf = mm(mm(fh_ref[0], p2), fw1_ref[0])
    for h in range(1, 4):
        accf = accf + mm(mm(fh_ref[h], p2), fw1_ref[h])
    z1 = jnp.maximum(accf + fb1_ref[...], 0.0)                     # (B, 120)

    # fc2 (120->84) + ReLU, fc3 (84->10, zero-padded to 128 lanes).
    z2 = jnp.maximum(mm(z1, fw2_ref[...]) + fb2_ref[...], 0.0)     # (B, 84)
    out_ref[...] = mm(z2, fw3_ref[...]) + fb3_ref[...]             # (B, 128)


# ------------------------- one-time parameter prep ---------------------------

def prepare_params(params, batch_tile=BATCH_TILE):
    """Fold im2col, pooling / row-window / flatten selection, the NCHW flatten
    order and every weight transpose/reshape into matrices computed ONCE from
    the PyTorch-layout parameters."""
    f32 = jnp.float32
    B = batch_tile
    w1 = params["w1"].astype(f32)    # (6, 1, 5, 5)  (oc, ic, kh, kw)
    b1 = params["b1"].astype(f32)
    w2 = params["w2"].astype(f32)    # (16, 6, 5, 5)
    b2 = params["b2"].astype(f32)
    wf1 = params["wf1"].astype(f32)  # (120, 256), in index = c2*16 + h*4 + w
    bf1 = params["bf1"].astype(f32)
    wf2 = params["wf2"].astype(f32)  # (84, 120)
    bf2 = params["bf2"].astype(f32)
    wf3 = params["wf3"].astype(f32)  # (10, 84)
    bf3 = params["bf3"].astype(f32)

    # conv1 lane-mixing: a1[kh, j, c*24 + w] = w1[c, 0, kh, j - w] (valid taps).
    w1s = w1[:, 0, :, :]                                   # (6, 5, 5)
    kh = jnp.arange(5)[:, None, None, None]
    j = jnp.arange(28)[None, :, None, None]
    c = jnp.arange(6)[None, None, :, None]
    w = jnp.arange(24)[None, None, None, :]
    kw = j - w
    a1 = jnp.where((kw >= 0) & (kw < 5),
                   w1s[c, kh, jnp.clip(kw, 0, 4)],
                   0.0).reshape(5, 28, 6 * 24)             # (5, 28, 144)
    b1r = jnp.repeat(b1, 24).reshape(1, 144)

    # conv2 lane-mixing: a2[kh, ci*12 + j, co*8 + w] = w2[co, ci, kh, j - w].
    kh = jnp.arange(5)[:, None, None, None, None]
    ci = jnp.arange(6)[None, :, None, None, None]
    jj = jnp.arange(12)[None, None, :, None, None]
    co = jnp.arange(16)[None, None, None, :, None]
    ww = jnp.arange(8)[None, None, None, None, :]
    kw2 = jj - ww
    a2 = jnp.where((kw2 >= 0) & (kw2 < 5),
                   w2[co, ci, kh, jnp.clip(kw2, 0, 4)],
                   0.0).reshape(5, 6 * 12, 16 * 8)         # (5, 72, 128)
    b2r = jnp.repeat(b2, 8).reshape(1, 128)

    # 2x2 pool W (lane) selectors: lanes c*win + w -> c*(win/2) + j.
    def pool_lanes(n_ch, win):
        wout = win // 2
        src = jnp.arange(n_ch * win)
        dst = jnp.arange(n_ch * wout)
        same_c = (src[:, None] // win) == (dst[None, :] // wout)
        return jnp.stack([
            (same_c & ((src[:, None] % win) == 2 * (dst[None, :] % wout))).astype(f32),
            (same_c & ((src[:, None] % win) == 2 * (dst[None, :] % wout) + 1)).astype(f32),
        ])

    pw1 = pool_lanes(6, 24)       # (2, 144, 72)
    pw2 = pool_lanes(16, 8)       # (2, 128, 64)

    # Block-diagonal per-image ROW selectors (batch merged into rows).
    def pool_rows(rin, rout):      # 2x2 pool over H
        r = jnp.arange(B * rout)
        cc = jnp.arange(B * rin)
        same_b = (r[:, None] // rout) == (cc[None, :] // rin)
        jo = r % rout
        ji = cc % rin
        return jnp.stack([
            (same_b & (ji[None, :] == 2 * jo[:, None])).astype(f32),
            (same_b & (ji[None, :] == 2 * jo[:, None] + 1)).astype(f32),
        ])

    def window_rows(rin, rout, k):  # sliding kh row window (and fc1 row pick)
        r = jnp.arange(B * rout)
        cc = jnp.arange(B * rin)
        same_b = (r[:, None] // rout) == (cc[None, :] // rin)
        ro = r % rout
        ri = cc % rin
        return jnp.stack([
            (same_b & (ri[None, :] == ro[:, None] + kk)).astype(f32)
            for kk in range(k)])

    ph1 = pool_rows(24, 12)        # (2, B*12, B*24)
    ph2 = pool_rows(8, 4)          # (2, B*4,  B*8)
    sh2 = window_rows(12, 8, 5)    # (5, B*8,  B*12)
    fh = window_rows(4, 1, 4)      # (4, B,    B*4)

    # fc1: fold PyTorch's .view(-1, 16*4*4) order (c2*16 + h*4 + w) into
    # per-pooled-row slabs: fw1[h, c2*4 + w, o] = wf1[o, c2*16 + h*4 + w].
    fw1 = wf1.reshape(120, 16, 4, 4).transpose(2, 1, 3, 0).reshape(4, 64, 120)

    # fc3 padded to a full 128-lane output tile (wrapper slices logits[:, :10]).
    fw3p = jnp.zeros((84, 128), f32).at[:, :10].set(wf3.T)
    fb3p = jnp.zeros((1, 128), f32).at[:, :10].set(bf3)

    return (a1, b1r, pw1, ph1, a2, b2r, pw2, sh2, ph2, fh,
            fw1, bf1.reshape(1, 120), wf2.T, bf2.reshape(1, 84), fw3p, fb3p)


# --------------------------------- forward -----------------------------------

def forward(prep, x):
    """x: (N, 1, 28, 28) f32 -> logits (N, 10) f32.  Single fused Pallas call."""
    B = BATCH_TILE
    n = x.shape[0]
    assert x.shape[1:] == (1, 28, 28), x.shape
    n_pad = ((n + B - 1) // B) * B
    xf = x.reshape(n, 28, 28).astype(jnp.float32)
    if n_pad != n:
        xf = jnp.concatenate(
            [xf, jnp.zeros((n_pad - n, 28, 28), jnp.float32)], axis=0)

    # Layout plumbing done once outside the kernel: the 5 kh-shifted input
    # slabs with batch merged into rows -> no reshapes/slices inside the kernel.
    xs = jnp.stack([xf[:, kh:kh + 24, :].reshape(n_pad * 24, 28)
                    for kh in range(5)])                   # (5, n_pad*24, 28)

    operands = (xs,) + tuple(prep)

    def _const_spec(a):
        nd = a.ndim
        return pl.BlockSpec(a.shape, lambda i, _nd=nd: (0,) * _nd)

    in_specs = [pl.BlockSpec((5, B * 24, 28), lambda i: (0, i, 0))]
    in_specs += [_const_spec(a) for a in prep]

    out = pl.pallas_call(
        _lenet_kernel,
        out_shape=jax.ShapeDtypeStruct((n_pad, 128), jnp.float32),
        grid=(n_pad // B,),
        in_specs=in_specs,
        out_specs=pl.BlockSpec((B, 128), lambda i: (i, 0)),
        compiler_params=pltpu.CompilerParams(
            dimension_semantics=("parallel",)),   # v7x: split batch over 2 TCs
    )(*operands)
    return out[:n, :10]


# --------------------------- plain-JAX reference ------------------------------

def forward_reference(params, x):
    hp = lax.Precision.HIGHEST
    y = lax.conv_general_dilated(
        x, params["w1"], window_strides=(1, 1), padding="VALID",
        dimension_numbers=("NCHW", "OIHW", "NCHW"), precision=hp)
    y = jnp.maximum(y + params["b1"][None, :, None, None], 0.0)
    y = lax.reduce_window(y, -jnp.inf, lax.max, (1, 1, 2, 2), (1, 1, 2, 2), "VALID")
    y = lax.conv_general_dilated(
        y, params["w2"], window_strides=(1, 1), padding="VALID",
        dimension_numbers=("NCHW", "OIHW", "NCHW"), precision=hp)
    y = jnp.maximum(y + params["b2"][None, :, None, None], 0.0)
    y = lax.reduce_window(y, -jnp.inf, lax.max, (1, 1, 2, 2), (1, 1, 2, 2), "VALID")
    y = y.reshape(y.shape[0], 16 * 4 * 4)
    y = jnp.maximum(jnp.dot(y, params["wf1"].T, precision=hp) + params["bf1"], 0.0)
    y = jnp.maximum(jnp.dot(y, params["wf2"].T, precision=hp) + params["bf2"], 0.0)
    return jnp.dot(y, params["wf3"].T, precision=hp) + params["bf3"]


def init_params(key):
    """Deterministic PyTorch-style uniform(-1/sqrt(fan_in), 1/sqrt(fan_in))."""
    ks = jax.random.split(key, 10)

    def u(k, shape, fan_in):
        bound = 1.0 / float(fan_in) ** 0.5
        return jax.random.uniform(k, shape, jnp.float32, -bound, bound)

    return {
        "w1": u(ks[0], (6, 1, 5, 5), 1 * 5 * 5),
        "b1": u(ks[1], (6,), 1 * 5 * 5),
        "w2": u(ks[2], (16, 6, 5, 5), 6 * 5 * 5),
        "b2": u(ks[3], (16,), 6 * 5 * 5),
        "wf1": u(ks[4], (120, 256), 256),   # PyTorch Linear weight (out, in)
        "bf1": u(ks[5], (120,), 256),
        "wf2": u(ks[6], (84, 120), 120),
        "bf2": u(ks[7], (84,), 120),
        "wf3": u(ks[8], (10, 84), 84),
        "bf3": u(ks[9], (10,), 84),
    }


if __name__ == "__main__":
    key = jax.random.PRNGKey(0)
    k_x, k_p = jax.random.split(key)
    # fc1 expects 16*4*4 features, which pins the spatial size to 28x28.
    x = jax.random.normal(k_x, (2, 1, 28, 28), dtype=jnp.float32)
    params = init_params(k_p)
    prep = prepare_params(params)          # one-time weight preprocessing

    fwd = jax.jit(forward)
    logits = fwd(prep, x)
    jax.block_until_ready(logits)

    assert logits.shape == (2, 10), logits.shape
    assert logits.dtype == jnp.float32

    # Verify against an independent plain-JAX implementation of the module.
    ref = forward_reference(params, x)
    max_err = float(jnp.max(jnp.abs(logits - ref)))
    assert max_err < 2e-2, f"kernel/reference mismatch: max abs err = {max_err}"

    print("KERNEL_OK")
</pallas_src>

<mosaic_0001>
module attributes {stable_mosaic.version = 11 : i64} {
  func.func @_lenet_kernel(%arg0: i32, %arg1: memref<5x192x28xf32, #tpu.memory_space<vmem>>, %arg2: memref<5x28x144xf32, #tpu.memory_space<vmem>>, %arg3: memref<1x144xf32, #tpu.memory_space<vmem>>, %arg4: memref<2x144x72xf32, #tpu.memory_space<vmem>>, %arg5: memref<2x96x192xf32, #tpu.memory_space<vmem>>, %arg6: memref<5x72x128xf32, #tpu.memory_space<vmem>>, %arg7: memref<1x128xf32, #tpu.memory_space<vmem>>, %arg8: memref<2x128x64xf32, #tpu.memory_space<vmem>>, %arg9: memref<5x64x96xf32, #tpu.memory_space<vmem>>, %arg10: memref<2x32x64xf32, #tpu.memory_space<vmem>>, %arg11: memref<4x8x32xf32, #tpu.memory_space<vmem>>, %arg12: memref<4x64x120xf32, #tpu.memory_space<vmem>>, %arg13: memref<1x120xf32, #tpu.memory_space<vmem>>, %arg14: memref<120x84xf32, #tpu.memory_space<vmem>>, %arg15: memref<1x84xf32, #tpu.memory_space<vmem>>, %arg16: memref<84x128xf32, #tpu.memory_space<vmem>>, %arg17: memref<1x128xf32, #tpu.memory_space<vmem>>, %arg18: memref<8x128xf32, #tpu.memory_space<vmem>>) attributes {dimension_semantics = [#tpu.dimension_semantics<parallel>], iteration_bounds = array<i64: 1>, scalar_prefetch = 0 : i64, scratch_operands = 0 : i64, tpu.core_type = #tpu.core_type<tc>, window_params = [{transform_indices = @transform_0, window_bounds = array<i64: 5, 192, 28>}, {pipeline_mode = #tpu.pipeline_mode<synchronous>, transform_indices = @transform_1, window_bounds = array<i64: 5, 28, 144>}, {pipeline_mode = #tpu.pipeline_mode<synchronous>, transform_indices = @transform_2, window_bounds = array<i64: 1, 144>}, {pipeline_mode = #tpu.pipeline_mode<synchronous>, transform_indices = @transform_3, window_bounds = array<i64: 2, 144, 72>}, {pipeline_mode = #tpu.pipeline_mode<synchronous>, transform_indices = @transform_4, window_bounds = array<i64: 2, 96, 192>}, {pipeline_mode = #tpu.pipeline_mode<synchronous>, transform_indices = @transform_5, window_bounds = array<i64: 5, 72, 128>}, {pipeline_mode = #tpu.pipeline_mode<synchronous>, transform_indices = @transform_6, window_bounds = array<i64: 1, 128>}, {pipeline_mode = #tpu.pipeline_mode<synchronous>, transform_indices = @transform_7, window_bounds = array<i64: 2, 128, 64>}, {pipeline_mode = #tpu.pipeline_mode<synchronous>, transform_indices = @transform_8, window_bounds = array<i64: 5, 64, 96>}, {pipeline_mode = #tpu.pipeline_mode<synchronous>, transform_indices = @transform_9, window_bounds = array<i64: 2, 32, 64>}, {pipeline_mode = #tpu.pipeline_mode<synchronous>, transform_indices = @transform_10, window_bounds = array<i64: 4, 8, 32>}, {pipeline_mode = #tpu.pipeline_mode<synchronous>, transform_indices = @transform_11, window_bounds = array<i64: 4, 64, 120>}, {pipeline_mode = #tpu.pipeline_mode<synchronous>, transform_indices = @transform_12, window_bounds = array<i64: 1, 120>}, {pipeline_mode = #tpu.pipeline_mode<synchronous>, transform_indices = @transform_13, window_bounds = array<i64: 120, 84>}, {pipeline_mode = #tpu.pipeline_mode<synchronous>, transform_indices = @transform_14, window_bounds = array<i64: 1, 84>}, {pipeline_mode = #tpu.pipeline_mode<synchronous>, transform_indices = @transform_15, window_bounds = array<i64: 84, 128>}, {pipeline_mode = #tpu.pipeline_mode<synchronous>, transform_indices = @transform_16, window_bounds = array<i64: 1, 128>}, {transform_indices = @transform_17, window_bounds = array<i64: 8, 128>}]} {
    %c0 = arith.constant 0 : index
    %c0_0 = arith.constant 0 : index
    %c0_1 = arith.constant 0 : index
    %0 = vector.load %arg1[%c0, %c0_0, %c0_1] : memref<5x192x28xf32, #tpu.memory_space<vmem>>, vector<1x192x28xf32>
    %1 = vector.shape_cast %0 : vector<1x192x28xf32> to vector<192x28xf32>
    %c0_2 = arith.constant 0 : index
    %c0_3 = arith.constant 0 : index
    %c0_4 = arith.constant 0 : index
    %2 = vector.load %arg2[%c0_2, %c0_3, %c0_4] : memref<5x28x144xf32, #tpu.memory_space<vmem>>, vector<1x28x144xf32>
    %3 = vector.shape_cast %2 : vector<1x28x144xf32> to vector<28x144xf32>
    %cst = arith.constant dense<0.000000e+00> : vector<192x144xf32>
    %4 = tpu.matmul %1, %3, %cst {dimension_numbers = #tpu.dot_dimension_numbers<[1], [0], [0], [1], [0, 0, 1, 1], [], []>} : vector<192x28xf32>, vector<28x144xf32>, vector<192x144xf32> -> vector<192x144xf32>
    %c1 = arith.constant 1 : index
    %c0_5 = arith.constant 0 : index
    %c0_6 = arith.constant 0 : index
    %5 = vector.load %arg1[%c1, %c0_5, %c0_6] : memref<5x192x28xf32, #tpu.memory_space<vmem>>, vector<1x192x28xf32>
    %6 = vector.shape_cast %5 : vector<1x192x28xf32> to vector<192x28xf32>
    %c1_7 = arith.constant 1 : index
    %c0_8 = arith.constant 0 : index
    %c0_9 = arith.constant 0 : index
    %7 = vector.load %arg2[%c1_7, %c0_8, %c0_9] : memref<5x28x144xf32, #tpu.memory_space<vmem>>, vector<1x28x144xf32>
    %8 = vector.shape_cast %7 : vector<1x28x144xf32> to vector<28x144xf32>
    %cst_10 = arith.constant dense<0.000000e+00> : vector<192x144xf32>
    %9 = tpu.matmul %6, %8, %cst_10 {dimension_numbers = #tpu.dot_dimension_numbers<[1], [0], [0], [1], [0, 0, 1, 1], [], []>} : vector<192x28xf32>, vector<28x144xf32>, vector<192x144xf32> -> vector<192x144xf32>
    %10 = arith.addf %4, %9 : vector<192x144xf32>
    %c2 = arith.constant 2 : index
    %c0_11 = arith.constant 0 : index
    %c0_12 = arith.constant 0 : index
    %11 = vector.load %arg1[%c2, %c0_11, %c0_12] : memref<5x192x28xf32, #tpu.memory_space<vmem>>, vector<1x192x28xf32>
    %12 = vector.shape_cast %11 : vector<1x192x28xf32> to vector<192x28xf32>
    %c2_13 = arith.constant 2 : index
    %c0_14 = arith.constant 0 : index
    %c0_15 = arith.constant 0 : index
    %13 = vector.load %arg2[%c2_13, %c0_14, %c0_15] : memref<5x28x144xf32, #tpu.memory_space<vmem>>, vector<1x28x144xf32>
    %14 = vector.shape_cast %13 : vector<1x28x144xf32> to vector<28x144xf32>
    %cst_16 = arith.constant dense<0.000000e+00> : vector<192x144xf32>
    %15 = tpu.matmul %12, %14, %cst_16 {dimension_numbers = #tpu.dot_dimension_numbers<[1], [0], [0], [1], [0, 0, 1, 1], [], []>} : vector<192x28xf32>, vector<28x144xf32>, vector<192x144xf32> -> vector<192x144xf32>
    %16 = arith.addf %10, %15 : vector<192x144xf32>
    %c3 = arith.constant 3 : index
    %c0_17 = arith.constant 0 : index
    %c0_18 = arith.constant 0 : index
    %17 = vector.load %arg1[%c3, %c0_17, %c0_18] : memref<5x192x28xf32, #tpu.memory_space<vmem>>, vector<1x192x28xf32>
    %18 = vector.shape_cast %17 : vector<1x192x28xf32> to vector<192x28xf32>
    %c3_19 = arith.constant 3 : index
    %c0_20 = arith.constant 0 : index
    %c0_21 = arith.constant 0 : index
    %19 = vector.load %arg2[%c3_19, %c0_20, %c0_21] : memref<5x28x144xf32, #tpu.memory_space<vmem>>, vector<1x28x144xf32>
    %20 = vector.shape_cast %19 : vector<1x28x144xf32> to vector<28x144xf32>
    %cst_22 = arith.constant dense<0.000000e+00> : vector<192x144xf32>
    %21 = tpu.matmul %18, %20, %cst_22 {dimension_numbers = #tpu.dot_dimension_numbers<[1], [0], [0], [1], [0, 0, 1, 1], [], []>} : vector<192x28xf32>, vector<28x144xf32>, vector<192x144xf32> -> vector<192x144xf32>
    %22 = arith.addf %16, %21 : vector<192x144xf32>
    %c4 = arith.constant 4 : index
    %c0_23 = arith.constant 0 : index
    %c0_24 = arith.constant 0 : index
    %23 = vector.load %arg1[%c4, %c0_23, %c0_24] : memref<5x192x28xf32, #tpu.memory_space<vmem>>, vector<1x192x28xf32>
    %24 = vector.shape_cast %23 : vector<1x192x28xf32> to vector<192x28xf32>
    %c4_25 = arith.constant 4 : index
    %c0_26 = arith.constant 0 : index
    %c0_27 = arith.constant 0 : index
    %25 = vector.load %arg2[%c4_25, %c0_26, %c0_27] : memref<5x28x144xf32, #tpu.memory_space<vmem>>, vector<1x28x144xf32>
    %26 = vector.shape_cast %25 : vector<1x28x144xf32> to vector<28x144xf32>
    %cst_28 = arith.constant dense<0.000000e+00> : vector<192x144xf32>
    %27 = tpu.matmul %24, %26, %cst_28 {dimension_numbers = #tpu.dot_dimension_numbers<[1], [0], [0], [1], [0, 0, 1, 1], [], []>} : vector<192x28xf32>, vector<28x144xf32>, vector<192x144xf32> -> vector<192x144xf32>
    %28 = arith.addf %22, %27 : vector<192x144xf32>
    %c0_29 = arith.constant 0 : index
    %c0_30 = arith.constant 0 : index
    %29 = vector.load %arg3[%c0_29, %c0_30] : memref<1x144xf32, #tpu.memory_space<vmem>>, vector<1x144xf32>
    %30 = vector.broadcast %29 : vector<1x144xf32> to vector<192x144xf32>
    %31 = arith.addf %28, %30 : vector<192x144xf32>
    %cst_31 = arith.constant 0.000000e+00 : f32
    %32 = vector.broadcast %cst_31 : f32 to vector<192x144xf32>
    %33 = arith.maximumf %31, %32 : vector<192x144xf32>
    %c0_32 = arith.constant 0 : index
    %c0_33 = arith.constant 0 : index
    %c0_34 = arith.constant 0 : index
    %34 = vector.load %arg4[%c0_32, %c0_33, %c0_34] : memref<2x144x72xf32, #tpu.memory_space<vmem>>, vector<1x144x72xf32>
    %35 = vector.shape_cast %34 : vector<1x144x72xf32> to vector<144x72xf32>
    %cst_35 = arith.constant dense<0.000000e+00> : vector<192x72xf32>
    %36 = tpu.matmul %33, %35, %cst_35 {dimension_numbers = #tpu.dot_dimension_numbers<[1], [0], [0], [1], [0, 0, 1, 1], [], []>} : vector<192x144xf32>, vector<144x72xf32>, vector<192x72xf32> -> vector<192x72xf32>
    %c1_36 = arith.constant 1 : index
    %c0_37 = arith.constant 0 : index
    %c0_38 = arith.constant 0 : index
    %37 = vector.load %arg4[%c1_36, %c0_37, %c0_38] : memref<2x144x72xf32, #tpu.memory_space<vmem>>, vector<1x144x72xf32>
    %38 = vector.shape_cast %37 : vector<1x144x72xf32> to vector<144x72xf32>
    %cst_39 = arith.constant dense<0.000000e+00> : vector<192x72xf32>
    %39 = tpu.matmul %33, %38, %cst_39 {dimension_numbers = #tpu.dot_dimension_numbers<[1], [0], [0], [1], [0, 0, 1, 1], [], []>} : vector<192x144xf32>, vector<144x72xf32>, vector<192x72xf32> -> vector<192x72xf32>
    %40 = arith.maximumf %36, %39 : vector<192x72xf32>
    %c0_40 = arith.constant 0 : index
    %c0_41 = arith.constant 0 : index
    %c0_42 = arith.constant 0 : index
    %41 = vector.load %arg5[%c0_40, %c0_41, %c0_42] : memref<2x96x192xf32, #tpu.memory_space<vmem>>, vector<1x96x192xf32>
    %42 = vector.shape_cast %41 : vector<1x96x192xf32> to vector<96x192xf32>
    %cst_43 = arith.constant dense<0.000000e+00> : vector<96x72xf32>
    %43 = tpu.matmul %42, %40, %cst_43 {dimension_numbers = #tpu.dot_dimension_numbers<[1], [0], [0], [1], [0, 0, 1, 1], [], []>} : vector<96x192xf32>, vector<192x72xf32>, vector<96x72xf32> -> vector<96x72xf32>
    %c1_44 = arith.constant 1 : index
    %c0_45 = arith.constant 0 : index
    %c0_46 = arith.constant 0 : index
    %44 = vector.load %arg5[%c1_44, %c0_45, %c0_46] : memref<2x96x192xf32, #tpu.memory_space<vmem>>, vector<1x96x192xf32>
    %45 = vector.shape_cast %44 : vector<1x96x192xf32> to vector<96x192xf32>
    %cst_47 = arith.constant dense<0.000000e+00> : vector<96x72xf32>
    %46 = tpu.matmul %45, %40, %cst_47 {dimension_numbers = #tpu.dot_dimension_numbers<[1], [0], [0], [1], [0, 0, 1, 1], [], []>} : vector<96x192xf32>, vector<192x72xf32>, vector<96x72xf32> -> vector<96x72xf32>
    %47 = arith.maximumf %43, %46 : vector<96x72xf32>
    %c0_48 = arith.constant 0 : index
    %c0_49 = arith.constant 0 : index
    %c0_50 = arith.constant 0 : index
    %48 = vector.load %arg9[%c0_48, %c0_49, %c0_50] : memref<5x64x96xf32, #tpu.memory_space<vmem>>, vector<1x64x96xf32>
    %49 = vector.shape_cast %48 : vector<1x64x96xf32> to vector<64x96xf32>
    %cst_51 = arith.constant dense<0.000000e+00> : vector<64x72xf32>
    %50 = tpu.matmul %49, %47, %cst_51 {dimension_numbers = #tpu.dot_dimension_numbers<[1], [0], [0], [1], [0, 0, 1, 1], [], []>} : vector<64x96xf32>, vector<96x72xf32>, vector<64x72xf32> -> vector<64x72xf32>
    %c0_52 = arith.constant 0 : index
    %c0_53 = arith.constant 0 : index
    %c0_54 = arith.constant 0 : index
    %51 = vector.load %arg6[%c0_52, %c0_53, %c0_54] : memref<5x72x128xf32, #tpu.memory_space<vmem>>, vector<1x72x128xf32>
    %52 = vector.shape_cast %51 : vector<1x72x128xf32> to vector<72x128xf32>
    %cst_55 = arith.constant dense<0.000000e+00> : vector<64x128xf32>
    %53 = tpu.matmul %50, %52, %cst_55 {dimension_numbers = #tpu.dot_dimension_numbers<[1], [0], [0], [1], [0, 0, 1, 1], [], []>} : vector<64x72xf32>, vector<72x128xf32>, vector<64x128xf32> -> vector<64x128xf32>
    %c1_56 = arith.constant 1 : index
    %c0_57 = arith.constant 0 : index
    %c0_58 = arith.constant 0 : index
    %54 = vector.load %arg9[%c1_56, %c0_57, %c0_58] : memref<5x64x96xf32, #tpu.memory_space<vmem>>, vector<1x64x96xf32>
    %55 = vector.shape_cast %54 : vector<1x64x96xf32> to vector<64x96xf32>
    %cst_59 = arith.constant dense<0.000000e+00> : vector<64x72xf32>
    %56 = tpu.matmul %55, %47, %cst_59 {dimension_numbers = #tpu.dot_dimension_numbers<[1], [0], [0], [1], [0, 0, 1, 1], [], []>} : vector<64x96xf32>, vector<96x72xf32>, vector<64x72xf32> -> vector<64x72xf32>
    %c1_60 = arith.constant 1 : index
    %c0_61 = arith.constant 0 : index
    %c0_62 = arith.constant 0 : index
    %57 = vector.load %arg6[%c1_60, %c0_61, %c0_62] : memref<5x72x128xf32, #tpu.memory_space<vmem>>, vector<1x72x128xf32>
    %58 = vector.shape_cast %57 : vector<1x72x128xf32> to vector<72x128xf32>
    %cst_63 = arith.constant dense<0.000000e+00> : vector<64x128xf32>
    %59 = tpu.matmul %56, %58, %cst_63 {dimension_numbers = #tpu.dot_dimension_numbers<[1], [0], [0], [1], [0, 0, 1, 1], [], []>} : vector<64x72xf32>, vector<72x128xf32>, vector<64x128xf32> -> vector<64x128xf32>
    %60 = arith.addf %53, %59 : vector<64x128xf32>
    %c2_64 = arith.constant 2 : index
    %c0_65 = arith.constant 0 : index
    %c0_66 = arith.constant 0 : index
    %61 = vector.load %arg9[%c2_64, %c0_65, %c0_66] : memref<5x64x96xf32, #tpu.memory_space<vmem>>, vector<1x64x96xf32>
    %62 = vector.shape_cast %61 : vector<1x64x96xf32> to vector<64x96xf32>
    %cst_67 = arith.constant dense<0.000000e+00> : vector<64x72xf32>
    %63 = tpu.matmul %62, %47, %cst_67 {dimension_numbers = #tpu.dot_dimension_numbers<[1], [0], [0], [1], [0, 0, 1, 1], [], []>} : vector<64x96xf32>, vector<96x72xf32>, vector<64x72xf32> -> vector<64x72xf32>
    %c2_68 = arith.constant 2 : index
    %c0_69 = arith.constant 0 : index
    %c0_70 = arith.constant 0 : index
    %64 = vector.load %arg6[%c2_68, %c0_69, %c0_70] : memref<5x72x128xf32, #tpu.memory_space<vmem>>, vector<1x72x128xf32>
    %65 = vector.shape_cast %64 : vector<1x72x128xf32> to vector<72x128xf32>
    %cst_71 = arith.constant dense<0.000000e+00> : vector<64x128xf32>
    %66 = tpu.matmul %63, %65, %cst_71 {dimension_numbers = #tpu.dot_dimension_numbers<[1], [0], [0], [1], [0, 0, 1, 1], [], []>} : vector<64x72xf32>, vector<72x128xf32>, vector<64x128xf32> -> vector<64x128xf32>
    %67 = arith.addf %60, %66 : vector<64x128xf32>
    %c3_72 = arith.constant 3 : index
    %c0_73 = arith.constant 0 : index
    %c0_74 = arith.constant 0 : index
    %68 = vector.load %arg9[%c3_72, %c0_73, %c0_74] : memref<5x64x96xf32, #tpu.memory_space<vmem>>, vector<1x64x96xf32>
    %69 = vector.shape_cast %68 : vector<1x64x96xf32> to vector<64x96xf32>
    %cst_75 = arith.constant dense<0.000000e+00> : vector<64x72xf32>
    %70 = tpu.matmul %69, %47, %cst_75 {dimension_numbers = #tpu.dot_dimension_numbers<[1], [0], [0], [1], [0, 0, 1, 1], [], []>} : vector<64x96xf32>, vector<96x72xf32>, vector<64x72xf32> -> vector<64x72xf32>
    %c3_76 = arith.constant 3 : index
    %c0_77 = arith.constant 0 : index
    %c0_78 = arith.constant 0 : index
    %71 = vector.load %arg6[%c3_76, %c0_77, %c0_78] : memref<5x72x128xf32, #tpu.memory_space<vmem>>, vector<1x72x128xf32>
    %72 = vector.shape_cast %71 : vector<1x72x128xf32> to vector<72x128xf32>
    %cst_79 = arith.constant dense<0.000000e+00> : vector<64x128xf32>
    %73 = tpu.matmul %70, %72, %cst_79 {dimension_numbers = #tpu.dot_dimension_numbers<[1], [0], [0], [1], [0, 0, 1, 1], [], []>} : vector<64x72xf32>, vector<72x128xf32>, vector<64x128xf32> -> vector<64x128xf32>
    %74 = arith.addf %67, %73 : vector<64x128xf32>
    %c4_80 = arith.constant 4 : index
    %c0_81 = arith.constant 0 : index
    %c0_82 = arith.constant 0 : index
    %75 = vector.load %arg9[%c4_80, %c0_81, %c0_82] : memref<5x64x96xf32, #tpu.memory_space<vmem>>, vector<1x64x96xf32>
    %76 = vector.shape_cast %75 : vector<1x64x96xf32> to vector<64x96xf32>
    %cst_83 = arith.constant dense<0.000000e+00> : vector<64x72xf32>
    %77 = tpu.matmul %76, %47, %cst_83 {dimension_numbers = #tpu.dot_dimension_numbers<[1], [0], [0], [1], [0, 0, 1, 1], [], []>} : vector<64x96xf32>, vector<96x72xf32>, vector<64x72xf32> -> vector<64x72xf32>
    %c4_84 = arith.constant 4 : index
    %c0_85 = arith.constant 0 : index
    %c0_86 = arith.constant 0 : index
    %78 = vector.load %arg6[%c4_84, %c0_85, %c0_86] : memref<5x72x128xf32, #tpu.memory_space<vmem>>, vector<1x72x128xf32>
    %79 = vector.shape_cast %78 : vector<1x72x128xf32> to vector<72x128xf32>
    %cst_87 = arith.constant dense<0.000000e+00> : vector<64x128xf32>
    %80 = tpu.matmul %77, %79, %cst_87 {dimension_numbers = #tpu.dot_dimension_numbers<[1], [0], [0], [1], [0, 0, 1, 1], [], []>} : vector<64x72xf32>, vector<72x128xf32>, vector<64x128xf32> -> vector<64x128xf32>
    %81 = arith.addf %74, %80 : vector<64x128xf32>
    %c0_88 = arith.constant 0 : index
    %c0_89 = arith.constant 0 : index
    %82 = vector.load %arg7[%c0_88, %c0_89] : memref<1x128xf32, #tpu.memory_space<vmem>>, vector<1x128xf32>
    %83 = vector.broadcast %82 : vector<1x128xf32> to vector<64x128xf32>
    %84 = arith.addf %81, %83 : vector<64x128xf32>
    %cst_90 = arith.constant 0.000000e+00 : f32
    %85 = vector.broadcast %cst_90 : f32 to vector<64x128xf32>
    %86 = arith.maximumf %84, %85 : vector<64x128xf32>
    %c0_91 = arith.constant 0 : index
    %c0_92 = arith.constant 0 : index
    %c0_93 = arith.constant 0 : index
    %87 = vector.load %arg8[%c0_91, %c0_92, %c0_93] : memref<2x128x64xf32, #tpu.memory_space<vmem>>, vector<1x128x64xf32>
    %88 = vector.shape_cast %87 : vector<1x128x64xf32> to vector<128x64xf32>
    %cst_94 = arith.constant dense<0.000000e+00> : vector<64x64xf32>
    %89 = tpu.matmul %86, %88, %cst_94 {dimension_numbers = #tpu.dot_dimension_numbers<[1], [0], [0], [1], [0, 0, 1, 1], [], []>} : vector<64x128xf32>, vector<128x64xf32>, vector<64x64xf32> -> vector<64x64xf32>
    %c1_95 = arith.constant 1 : index
    %c0_96 = arith.constant 0 : index
    %c0_97 = arith.constant 0 : index
    %90 = vector.load %arg8[%c1_95, %c0_96, %c0_97] : memref<2x128x64xf32, #tpu.memory_space<vmem>>, vector<1x128x64xf32>
    %91 = vector.shape_cast %90 : vector<1x128x64xf32> to vector<128x64xf32>
    %cst_98 = arith.constant dense<0.000000e+00> : vector<64x64xf32>
    %92 = tpu.matmul %86, %91, %cst_98 {dimension_numbers = #tpu.dot_dimension_numbers<[1], [0], [0], [1], [0, 0, 1, 1], [], []>} : vector<64x128xf32>, vector<128x64xf32>, vector<64x64xf32> -> vector<64x64xf32>
    %93 = arith.maximumf %89, %92 : vector<64x64xf32>
    %c0_99 = arith.constant 0 : index
    %c0_100 = arith.constant 0 : index
    %c0_101 = arith.constant 0 : index
    %94 = vector.load %arg10[%c0_99, %c0_100, %c0_101] : memref<2x32x64xf32, #tpu.memory_space<vmem>>, vector<1x32x64xf32>
    %95 = vector.shape_cast %94 : vector<1x32x64xf32> to vector<32x64xf32>
    %cst_102 = arith.constant dense<0.000000e+00> : vector<32x64xf32>
    %96 = tpu.matmul %95, %93, %cst_102 {dimension_numbers = #tpu.dot_dimension_numbers<[1], [0], [0], [1], [0, 0, 1, 1], [], []>} : vector<32x64xf32>, vector<64x64xf32>, vector<32x64xf32> -> vector<32x64xf32>
    %c1_103 = arith.constant 1 : index
    %c0_104 = arith.constant 0 : index
    %c0_105 = arith.constant 0 : index
    %97 = vector.load %arg10[%c1_103, %c0_104, %c0_105] : memref<2x32x64xf32, #tpu.memory_space<vmem>>, vector<1x32x64xf32>
    %98 = vector.shape_cast %97 : vector<1x32x64xf32> to vector<32x64xf32>
    %cst_106 = arith.constant dense<0.000000e+00> : vector<32x64xf32>
    %99 = tpu.matmul %98, %93, %cst_106 {dimension_numbers = #tpu.dot_dimension_numbers<[1], [0], [0], [1], [0, 0, 1, 1], [], []>} : vector<32x64xf32>, vector<64x64xf32>, vector<32x64xf32> -> vector<32x64xf32>
    %100 = arith.maximumf %96, %99 : vector<32x64xf32>
    %c0_107 = arith.constant 0 : index
    %c0_108 = arith.constant 0 : index
    %c0_109 = arith.constant 0 : index
    %101 = vector.load %arg11[%c0_107, %c0_108, %c0_109] : memref<4x8x32xf32, #tpu.memory_space<vmem>>, vector<1x8x32xf32>
    %102 = vector.shape_cast %101 : vector<1x8x32xf32> to vector<8x32xf32>
    %cst_110 = arith.constant dense<0.000000e+00> : vector<8x64xf32>
    %103 = tpu.matmul %102, %100, %cst_110 {dimension_numbers = #tpu.dot_dimension_numbers<[1], [0], [0], [1], [0, 0, 1, 1], [], []>} : vector<8x32xf32>, vector<32x64xf32>, vector<8x64xf32> -> vector<8x64xf32>
    %c0_111 = arith.constant 0 : index
    %c0_112 = arith.constant 0 : index
    %c0_113 = arith.constant 0 : index
    %104 = vector.load %arg12[%c0_111, %c0_112, %c0_113] : memref<4x64x120xf32, #tpu.memory_space<vmem>>, vector<1x64x120xf32>
    %105 = vector.shape_cast %104 : vector<1x64x120xf32> to vector<64x120xf32>
    %cst_114 = arith.constant dense<0.000000e+00> : vector<8x120xf32>
    %106 = tpu.matmul %103, %105, %cst_114 {dimension_numbers = #tpu.dot_dimension_numbers<[1], [0], [0], [1], [0, 0, 1, 1], [], []>} : vector<8x64xf32>, vector<64x120xf32>, vector<8x120xf32> -> vector<8x120xf32>
    %c1_115 = arith.constant 1 : index
    %c0_116 = arith.constant 0 : index
    %c0_117 = arith.constant 0 : index
    %107 = vector.load %arg11[%c1_115, %c0_116, %c0_117] : memref<4x8x32xf32, #tpu.memory_space<vmem>>, vector<1x8x32xf32>
    %108 = vector.shape_cast %107 : vector<1x8x32xf32> to vector<8x32xf32>
    %cst_118 = arith.constant dense<0.000000e+00> : vector<8x64xf32>
    %109 = tpu.matmul %108, %100, %cst_118 {dimension_numbers = #tpu.dot_dimension_numbers<[1], [0], [0], [1], [0, 0, 1, 1], [], []>} : vector<8x32xf32>, vector<32x64xf32>, vector<8x64xf32> -> vector<8x64xf32>
    %c1_119 = arith.constant 1 : index
    %c0_120 = arith.constant 0 : index
    %c0_121 = arith.constant 0 : index
    %110 = vector.load %arg12[%c1_119, %c0_120, %c0_121] : memref<4x64x120xf32, #tpu.memory_space<vmem>>, vector<1x64x120xf32>
    %111 = vector.shape_cast %110 : vector<1x64x120xf32> to vector<64x120xf32>
    %cst_122 = arith.constant dense<0.000000e+00> : vector<8x120xf32>
    %112 = tpu.matmul %109, %111, %cst_122 {dimension_numbers = #tpu.dot_dimension_numbers<[1], [0], [0], [1], [0, 0, 1, 1], [], []>} : vector<8x64xf32>, vector<64x120xf32>, vector<8x120xf32> -> vector<8x120xf32>
    %113 = arith.addf %106, %112 : vector<8x120xf32>
    %c2_123 = arith.constant 2 : index
    %c0_124 = arith.constant 0 : index
    %c0_125 = arith.constant 0 : index
    %114 = vector.load %arg11[%c2_123, %c0_124, %c0_125] : memref<4x8x32xf32, #tpu.memory_space<vmem>>, vector<1x8x32xf32>
    %115 = vector.shape_cast %114 : vector<1x8x32xf32> to vector<8x32xf32>
    %cst_126 = arith.constant dense<0.000000e+00> : vector<8x64xf32>
    %116 = tpu.matmul %115, %100, %cst_126 {dimension_numbers = #tpu.dot_dimension_numbers<[1], [0], [0], [1], [0, 0, 1, 1], [], []>} : vector<8x32xf32>, vector<32x64xf32>, vector<8x64xf32> -> vector<8x64xf32>
    %c2_127 = arith.constant 2 : index
    %c0_128 = arith.constant 0 : index
    %c0_129 = arith.constant 0 : index
    %117 = vector.load %arg12[%c2_127, %c0_128, %c0_129] : memref<4x64x120xf32, #tpu.memory_space<vmem>>, vector<1x64x120xf32>
    %118 = vector.shape_cast %117 : vector<1x64x120xf32> to vector<64x120xf32>
    %cst_130 = arith.constant dense<0.000000e+00> : vector<8x120xf32>
    %119 = tpu.matmul %116, %118, %cst_130 {dimension_numbers = #tpu.dot_dimension_numbers<[1], [0], [0], [1], [0, 0, 1, 1], [], []>} : vector<8x64xf32>, vector<64x120xf32>, vector<8x120xf32> -> vector<8x120xf32>
    %120 = arith.addf %113, %119 : vector<8x120xf32>
    %c3_131 = arith.constant 3 : index
    %c0_132 = arith.constant 0 : index
    %c0_133 = arith.constant 0 : index
    %121 = vector.load %arg11[%c3_131, %c0_132, %c0_133] : memref<4x8x32xf32, #tpu.memory_space<vmem>>, vector<1x8x32xf32>
    %122 = vector.shape_cast %121 : vector<1x8x32xf32> to vector<8x32xf32>
    %cst_134 = arith.constant dense<0.000000e+00> : vector<8x64xf32>
    %123 = tpu.matmul %122, %100, %cst_134 {dimension_numbers = #tpu.dot_dimension_numbers<[1], [0], [0], [1], [0, 0, 1, 1], [], []>} : vector<8x32xf32>, vector<32x64xf32>, vector<8x64xf32> -> vector<8x64xf32>
    %c3_135 = arith.constant 3 : index
    %c0_136 = arith.constant 0 : index
    %c0_137 = arith.constant 0 : index
    %124 = vector.load %arg12[%c3_135, %c0_136, %c0_137] : memref<4x64x120xf32, #tpu.memory_space<vmem>>, vector<1x64x120xf32>
    %125 = vector.shape_cast %124 : vector<1x64x120xf32> to vector<64x120xf32>
    %cst_138 = arith.constant dense<0.000000e+00> : vector<8x120xf32>
    %126 = tpu.matmul %123, %125, %cst_138 {dimension_numbers = #tpu.dot_dimension_numbers<[1], [0], [0], [1], [0, 0, 1, 1], [], []>} : vector<8x64xf32>, vector<64x120xf32>, vector<8x120xf32> -> vector<8x120xf32>
    %127 = arith.addf %120, %126 : vector<8x120xf32>
    %c0_139 = arith.constant 0 : index
    %c0_140 = arith.constant 0 : index
    %128 = vector.load %arg13[%c0_139, %c0_140] : memref<1x120xf32, #tpu.memory_space<vmem>>, vector<1x120xf32>
    %129 = vector.broadcast %128 : vector<1x120xf32> to vector<8x120xf32>
    %130 = arith.addf %127, %129 : vector<8x120xf32>
    %cst_141 = arith.constant 0.000000e+00 : f32
    %131 = vector.broadcast %cst_141 : f32 to vector<8x120xf32>
    %132 = arith.maximumf %130, %131 : vector<8x120xf32>
    %c0_142 = arith.constant 0 : index
    %c0_143 = arith.constant 0 : index
    %133 = vector.load %arg14[%c0_142, %c0_143] : memref<120x84xf32, #tpu.memory_space<vmem>>, vector<120x84xf32>
    %cst_144 = arith.constant dense<0.000000e+00> : vector<8x84xf32>
    %134 = tpu.matmul %132, %133, %cst_144 {dimension_numbers = #tpu.dot_dimension_numbers<[1], [0], [0], [1], [0, 0, 1, 1], [], []>} : vector<8x120xf32>, vector<120x84xf32>, vector<8x84xf32> -> vector<8x84xf32>
    %c0_145 = arith.constant 0 : index
    %c0_146 = arith.constant 0 : index
    %135 = vector.load %arg15[%c0_145, %c0_146] : memref<1x84xf32, #tpu.memory_space<vmem>>, vector<1x84xf32>
    %136 = vector.broadcast %135 : vector<1x84xf32> to vector<8x84xf32>
    %137 = arith.addf %134, %136 : vector<8x84xf32>
    %cst_147 = arith.constant 0.000000e+00 : f32
    %138 = vector.broadcast %cst_147 : f32 to vector<8x84xf32>
    %139 = arith.maximumf %137, %138 : vector<8x84xf32>
    %c0_148 = arith.constant 0 : index
    %c0_149 = arith.constant 0 : index
    %140 = vector.load %arg16[%c0_148, %c0_149] : memref<84x128xf32, #tpu.memory_space<vmem>>, vector<84x128xf32>
    %cst_150 = arith.constant dense<0.000000e+00> : vector<8x128xf32>
    %141 = tpu.matmul %139, %140, %cst_150 {dimension_numbers = #tpu.dot_dimension_numbers<[1], [0], [0], [1], [0, 0, 1, 1], [], []>} : vector<8x84xf32>, vector<84x128xf32>, vector<8x128xf32> -> vector<8x128xf32>
    %c0_151 = arith.constant 0 : index
    %c0_152 = arith.constant 0 : index
    %142 = vector.load %arg17[%c0_151, %c0_152] : memref<1x128xf32, #tpu.memory_space<vmem>>, vector<1x128xf32>
    %143 = vector.broadcast %142 : vector<1x128xf32> to vector<8x128xf32>
    %144 = arith.addf %141, %143 : vector<8x128xf32>
    %c0_153 = arith.constant 0 : index
    %c0_154 = arith.constant 0 : index
    %145 = vector.load %arg18[%c0_153, %c0_154] : memref<8x128xf32, #tpu.memory_space<vmem>>, vector<8x128xf32>
    tpu.vector_store %arg18[%c0_153, %c0_154], %144 {strides = array<i32>} : memref<8x128xf32, #tpu.memory_space<vmem>>, vector<8x128xf32>,
    return
  }
  func.func @transform_0(%arg0: i32) -> (i32, i32, i32) {
    %c0_i32 = arith.constant 0 : i32
    %c0_i32_0 = arith.constant 0 : i32
    %c0_i32_1 = arith.constant 0 : i32
    return %c0_i32, %arg0, %c0_i32_0 : i32, i32, i32
  }
  func.func @transform_1(%arg0: i32) -> (i32, i32, i32) {
    %c0_i32 = arith.constant 0 : i32
    %c0_i32_0 = arith.constant 0 : i32
    %c0_i32_1 = arith.constant 0 : i32
    %c0_i32_2 = arith.constant 0 : i32
    return %c0_i32, %c0_i32_0, %c0_i32_1 : i32, i32, i32
  }
  func.func @transform_2(%arg0: i32) -> (i32, i32) {
    %c0_i32 = arith.constant 0 : i32
    %c0_i32_0 = arith.constant 0 : i32
    %c0_i32_1 = arith.constant 0 : i32
    return %c0_i32, %c0_i32_0 : i32, i32
  }
  func.func @transform_3(%arg0: i32) -> (i32, i32, i32) {
    %c0_i32 = arith.constant 0 : i32
    %c0_i32_0 = arith.constant 0 : i32
    %c0_i32_1 = arith.constant 0 : i32
    %c0_i32_2 = arith.constant 0 : i32
    return %c0_i32, %c0_i32_0, %c0_i32_1 : i32, i32, i32
  }
  func.func @transform_4(%arg0: i32) -> (i32, i32, i32) {
    %c0_i32 = arith.constant 0 : i32
    %c0_i32_0 = arith.constant 0 : i32
    %c0_i32_1 = arith.constant 0 : i32
    %c0_i32_2 = arith.constant 0 : i32
    return %c0_i32, %c0_i32_0, %c0_i32_1 : i32, i32, i32
  }
  func.func @transform_5(%arg0: i32) -> (i32, i32, i32) {
    %c0_i32 = arith.constant 0 : i32
    %c0_i32_0 = arith.constant 0 : i32
    %c0_i32_1 = arith.constant 0 : i32
    %c0_i32_2 = arith.constant 0 : i32
    return %c0_i32, %c0_i32_0, %c0_i32_1 : i32, i32, i32
  }
  func.func @transform_6(%arg0: i32) -> (i32, i32) {
    %c0_i32 = arith.constant 0 : i32
    %c0_i32_0 = arith.constant 0 : i32
    %c0_i32_1 = arith.constant 0 : i32
    return %c0_i32, %c0_i32_0 : i32, i32
  }
  func.func @transform_7(%arg0: i32) -> (i32, i32, i32) {
    %c0_i32 = arith.constant 0 : i32
    %c0_i32_0 = arith.constant 0 : i32
    %c0_i32_1 = arith.constant 0 : i32
    %c0_i32_2 = arith.constant 0 : i32
    return %c0_i32, %c0_i32_0, %c0_i32_1 : i32, i32, i32
  }
  func.func @transform_8(%arg0: i32) -> (i32, i32, i32) {
    %c0_i32 = arith.constant 0 : i32
    %c0_i32_0 = arith.constant 0 : i32
    %c0_i32_1 = arith.constant 0 : i32
    %c0_i32_2 = arith.constant 0 : i32
    return %c0_i32, %c0_i32_0, %c0_i32_1 : i32, i32, i32
  }
  func.func @transform_9(%arg0: i32) -> (i32, i32, i32) {
    %c0_i32 = arith.constant 0 : i32
    %c0_i32_0 = arith.constant 0 : i32
    %c0_i32_1 = arith.constant 0 : i32
    %c0_i32_2 = arith.constant 0 : i32
    return %c0_i32, %c0_i32_0, %c0_i32_1 : i32, i32, i32
  }
  func.func @transform_10(%arg0: i32) -> (i32, i32, i32) {
    %c0_i32 = arith.constant 0 : i32
    %c0_i32_0 = arith.constant 0 : i32
    %c0_i32_1 = arith.constant 0 : i32
    %c0_i32_2 = arith.constant 0 : i32
    return %c0_i32, %c0_i32_0, %c0_i32_1 : i32, i32, i32
  }
  func.func @transform_11(%arg0: i32) -> (i32, i32, i32) {
    %c0_i32 = arith.constant 0 : i32
    %c0_i32_0 = arith.constant 0 : i32
    %c0_i32_1 = arith.constant 0 : i32
    %c0_i32_2 = arith.constant 0 : i32
    return %c0_i32, %c0_i32_0, %c0_i32_1 : i32, i32, i32
  }
  func.func @transform_12(%arg0: i32) -> (i32, i32) {
    %c0_i32 = arith.constant 0 : i32
    %c0_i32_0 = arith.constant 0 : i32
    %c0_i32_1 = arith.constant 0 : i32
    return %c0_i32, %c0_i32_0 : i32, i32
  }
  func.func @transform_13(%arg0: i32) -> (i32, i32) {
    %c0_i32 = arith.constant 0 : i32
    %c0_i32_0 = arith.constant 0 : i32
    %c0_i32_1 = arith.constant 0 : i32
    return %c0_i32, %c0_i32_0 : i32, i32
  }
  func.func @transform_14(%arg0: i32) -> (i32, i32) {
    %c0_i32 = arith.constant 0 : i32
    %c0_i32_0 = arith.constant 0 : i32
    %c0_i32_1 = arith.constant 0 : i32
    return %c0_i32, %c0_i32_0 : i32, i32
  }
  func.func @transform_15(%arg0: i32) -> (i32, i32) {
    %c0_i32 = arith.constant 0 : i32
    %c0_i32_0 = arith.constant 0 : i32
    %c0_i32_1 = arith.constant 0 : i32
    return %c0_i32, %c0_i32_0 : i32, i32
  }
  func.func @transform_16(%arg0: i32) -> (i32, i32) {
    %c0_i32 = arith.constant 0 : i32
    %c0_i32_0 = arith.constant 0 : i32
    %c0_i32_1 = arith.constant 0 : i32
    return %c0_i32, %c0_i32_0 : i32, i32
  }
  func.func @transform_17(%arg0: i32) -> (i32, i32) {
    %c0_i32 = arith.constant 0 : i32
    %c0_i32_0 = arith.constant 0 : i32
    return %arg0, %c0_i32 : i32, i32
  }
}

</mosaic_0001>

<bundles_post_ra>
// kernel: forward.1
= control target key start
LH: loop header
LB: loop body
LE: loop exit
PB: predicated region body
PF: predicated region fallthrough
CT: control target
= control target key end

     0   :  { %vm195_vm0 = vcmask 1043456   ;;  %vm122_vm1 = vcmask 228352   ;;  %vm1770_vm2 = vcmask 130048   ;;  %vm2266_vm3 = vcmask 523264   ;;  %s7703_s1 = inlined_call_operand.vmem [shape: f32[5,28,144], index: 1, kind: input, shape index: {}]   ;;  %s7704_s0 = inlined_call_operand.vmem [shape: f32[5,192,28], index: 0, kind: input, shape index: {}]   ;;  %s7705_s3 = inlined_call_operand.vmem [shape: f32[2,144,72], index: 3, kind: input, shape index: {}]   ;;  %s7706_s2 = inlined_call_operand.vmem [shape: f32[1,144], index: 2, kind: input, shape index: {}]   ;;  %s7707_s4 = inlined_call_operand.vmem [shape: f32[2,96,192], index: 4, kind: input, shape index: {}]   ;;  %s7708_s5 = inlined_call_operand.vmem [shape: f32[5,72,128], index: 5, kind: input, shape index: {}]   ;;  %s7709_s8 = inlined_call_operand.vmem [shape: f32[5,64,96], index: 8, kind: input, shape index: {}]   ;;  %s7710_s6 = inlined_call_operand.vmem [shape: f32[1,128], index: 6, kind: input, shape index: {}]   ;;  %s7711_s7 = inlined_call_operand.vmem [shape: f32[2,128,64], index: 7, kind: input, shape index: {}]   ;;  %s7712_s9 = inlined_call_operand.vmem [shape: f32[2,32,64], index: 9, kind: input, shape index: {}]   ;;  %s7713_s10 = inlined_call_operand.vmem [shape: f32[4,8,32], index: 10, kind: input, shape index: {}]   ;;  %s7714_s11 = inlined_call_operand.vmem [shape: f32[4,64,120], index: 11, kind: input, shape index: {}]   ;;  %s7715_s13 = inlined_call_operand.vmem [shape: f32[120,84], index: 13, kind: input, shape index: {}]   ;;  %s7716_s12 = inlined_call_operand.vmem [shape: f32[1,120], index: 12, kind: input, shape index: {}]   ;;  %s7717_s14 = inlined_call_operand.vmem [shape: f32[1,84], index: 14, kind: input, shape index: {}]   ;;  %s7718_s15 = inlined_call_operand.vmem [shape: f32[84,128], index: 15, kind: input, shape index: {}]   ;;  %s7719_s16 = inlined_call_operand.vmem [shape: f32[1,128], index: 16, kind: input, shape index: {}]   ;;  %s7720_s17 = inlined_call_operand.vmem [shape: f32[8,128], index: 17, kind: output, shape index: {}]  }
   0x1   :  { %7723 = sst [smem:[#allocation86_spill]] %s7703_s1  ;;  %vm2596_vm4 = vcmask 785408   ;;  %vm2755_vm5 = vcmask 588800   ;;  %vm3596_vm6 = vcmask 261120   ;;  %vm3849_vm7 = vcmask 982016  }
   0x2   :  { %7724 = sst [smem:[#allocation87_spill]] %s7704_s0  ;;  %vm3889_vm8 = vcmask 687104  }
   0x3   :  { %s7725_s26 = sld [smem:[#allocation86_spill]] }
   0x4   :  { %s7726_s29 = sld [smem:[#allocation87_spill]] }
   0x9   :  { %v3951_v0 = vld [vmem:[%s7725_s26 + $0x70] sm:$0xf]  ;;  %v3952_v1 = vld [vmem:[%s7725_s26 + $0x78] sm:$0xf]  ;;  %v3949_v3 = vld [vmem:[%s7725_s26 + $0x60] sm:$0xff] }
   0xa   :  { %v87_v2 = vld [vmem:[%s7725_s26 + $0x38] sm:$0xf]  ;;  %3953 = vmatpush.msk.msra.mxu0 %vm195_vm0, %v3951_v0  ;;  %3978 = vmatpush.msk.msra.mxu1 %vm195_vm0, %v3952_v1  ;;  %v3950_v4 = vld [vmem:[%s7725_s26 + $0x68] sm:$0xff]  ;;  %v86_v5 = vld [vmem:[%s7725_s26 + $0x30] sm:$0xf] }
   0xb   :  { %4028 = vmatpush.msk.msra.mxu3 %vm195_vm0, %v87_v2  ;;  %4627 = vmatpush.msk.msra.mxu2 %vm195_vm0, %v86_v5  ;;  %v85_v6 = vld [vmem:[%s7725_s26 + $0x28] sm:$0xff]  ;;  %v3947_v7 = vld [vmem:[%s7725_s26 + $0x50] sm:$0xff]  ;;  %v3948_v8 = vld [vmem:[%s7725_s26 + $0x58] sm:$0xff] }
   0xc   :  { %215 = vmatpush.msra.mxu0 %v3949_v3  ;;  %304 = vmatpush.msra.mxu1 %v3950_v4  ;;  %v84_v9 = vld [vmem:[%s7725_s26 + $0x20] sm:$0xff]  ;;  %v83_v10 = vld [vmem:[%s7725_s26 + $0x18] sm:$0xff]  ;;  %v3946_v12 = vld [vmem:[%s7725_s26 + $0x48] sm:$0xff] }
   0xd   :  { %560 = vmatpush.msra.mxu3 %v85_v6  ;;  %4628 = vmatpush.msra.mxu2 %v84_v9  ;;  %v3945_v11 = vld [vmem:[%s7725_s26 + $0x40] sm:$0xff]  ;;  %v82_v13 = vld [vmem:[%s7725_s26 + $0x10] sm:$0xff]  ;;  %v81_v14 = vld [vmem:[%s7725_s26 + $0x8] sm:$0xff] }
   0xe   :  { %216 = vmatpush.msra.mxu0 %v3947_v7  ;;  %305 = vmatpush.msra.mxu1 %v3948_v8  ;;  %v3921_v15 = vld [vmem:[%s7726_s29 + $0xc0] sm:$0xff]  ;;  %v57_v18 = vld [vmem:[%s7726_s29 + $0x8] sm:$0xff]  ;;  %v58_v20 = vld [vmem:[%s7726_s29 + $0x10] sm:$0xff] }
   0xf   :  { %561 = vmatpush.msra.mxu3 %v83_v10  ;;  %4629 = vmatpush.msra.mxu2 %v82_v13  ;;  %v4780_v16 = vld [vmem:[%s7726_s29] sm:$0xff]  ;;  %v3922_v19 = vld [vmem:[%s7726_s29 + $0xc8] sm:$0xff]  ;;  %v3923_v21 = vld [vmem:[%s7726_s29 + $0xd0] sm:$0xff] }
  0x10   :  { %217 = vmatpush.msra.mxu0 %v3945_v11  ;;  %306 = vmatpush.msra.mxu1 %v3946_v12  ;;  %v80_v17 = vld [vmem:[%s7725_s26] sm:$0xff]  ;;  %v59_v22 = vld [vmem:[%s7726_s29 + $0x18] sm:$0xff]  ;;  %v61_v26 = vld [vmem:[%s7726_s29 + $0x28] sm:$0xff] }
  0x11   :  { %562 = vmatpush.msra.mxu3 %v81_v14  ;;  %3954 = vmatmul.msk.f32.vlgmr.msra.gmra.mxu0 %vm122_vm1, %v3921_v15  ;;  %v3924_v23 = vld [vmem:[%s7726_s29 + $0xd8] sm:$0xff]  ;;  %v60_v24 = vld [vmem:[%s7726_s29 + $0x20] sm:$0xff]  ;;  %v3926_v27 = vld [vmem:[%s7726_s29 + $0xe8] sm:$0xff] }
  0x12   :  { %3979 = vmatmul.msk.f32.vlgmr.msra.gmra.mxu1 %vm122_vm1, %v3921_v15  ;;  %4029 = vmatmul.msk.f32.vlgmr.msra.gmra.mxu3 %vm122_vm1, %v4780_v16  ;;  %v3925_v25 = vld [vmem:[%s7726_s29 + $0xe0] sm:$0xff]  ;;  %v62_v28 = vld [vmem:[%s7726_s29 + $0x30] sm:$0xff]  ;;  %v63_v30 = vld [vmem:[%s7726_s29 + $0x38] sm:$0xff] }
  0x13   :  { %4630 = vmatpush.msra.mxu2 %v80_v17  ;;  %4003 = vmatpush.msk.msrb.mxu0 %vm195_vm0, %v86_v5  ;;  %v3927_v29 = vld [vmem:[%s7726_s29 + $0xf0] sm:$0xff]  ;;  %v3928_v31 = vld [vmem:[%s7726_s29 + $0xf8] sm:$0xff]  ;;  %v64_v32 = vld [vmem:[%s7726_s29 + $0x40] sm:$0xff] }
  0x14   :  { %4005 = vmatmul.msk.f32.vlgmr.msra.gmra.mxu2 %vm122_vm1, %v57_v18  ;;  %v3929_v33 = vld [vmem:[%s7726_s29 + $0x100] sm:$0xff]  ;;  %v65_v34 = vld [vmem:[%s7726_s29 + $0x48] sm:$0xff]  ;;  %v66_v36 = vld [vmem:[%s7726_s29 + $0x50] sm:$0xff] }
  0x15   :  { %471 = vmatpush.msrb.mxu0 %v84_v9  ;;  %v3930_v35 = vld [vmem:[%s7726_s29 + $0x108] sm:$0xff]  ;;  %v3931_v37 = vld [vmem:[%s7726_s29 + $0x110] sm:$0xff]  ;;  %v67_v38 = vld [vmem:[%s7726_s29 + $0x58] sm:$0xff] }
  0x16   :  { %v3932_v39 = vld [vmem:[%s7726_s29 + $0x118] sm:$0xff]  ;;  %v68_v40 = vld [vmem:[%s7726_s29 + $0x60] sm:$0xff]  ;;  %v69_v42 = vld [vmem:[%s7726_s29 + $0x68] sm:$0xff] }
  0x17   :  { %472 = vmatpush.msrb.mxu0 %v82_v13  ;;  %v3933_v41 = vld [vmem:[%s7726_s29 + $0x120] sm:$0xff]  ;;  %v3934_v43 = vld [vmem:[%s7726_s29 + $0x128] sm:$0xff]  ;;  %v70_v44 = vld [vmem:[%s7726_s29 + $0x70] sm:$0xff] }
  0x18   :  { %v3935_v45 = vld [vmem:[%s7726_s29 + $0x130] sm:$0xff]  ;;  %v71_v46 = vld [vmem:[%s7726_s29 + $0x78] sm:$0xff]  ;;  %v72_v48 = vld [vmem:[%s7726_s29 + $0x80] sm:$0xff] }
  0x19   :  { %3955 = vmatmul.msk.f32.gmra.mxu0 %vm122_vm1, %v3922_v19  ;;  %v3936_v47 = vld [vmem:[%s7726_s29 + $0x138] sm:$0xff]  ;;  %v3937_v50 = vld [vmem:[%s7726_s29 + $0x140] sm:$0xff]  ;;  %v73_v52 = vld [vmem:[%s7726_s29 + $0x88] sm:$0xff] }
  0x1a   :  { %3980 = vmatmul.msk.f32.gmra.mxu1 %vm122_vm1, %v3922_v19  ;;  %4030 = vmatmul.msk.f32.gmra.mxu3 %vm122_vm1, %v57_v18  ;;  %v3938_v56 = vld [vmem:[%s7726_s29 + $0x148] sm:$0xff]  ;;  %v74_v58 = vld [vmem:[%s7726_s29 + $0x90] sm:$0xff]  ;;  %v75_v0 = vld [vmem:[%s7726_s29 + $0x98] sm:$0xff] }
  0x1b   :  { %473 = vmatpush.msrb.mxu0 %v80_v17  ;;  %v3939_v62 = vld [vmem:[%s7726_s29 + $0x150] sm:$0xff]  ;;  %v3940_v4 = vld [vmem:[%s7726_s29 + $0x158] sm:$0xff]  ;;  %v76_v7 = vld [vmem:[%s7726_s29 + $0xa0] sm:$0xff] }
  0x1c   :  { %4006 = vmatmul.msk.f32.gmra.mxu2 %vm122_vm1, %v58_v20  ;;  %v4084_v8 = vld [vmem:[%s7725_s26 + $0xb8] sm:$0xf]  ;;  %v4082_v10 = vld [vmem:[%s7725_s26 + $0xa8] sm:$0xff]  ;;  %v3941_v13 = vld [vmem:[%s7726_s29 + $0x160] sm:$0xff] }
  0x1d   :  { %v4166_v9 = vld [vmem:[%s7725_s26 + $0xf8] sm:$0xf]  ;;  %4110 = vmatpush.msk.msrb.mxu1 %vm195_vm0, %v4084_v8  ;;  %v4164_v11 = vld [vmem:[%s7725_s26 + $0xe8] sm:$0xff]  ;;  %v4165_v18 = vld [vmem:[%s7725_s26 + $0xf0] sm:$0xf] }
  0x1e   :  { %4192 = vmatpush.msk.msrb.mxu3 %vm195_vm0, %v4166_v9  ;;  %v4080_v17 = vld [vmem:[%s7725_s26 + $0x98] sm:$0xff]  ;;  %4167 = vmatpush.msk.msrb.mxu2 %vm195_vm0, %v4165_v18  ;;  %v4137_v8 = vld [vmem:[%s7726_s29 + $0x250] sm:$0xff] }
  0x1f   :  { %850 = vmatpush.msrb.mxu1 %v4082_v10  ;;  %v4162_v19 = vld [vmem:[%s7725_s26 + $0xd8] sm:$0xff] }
  0x20   :  { %1188 = vmatpush.msrb.mxu3 %v4164_v11 }
  0x21   :  { %3956 = vmatmul.msk.f32.gmra.mxu0 %vm122_vm1, %v3923_v21  ;;  %851 = vmatpush.msrb.mxu1 %v4080_v17  ;;  %v4138_v17 = vld [vmem:[%s7726_s29 + $0x258] sm:$0xff] }
  0x22   :  { %3981 = vmatmul.msk.f32.gmra.mxu1 %vm122_vm1, %v3923_v21  ;;  %4031 = vmatmul.msk.f32.gmra.mxu3 %vm122_vm1, %v58_v20  ;;  %v4078_v21 = vld [vmem:[%s7725_s26 + $0x88] sm:$0xff] }
  0x23   :  { %1189 = vmatpush.msrb.mxu3 %v4162_v19  ;;  %852 = vmatpush.msrb.mxu1 %v4078_v21 }
  0x24   :  { %4007 = vmatmul.msk.f32.gmra.mxu2 %vm122_vm1, %v59_v22 }
  0x29   :  { %3957 = vmatmul.msk.f32.gmra.mxu0 %vm122_vm1, %v3924_v23 }
  0x2a   :  { %3982 = vmatmul.msk.f32.gmra.mxu1 %vm122_vm1, %v3924_v23  ;;  %4032 = vmatmul.msk.f32.gmra.mxu3 %vm122_vm1, %v59_v22  ;;  %v4163_v22 = vld [vmem:[%s7725_s26 + $0xe0] sm:$0xff]  ;;  %v4160_v23 = vld [vmem:[%s7725_s26 + $0xc8] sm:$0xff] }
  0x2b   :  { %1099 = vmatpush.msrb.mxu2 %v4163_v22  ;;  %1190 = vmatpush.msrb.mxu3 %v4160_v23  ;;  %v4056_v23 = vld [vmem:[%s7726_s29 + $0x198] sm:$0xff] }
  0x2c   :  { %4008 = vmatmul.msk.f32.gmra.mxu2 %vm122_vm1, %v60_v24 }
  0x31   :  { %3958 = vmatmul.msk.f32.gmra.mxu0 %vm122_vm1, %v3925_v25 }
  0x32   :  { %3983 = vmatmul.msk.f32.gmra.mxu1 %vm122_vm1, %v3925_v25  ;;  %4033 = vmatmul.msk.f32.gmra.mxu3 %vm122_vm1, %v60_v24  ;;  %v77_v24 = vld [vmem:[%s7726_s29 + $0xa8] sm:$0xff] }
  0x34   :  { %4009 = vmatmul.msk.f32.gmra.mxu2 %vm122_vm1, %v61_v26 }
  0x39   :  { %3959 = vmatmul.msk.f32.gmra.mxu0 %vm122_vm1, %v3926_v27 }
  0x3a   :  { %3984 = vmatmul.msk.f32.gmra.mxu1 %vm122_vm1, %v3926_v27  ;;  %4034 = vmatmul.msk.f32.gmra.mxu3 %vm122_vm1, %v61_v26  ;;  %v4083_v26 = vld [vmem:[%s7725_s26 + $0xb0] sm:$0xf] }
  0x3b   :  { %v4161_v27 = vld [vmem:[%s7725_s26 + $0xd0] sm:$0xff]  ;;  %4085 = vmatpush.msk.msra.mxu0 %vm195_vm0, %v4083_v26 }
  0x3c   :  { %4010 = vmatmul.msk.f32.gmra.mxu2 %vm122_vm1, %v62_v28 }
  0x3d   :  { %1100 = vmatpush.msrb.mxu2 %v4161_v27 }
  0x41   :  { %3960 = vmatmul.msk.f32.gmra.mxu0 %vm122_vm1, %v3927_v29 }
  0x42   :  { %3985 = vmatmul.msk.f32.gmra.mxu1 %vm122_vm1, %v3927_v29  ;;  %4035 = vmatmul.msk.f32.gmra.mxu3 %vm122_vm1, %v62_v28  ;;  %v4081_v28 = vld [vmem:[%s7725_s26 + $0xa0] sm:$0xff] }
  0x43   :  { %v4159_v29 = vld [vmem:[%s7725_s26 + $0xc0] sm:$0xff]  ;;  %761 = vmatpush.msra.mxu0 %v4081_v28 }
  0x44   :  { %4011 = vmatmul.msk.f32.gmra.mxu2 %vm122_vm1, %v63_v30 }
  0x45   :  { %1101 = vmatpush.msrb.mxu2 %v4159_v29 }
  0x49   :  { %3961 = vmatmul.msk.f32.gmra.mxu0 %vm122_vm1, %v3928_v31 }
  0x4a   :  { %3986 = vmatmul.msk.f32.gmra.mxu1 %vm122_vm1, %v3928_v31  ;;  %4036 = vmatmul.msk.f32.gmra.mxu3 %vm122_vm1, %v63_v30 }
  0x4c   :  { %4012 = vmatmul.msk.f32.gmra.mxu2 %vm122_vm1, %v64_v32 }
  0x51   :  { %3962 = vmatmul.msk.f32.gmra.mxu0 %vm122_vm1, %v3929_v33 }
  0x52   :  { %3987 = vmatmul.msk.f32.gmra.mxu1 %vm122_vm1, %v3929_v33  ;;  %4037 = vmatmul.msk.f32.gmra.mxu3 %vm122_vm1, %v64_v32  ;;  %v3942_v33 = vld [vmem:[%s7726_s29 + $0x168] sm:$0xff] }
  0x54   :  { %4013 = vmatmul.msk.f32.gmra.mxu2 %vm122_vm1, %v65_v34 }
  0x59   :  { %3963 = vmatmul.msk.f32.gmra.mxu0 %vm122_vm1, %v3930_v35 }
  0x5a   :  { %3988 = vmatmul.msk.f32.gmra.mxu1 %vm122_vm1, %v3930_v35  ;;  %4038 = vmatmul.msk.f32.gmra.mxu3 %vm122_vm1, %v65_v34  ;;  %v4079_v34 = vld [vmem:[%s7725_s26 + $0x90] sm:$0xff] }
  0x5b   :  { %762 = vmatpush.msra.mxu0 %v4079_v34  ;;  %v4140_v34 = vld [vmem:[%s7726_s29 + $0x268] sm:$0xff] }
  0x5c   :  { %4014 = vmatmul.msk.f32.gmra.mxu2 %vm122_vm1, %v66_v36 }
  0x61   :  { %3964 = vmatmul.msk.f32.gmra.mxu0 %vm122_vm1, %v3931_v37 }
  0x62   :  { %3989 = vmatmul.msk.f32.gmra.mxu1 %vm122_vm1, %v3931_v37  ;;  %4039 = vmatmul.msk.f32.gmra.mxu3 %vm122_vm1, %v66_v36  ;;  %v4077_v36 = vld [vmem:[%s7725_s26 + $0x80] sm:$0xff]  ;;  %v78_v37 = vld [vmem:[%s7726_s29 + $0xb0] sm:$0xff] }
  0x63   :  { %763 = vmatpush.msra.mxu0 %v4077_v36 }
  0x64   :  { %4015 = vmatmul.msk.f32.gmra.mxu2 %vm122_vm1, %v67_v38 }
  0x69   :  { %3965 = vmatmul.msk.f32.gmra.mxu0 %vm122_vm1, %v3932_v39 }
  0x6a   :  { %3990 = vmatmul.msk.f32.gmra.mxu1 %vm122_vm1, %v3932_v39  ;;  %4040 = vmatmul.msk.f32.gmra.mxu3 %vm122_vm1, %v67_v38 }
  0x6c   :  { %4016 = vmatmul.msk.f32.gmra.mxu2 %vm122_vm1, %v68_v40 }
  0x71   :  { %3966 = vmatmul.msk.f32.gmra.mxu0 %vm122_vm1, %v3933_v41 }
  0x72   :  { %3991 = vmatmul.msk.f32.gmra.mxu1 %vm122_vm1, %v3933_v41  ;;  %4041 = vmatmul.msk.f32.gmra.mxu3 %vm122_vm1, %v68_v40 }
  0x74   :  { %4017 = vmatmul.msk.f32.gmra.mxu2 %vm122_vm1, %v69_v42 }
  0x79   :  { %3967 = vmatmul.msk.f32.gmra.mxu0 %vm122_vm1, %v3934_v43 }
  0x7a   :  { %3992 = vmatmul.msk.f32.gmra.mxu1 %vm122_vm1, %v3934_v43  ;;  %4042 = vmatmul.msk.f32.gmra.mxu3 %vm122_vm1, %v69_v42  ;;  %v3943_v42 = vld [vmem:[%s7726_s29 + $0x170] sm:$0xff] }
  0x7c   :  { %4018 = vmatmul.msk.f32.gmra.mxu2 %vm122_vm1, %v70_v44 }
  0x81   :  { %3968 = vmatmul.msk.f32.gmra.mxu0 %vm122_vm1, %v3935_v45 }
  0x82   :  { %3993 = vmatmul.msk.f32.gmra.mxu1 %vm122_vm1, %v3935_v45  ;;  %4043 = vmatmul.msk.f32.gmra.mxu3 %vm122_vm1, %v70_v44  ;;  %v79_v44 = vld [vmem:[%s7726_s29 + $0xb8] sm:$0xff] }
  0x84   :  { %4019 = vmatmul.msk.f32.gmra.mxu2 %vm122_vm1, %v71_v46 }
  0x89   :  { %3969 = vmatmul.msk.f32.gmra.mxu0 %vm122_vm1, %v3936_v47 }
  0x8a   :  { %3994 = vmatmul.msk.f32.gmra.mxu1 %vm122_vm1, %v3936_v47  ;;  %4044 = vmatmul.msk.f32.gmra.mxu3 %vm122_vm1, %v71_v46 }
  0x8c   :  { %4020 = vmatmul.msk.f32.gmra.mxu2 %vm122_vm1, %v72_v48 }
  0x8e   :  { %v4944_v49 = vpop.f32.mrf.mxu0 }
  0x8f   :  { %v308_v51 = vpop.f32.mrf.mxu1 }
  0x91   :  { %3970 = vmatmul.msk.f32.gmra.mxu0 %vm122_vm1, %v3937_v50 }
  0x92   :  { %3995 = vmatmul.msk.f32.gmra.mxu1 %vm122_vm1, %v3937_v50  ;;  %4045 = vmatmul.msk.f32.gmra.mxu3 %vm122_vm1, %v72_v48  ;;  %v3944_v50 = vld [vmem:[%s7726_s29 + $0x178] sm:$0xff] }
  0x94   :  { %4021 = vmatmul.msk.f32.gmra.mxu2 %vm122_vm1, %v73_v52 }
  0x95   :  { %v564_v53 = vpop.f32.mrf.mxu3 }
  0x96   :  { %v4956_v54 = vadd.f32 %v564_v53, %v308_v51  ;;  %v4958_v55 = vpop.f32.mrf.mxu0 }
  0x97   :  { %v311_v57 = vpop.f32.mrf.mxu1  ;;  %v4991_v6 = vpop.f32.mrf.mxu2 }
  0x99   :  { %3971 = vmatmul.msk.f32.gmra.mxu0 %vm122_vm1, %v3938_v56 }
  0x9a   :  { %3996 = vmatmul.msk.f32.gmra.mxu1 %vm122_vm1, %v3938_v56  ;;  %4046 = vmatmul.msk.f32.gmra.mxu3 %vm122_vm1, %v73_v52  ;;  %v4135_v52 = vld [vmem:[%s7726_s29 + $0x240] sm:$0xff] }
  0x9c   :  { %4022 = vmatmul.msk.f32.gmra.mxu2 %vm122_vm1, %v74_v58 }
  0x9d   :  { %v567_v59 = vpop.f32.mrf.mxu3 }
  0x9e   :  { %v4970_v60 = vadd.f32 %v567_v59, %v311_v57  ;;  %v4972_v61 = vpop.f32.mrf.mxu0  ;;  %v4053_v59 = vld [vmem:[%s7726_s29 + $0x180] sm:$0xff] }
  0x9f   :  { %v314_v63 = vpop.f32.mrf.mxu1  ;;  %v5044_v25 = vpop.f32.mrf.mxu2 }
  0xa1   :  { %3972 = vmatmul.msk.f32.gmra.mxu0 %vm122_vm1, %v3939_v62 }
  0xa2   :  { %3997 = vmatmul.msk.f32.gmra.mxu1 %vm122_vm1, %v3939_v62  ;;  %4047 = vmatmul.msk.f32.gmra.mxu3 %vm122_vm1, %v74_v58 }
  0xa4   :  { %4023 = vmatmul.msk.f32.gmra.mxu2 %vm122_vm1, %v75_v0 }
  0xa5   :  { %v570_v1 = vpop.f32.mrf.mxu3 }
  0xa6   :  { %v4984_v2 = vadd.f32 %v570_v1, %v314_v63  ;;  %v4986_v3 = vpop.f32.mrf.mxu0  ;;  %v4136_v63 = vld [vmem:[%s7726_s29 + $0x248] sm:$0xff] }
  0xa7   :  { %v317_v5 = vpop.f32.mrf.mxu1  ;;  %v5081_v38 = vpop.f32.mrf.mxu2 }
  0xa9   :  { %3973 = vmatmul.msk.f32.gmra.mxu0 %vm122_vm1, %v3940_v4 }
  0xaa   :  { %3998 = vmatmul.msk.f32.gmra.mxu1 %vm122_vm1, %v3940_v4  ;;  %4048 = vmatmul.msk.f32.gmra.mxu3 %vm122_vm1, %v75_v0 }
  0xac   :  { %4024 = vmatmul.msk.f32.gmra.mxu2 %vm122_vm1, %v76_v7 }
  0xad   :  { %v573_v12 = vpop.f32.mrf.mxu3 }
  0xae   :  { %v5017_v14 = vadd.f32 %v573_v12, %v317_v5  ;;  %v5019_v15 = vpop.f32.mrf.mxu0 }
  0xaf   :  { %v320_v20 = vpop.f32.mrf.mxu1  ;;  %v5098_v46 = vpop.f32.mrf.mxu2 }
  0xb1   :  { %3974 = vmatmul.msk.f32.gmra.mxu0 %vm122_vm1, %v3941_v13 }
  0xb2   :  { %3999 = vmatmul.msk.f32.gmra.mxu1 %vm122_vm1, %v3941_v13  ;;  %4049 = vmatmul.msk.f32.gmra.mxu3 %vm122_vm1, %v76_v7  ;;  %v4055_v13 = vld [vmem:[%s7726_s29 + $0x190] sm:$0xff] }
  0xb4   :  { %4025 = vmatmul.msk.f32.gmra.mxu2 %vm122_vm1, %v77_v24 }
  0xb5   :  { %v576_v30 = vpop.f32.mrf.mxu3 }
  0xb6   :  { %v5062_v31 = vadd.f32 %v576_v30, %v320_v20  ;;  %v5064_v32 = vpop.f32.mrf.mxu0 }
  0xb7   :  { %v323_v35 = vpop.f32.mrf.mxu1  ;;  %v5121_v62 = vpop.f32.mrf.mxu2 }
  0xb9   :  { %3975 = vmatmul.msk.f32.gmra.mxu0 %vm122_vm1, %v3942_v33 }
  0xba   :  { %4000 = vmatmul.msk.f32.gmra.mxu1 %vm122_vm1, %v3942_v33  ;;  %4050 = vmatmul.msk.f32.gmra.mxu3 %vm122_vm1, %v77_v24  ;;  %v4139_v24 = vld [vmem:[%s7726_s29 + $0x260] sm:$0xff] }
  0xbb   :  { %v4057_v33 = vld [vmem:[%s7726_s29 + $0x1a0] sm:$0xff] }
  0xbc   :  { %4026 = vmatmul.msk.f32.gmra.mxu2 %vm122_vm1, %v78_v37 }
  0xbd   :  { %v579_v39 = vpop.f32.mrf.mxu3 }
  0xbe   :  { %v5084_v40 = vadd.f32 %v579_v39, %v323_v35  ;;  %v5086_v41 = vpop.f32.mrf.mxu0 }
  0xbf   :  { %v326_v43 = vpop.f32.mrf.mxu1  ;;  %v5139_v7 = vpop.f32.mrf.mxu2 }
  0xc1   :  { %3976 = vmatmul.msk.f32.gmra.mxu0 %vm122_vm1, %v3943_v42 }
  0xc2   :  { %4001 = vmatmul.msk.f32.gmra.mxu1 %vm122_vm1, %v3943_v42  ;;  %4051 = vmatmul.msk.f32.gmra.mxu3 %vm122_vm1, %v78_v37  ;;  %v4058_v42 = vld [vmem:[%s7726_s29 + $0x1a8] sm:$0xff] }
  0xc4   :  { %4027 = vmatmul.msk.f32.gmra.mxu2 %vm122_vm1, %v79_v44 }
  0xc5   :  { %v582_v45 = vpop.f32.mrf.mxu3 }
  0xc6   :  { %v5100_v47 = vadd.f32 %v582_v45, %v326_v43  ;;  %v5102_v48 = vpop.f32.mrf.mxu0 }
  0xc7   :  { %v329_v51 = vpop.f32.mrf.mxu1  ;;  %v5160_v18 = vpop.f32.mrf.mxu2 }
  0xc8   :  { %7732 = vst [vmem:[#allocation7_spill] sm:$0xff] %v5160_v18 }
  0xc9   :  { %3977 = vmatmul.msk.f32.gmra.mxu0 %vm122_vm1, %v3944_v50 }
  0xca   :  { %4002 = vmatmul.msk.f32.gmra.mxu1 %vm122_vm1, %v3944_v50  ;;  %4052 = vmatmul.msk.f32.gmra.mxu3 %vm122_vm1, %v79_v44  ;;  %v4141_v44 = vld [vmem:[%s7726_s29 + $0x270] sm:$0xff] }
  0xcc   :  { %4168 = vmatmul.msk.f32.vlgmr.msrb.gmra.mxu2 %vm122_vm1, %v4135_v52 }
  0xcd   :  { %v585_v53 = vpop.f32.mrf.mxu3 }
  0xce   :  { %v5114_v56 = vadd.f32 %v585_v53, %v329_v51  ;;  %v5116_v57 = vpop.f32.mrf.mxu0  ;;  %v4059_v53 = vld [vmem:[%s7726_s29 + $0x1b0] sm:$0xff] }
  0xcf   :  { %7727 = vst [vmem:[#allocation2_spill] sm:$0xff] %v5116_v57  ;;  %v332_v58 = vpop.f32.mrf.mxu1  ;;  %v5177_v27 = vpop.f32.mrf.mxu2  ;;  %v1754_v57 = vld [vmem:[%s7705_s3 + $0x10] sm:$0xff] }
  0xd0   :  { %7735 = vst [vmem:[#allocation10_spill] sm:$0xff] %v5177_v27  ;;  %v4230_v27 = vld [vmem:[%s7726_s29 + $0x368] sm:$0xff] }
  0xd1   :  { %4004 = vmatmul.msk.f32.vlgmr.msrb.gmra.mxu0 %vm122_vm1, %v4780_v16  ;;  %v4054_v16 = vld [vmem:[%s7726_s29 + $0x188] sm:$0xff] }
  0xd2   :  { %4111 = vmatmul.msk.f32.vlgmr.msrb.gmra.mxu1 %vm122_vm1, %v4053_v59  ;;  %4193 = vmatmul.msk.f32.vlgmr.msrb.gmra.mxu3 %vm122_vm1, %v4135_v52 }
  0xd4   :  { %4169 = vmatmul.msk.f32.gmra.mxu2 %vm122_vm1, %v4136_v63 }
  0xd5   :  { %v588_v0 = vpop.f32.mrf.mxu3 }
  0xd6   :  { %v5131_v1 = vadd.f32 %v588_v0, %v332_v58  ;;  %v5133_v4 = vpop.f32.mrf.mxu0 }
  0xd7   :  { %7729 = vst [vmem:[#allocation4_spill] sm:$0xff] %v5133_v4  ;;  %v335_v5 = vpop.f32.mrf.mxu1  ;;  %v5200_v43 = vpop.f32.mrf.mxu2  ;;  %v1763_v4 = vld [vmem:[%s7705_s3 + $0x58] sm:$0xff] }
  0xd8   :  { %7728 = vst [vmem:[#allocation3_spill] sm:$0xff] %v5131_v1 }
  0xd9   :  { %4086 = vmatmul.msk.f32.vlgmr.msra.gmra.mxu0 %vm122_vm1, %v4053_v59  ;;  %7740 = vst [vmem:[#allocation15_spill] sm:$0xff] %v5200_v43  ;;  %v4142_v59 = vld [vmem:[%s7726_s29 + $0x278] sm:$0xff] }
  0xda   :  { %4112 = vmatmul.msk.f32.gmra.mxu1 %vm122_vm1, %v4054_v16  ;;  %4194 = vmatmul.msk.f32.gmra.mxu3 %vm122_vm1, %v4136_v63 }
  0xdc   :  { %4170 = vmatmul.msk.f32.gmra.mxu2 %vm122_vm1, %v4137_v8 }
  0xdd   :  { %v591_v9 = vpop.f32.mrf.mxu3 }
  0xde   :  { %v5147_v10 = vadd.f32 %v591_v9, %v335_v5  ;;  %v5149_v11 = vpop.f32.mrf.mxu0  ;;  %v4143_v9 = vld [vmem:[%s7726_s29 + $0x280] sm:$0xff] }
  0xdf   :  { %7731 = vst [vmem:[#allocation6_spill] sm:$0xff] %v5149_v11  ;;  %v338_v12 = vpop.f32.mrf.mxu1  ;;  %v5217_v58 = vpop.f32.mrf.mxu2 }
  0xe0   :  { %7730 = vst [vmem:[#allocation5_spill] sm:$0xff] %v5147_v10  ;;  %v4229_v10 = vld [vmem:[%s7726_s29 + $0x360] sm:$0xff] }
  0xe1   :  { %4087 = vmatmul.msk.f32.gmra.mxu0 %vm122_vm1, %v4054_v16  ;;  %7743 = vst [vmem:[#allocation18_spill] sm:$0xff] %v5217_v58 }
  0xe2   :  { %4113 = vmatmul.msk.f32.gmra.mxu1 %vm122_vm1, %v4055_v13  ;;  %4195 = vmatmul.msk.f32.gmra.mxu3 %vm122_vm1, %v4137_v8  ;;  %v4060_v8 = vld [vmem:[%s7726_s29 + $0x1b8] sm:$0xff] }
  0xe4   :  { %4171 = vmatmul.msk.f32.gmra.mxu2 %vm122_vm1, %v4138_v17 }
  0xe5   :  { %v594_v19 = vpop.f32.mrf.mxu3 }
  0xe6   :  { %v5163_v20 = vadd.f32 %v594_v19, %v338_v12  ;;  %v5165_v21 = vpop.f32.mrf.mxu0 }
  0xe7   :  { %7734 = vst [vmem:[#allocation9_spill] sm:$0xff] %v5165_v21  ;;  %v341_v22 = vpop.f32.mrf.mxu1  ;;  %v5238_v12 = vpop.f32.mrf.mxu2 }
  0xe8   :  { %7733 = vst [vmem:[#allocation8_spill] sm:$0xff] %v5163_v20 }
  0xe9   :  { %4088 = vmatmul.msk.f32.gmra.mxu0 %vm122_vm1, %v4055_v13  ;;  %7746 = vst [vmem:[#allocation21_spill] sm:$0xff] %v5238_v12 }
  0xea   :  { %4114 = vmatmul.msk.f32.gmra.mxu1 %vm122_vm1, %v4056_v23  ;;  %4196 = vmatmul.msk.f32.gmra.mxu3 %vm122_vm1, %v4138_v17 }
  0xec   :  { %4172 = vmatmul.msk.f32.gmra.mxu2 %vm122_vm1, %v4139_v24 }
  0xed   :  { %v597_v26 = vpop.f32.mrf.mxu3 }
  0xee   :  { %v5179_v28 = vadd.f32 %v597_v26, %v341_v22  ;;  %v5181_v29 = vpop.f32.mrf.mxu0 }
  0xef   :  { %7737 = vst [vmem:[#allocation12_spill] sm:$0xff] %v5181_v29  ;;  %v344_v30 = vpop.f32.mrf.mxu1 }
  0xf0   :  { %7736 = vst [vmem:[#allocation11_spill] sm:$0xff] %v5179_v28 }
  0xf1   :  { %4089 = vmatmul.msk.f32.gmra.mxu0 %vm122_vm1, %v4056_v23  ;;  %v4061_v23 = vld [vmem:[%s7726_s29 + $0x1c0] sm:$0xff] }
  0xf2   :  { %4115 = vmatmul.msk.f32.gmra.mxu1 %vm122_vm1, %v4057_v33  ;;  %4197 = vmatmul.msk.f32.gmra.mxu3 %vm122_vm1, %v4139_v24  ;;  %v4144_v24 = vld [vmem:[%s7726_s29 + $0x288] sm:$0xff] }
  0xf4   :  { %4173 = vmatmul.msk.f32.gmra.mxu2 %vm122_vm1, %v4140_v34 }
  0xf5   :  { %v600_v35 = vpop.f32.mrf.mxu3 }
  0xf6   :  { %v5193_v36 = vadd.f32 %v600_v35, %v344_v30  ;;  %v5195_v37 = vpop.f32.mrf.mxu0  ;;  %v5255_v30 = vpop.f32.mrf.mxu2 }
  0xf7   :  { %7739 = vst [vmem:[#allocation14_spill] sm:$0xff] %v5195_v37  ;;  %v347_v39 = vpop.f32.mrf.mxu1 }
  0xf8   :  { %7738 = vst [vmem:[#allocation13_spill] sm:$0xff] %v5193_v36 }
  0xf9   :  { %4090 = vmatmul.msk.f32.gmra.mxu0 %vm122_vm1, %v4057_v33  ;;  %7749 = vst [vmem:[#allocation24_spill] sm:$0xff] %v5255_v30 }
  0xfa   :  { %4116 = vmatmul.msk.f32.gmra.mxu1 %vm122_vm1, %v4058_v42  ;;  %4198 = vmatmul.msk.f32.gmra.mxu3 %vm122_vm1, %v4140_v34 }
  0xfc   :  { %4174 = vmatmul.msk.f32.gmra.mxu2 %vm122_vm1, %v4141_v44 }
  0xfd   :  { %v603_v45 = vpop.f32.mrf.mxu3 }
  0xfe   :  { %v5209_v50 = vadd.f32 %v603_v45, %v347_v39  ;;  %v5211_v51 = vpop.f32.mrf.mxu0  ;;  %v4062_v39 = vld [vmem:[%s7726_s29 + $0x1c8] sm:$0xff] }
  0xff   :  { %7742 = vst [vmem:[#allocation17_spill] sm:$0xff] %v5211_v51  ;;  %v350_v52 = vpop.f32.mrf.mxu1 }
 0x100   :  { %7741 = vst [vmem:[#allocation16_spill] sm:$0xff] %v5209_v50 }
 0x101   :  { %4091 = vmatmul.msk.f32.gmra.mxu0 %vm122_vm1, %v4058_v42  ;;  %v4145_v42 = vld [vmem:[%s7726_s29 + $0x290] sm:$0xff] }
 0x102   :  { %4117 = vmatmul.msk.f32.gmra.mxu1 %vm122_vm1, %v4059_v53  ;;  %4199 = vmatmul.msk.f32.gmra.mxu3 %vm122_vm1, %v4141_v44 }
 0x104   :  { %4175 = vmatmul.msk.f32.gmra.mxu2 %vm122_vm1, %v4142_v59 }
 0x105   :  { %v606_v63 = vpop.f32.mrf.mxu3 }
 0x106   :  { %v5225_v0 = vadd.f32 %v606_v63, %v350_v52  ;;  %v5227_v5 = vpop.f32.mrf.mxu0  ;;  %v5278_v63 = vpop.f32.mrf.mxu2 }
 0x107   :  { %7745 = vst [vmem:[#allocation20_spill] sm:$0xff] %v5227_v5  ;;  %v353_v16 = vpop.f32.mrf.mxu1  ;;  %v4157_v5 = vld [vmem:[%s7726_s29 + $0x2f0] sm:$0xff] }
 0x108   :  { %7744 = vst [vmem:[#allocation19_spill] sm:$0xff] %v5225_v0 }
 0x109   :  { %4092 = vmatmul.msk.f32.gmra.mxu0 %vm122_vm1, %v4059_v53  ;;  %7754 = vst [vmem:[#allocation29_spill] sm:$0xff] %v5278_v63 }
 0x10a   :  { %4118 = vmatmul.msk.f32.gmra.mxu1 %vm122_vm1, %v4060_v8  ;;  %4200 = vmatmul.msk.f32.gmra.mxu3 %vm122_vm1, %v4142_v59  ;;  %v4063_v59 = vld [vmem:[%s7726_s29 + $0x1d0] sm:$0xff] }
 0x10c   :  { %4176 = vmatmul.msk.f32.gmra.mxu2 %vm122_vm1, %v4143_v9 }
 0x10d   :  { %v609_v13 = vpop.f32.mrf.mxu3 }
 0x10e   :  { %v5241_v17 = vadd.f32 %v609_v13, %v353_v16  ;;  %v5243_v19 = vpop.f32.mrf.mxu0  ;;  %v4146_v16 = vld [vmem:[%s7726_s29 + $0x298] sm:$0xff] }
 0x10f   :  { %7748 = vst [vmem:[#allocation23_spill] sm:$0xff] %v5243_v19  ;;  %v356_v22 = vpop.f32.mrf.mxu1 }
 0x110   :  { %7747 = vst [vmem:[#allocation22_spill] sm:$0xff] %v5241_v17 }
 0x111   :  { %4093 = vmatmul.msk.f32.gmra.mxu0 %vm122_vm1, %v4060_v8 }
 0x112   :  { %4119 = vmatmul.msk.f32.gmra.mxu1 %vm122_vm1, %v4061_v23  ;;  %4201 = vmatmul.msk.f32.gmra.mxu3 %vm122_vm1, %v4143_v9 }
 0x114   :  { %4177 = vmatmul.msk.f32.gmra.mxu2 %vm122_vm1, %v4144_v24 }
 0x115   :  { %v612_v26 = vpop.f32.mrf.mxu3 }
 0x116   :  { %v5257_v33 = vadd.f32 %v612_v26, %v356_v22  ;;  %v5259_v34 = vpop.f32.mrf.mxu0  ;;  %v4147_v26 = vld [vmem:[%s7726_s29 + $0x2a0] sm:$0xff] }
 0x117   :  { %7751 = vst [vmem:[#allocation26_spill] sm:$0xff] %v5259_v34  ;;  %v359_v35 = vpop.f32.mrf.mxu1 }
 0x118   :  { %7750 = vst [vmem:[#allocation25_spill] sm:$0xff] %v5257_v33  ;;  %v4242_v33 = vld [vmem:[%s7725_s26 + $0x108] sm:$0xff] }
 0x119   :  { %4094 = vmatmul.msk.f32.gmra.mxu0 %vm122_vm1, %v4061_v23  ;;  %v4064_v23 = vld [vmem:[%s7726_s29 + $0x1d8] sm:$0xff] }
 0x11a   :  { %4120 = vmatmul.msk.f32.gmra.mxu1 %vm122_vm1, %v4062_v39  ;;  %4202 = vmatmul.msk.f32.gmra.mxu3 %vm122_vm1, %v4144_v24  ;;  %v5295_v24 = vpop.f32.mrf.mxu2 }
 0x11b   :  { %7757 = vst [vmem:[#allocation32_spill] sm:$0xff] %v5295_v24 }
 0x11c   :  { %4178 = vmatmul.msk.f32.gmra.mxu2 %vm122_vm1, %v4145_v42 }
 0x11d   :  { %v615_v44 = vpop.f32.mrf.mxu3 }
 0x11e   :  { %v5271_v45 = vadd.f32 %v615_v44, %v359_v35  ;;  %v5273_v52 = vpop.f32.mrf.mxu0 }
 0x11f   :  { %7753 = vst [vmem:[#allocation28_spill] sm:$0xff] %v5273_v52  ;;  %v362_v53 = vpop.f32.mrf.mxu1 }
 0x120   :  { %7752 = vst [vmem:[#allocation27_spill] sm:$0xff] %v5271_v45  ;;  %v4155_v45 = vld [vmem:[%s7726_s29 + $0x2e0] sm:$0xff] }
 0x121   :  { %4095 = vmatmul.msk.f32.gmra.mxu0 %vm122_vm1, %v4062_v39 }
 0x122   :  { %4121 = vmatmul.msk.f32.gmra.mxu1 %vm122_vm1, %v4063_v59  ;;  %4203 = vmatmul.msk.f32.gmra.mxu3 %vm122_vm1, %v4145_v42 }
 0x124   :  { %4179 = vmatmul.msk.f32.gmra.mxu2 %vm122_vm1, %v4146_v16 }
 0x125   :  { %v618_v8 = vpop.f32.mrf.mxu3 }
 0x126   :  { %v5287_v9 = vadd.f32 %v618_v8, %v362_v53  ;;  %v5289_v13 = vpop.f32.mrf.mxu0  ;;  %v4065_v53 = vld [vmem:[%s7726_s29 + $0x1e0] sm:$0xff] }
 0x127   :  { %7756 = vst [vmem:[#allocation31_spill] sm:$0xff] %v5289_v13  ;;  %v365_v22 = vpop.f32.mrf.mxu1 }
 0x128   :  { %7755 = vst [vmem:[#allocation30_spill] sm:$0xff] %v5287_v9 }
 0x129   :  { %4096 = vmatmul.msk.f32.gmra.mxu0 %vm122_vm1, %v4063_v59  ;;  %v4148_v59 = vld [vmem:[%s7726_s29 + $0x2a8] sm:$0xff] }
 0x12a   :  { %4122 = vmatmul.msk.f32.gmra.mxu1 %vm122_vm1, %v4064_v23  ;;  %4204 = vmatmul.msk.f32.gmra.mxu3 %vm122_vm1, %v4146_v16  ;;  %v5316_v16 = vpop.f32.mrf.mxu2 }
 0x12b   :  { %7760 = vst [vmem:[#allocation35_spill] sm:$0xff] %v5316_v16  ;;  %v4241_v16 = vld [vmem:[%s7725_s26 + $0x100] sm:$0xff] }
 0x12c   :  { %4180 = vmatmul.msk.f32.gmra.mxu2 %vm122_vm1, %v4147_v26 }
 0x12d   :  { %v621_v35 = vpop.f32.mrf.mxu3 }
 0x12e   :  { %v5303_v39 = vadd.f32 %v621_v35, %v365_v22  ;;  %v5305_v42 = vpop.f32.mrf.mxu0 }
 0x12f   :  { %7759 = vst [vmem:[#allocation34_spill] sm:$0xff] %v5305_v42  ;;  %v368_v44 = vpop.f32.mrf.mxu1 }
 0x130   :  { %7758 = vst [vmem:[#allocation33_spill] sm:$0xff] %v5303_v39 }
 0x131   :  { %4097 = vmatmul.msk.f32.gmra.mxu0 %vm122_vm1, %v4064_v23  ;;  %v4066_v23 = vld [vmem:[%s7726_s29 + $0x1e8] sm:$0xff] }
 0x132   :  { %4123 = vmatmul.msk.f32.gmra.mxu1 %vm122_vm1, %v4065_v53  ;;  %4205 = vmatmul.msk.f32.gmra.mxu3 %vm122_vm1, %v4147_v26  ;;  %v4149_v26 = vld [vmem:[%s7726_s29 + $0x2b0] sm:$0xff] }
 0x134   :  { %4181 = vmatmul.msk.f32.gmra.mxu2 %vm122_vm1, %v4148_v59 }
 0x135   :  { %v624_v8 = vpop.f32.mrf.mxu3 }
 0x136   :  { %v5319_v22 = vadd.f32 %v624_v8, %v368_v44  ;;  %v5321_v35 = vpop.f32.mrf.mxu0  ;;  %v5333_v8 = vpop.f32.mrf.mxu2 }
 0x137   :  { %7762 = vst [vmem:[#allocation37_spill] sm:$0xff] %v5321_v35  ;;  %v371_v42 = vpop.f32.mrf.mxu1 }
 0x138   :  { %7761 = vst [vmem:[#allocation36_spill] sm:$0xff] %v5319_v22 }
 0x139   :  { %4098 = vmatmul.msk.f32.gmra.mxu0 %vm122_vm1, %v4065_v53  ;;  %7763 = vst [vmem:[#allocation38_spill] sm:$0xff] %v5333_v8  ;;  %v4067_v53 = vld [vmem:[%s7726_s29 + $0x1f0] sm:$0xff]  ;;  %v4244_v8 = vld [vmem:[%s7725_s26 + $0x118] sm:$0xff] }
 0x13a   :  { %4124 = vmatmul.msk.f32.gmra.mxu1 %vm122_vm1, %v4066_v23  ;;  %4206 = vmatmul.msk.f32.gmra.mxu3 %vm122_vm1, %v4148_v59  ;;  %v4150_v59 = vld [vmem:[%s7726_s29 + $0x2b8] sm:$0xff] }
 0x13c   :  { %4182 = vmatmul.msk.f32.gmra.mxu2 %vm122_vm1, %v4149_v26 }
 0x13d   :  { %v627_v44 = vpop.f32.mrf.mxu3 }
 0x13e   :  { %v5335_v35 = vadd.f32 %v627_v44, %v371_v42  ;;  %v5337_v22 = vpop.f32.mrf.mxu0  ;;  %v5356_v39 = vpop.f32.mrf.mxu2 }
 0x13f   :  { %7765 = vst [vmem:[#allocation40_spill] sm:$0xff] %v5337_v22  ;;  %v374_v13 = vpop.f32.mrf.mxu1 }
 0x140   :  { %7764 = vst [vmem:[#allocation39_spill] sm:$0xff] %v5335_v35 }
 0x141   :  { %4099 = vmatmul.msk.f32.gmra.mxu0 %vm122_vm1, %v4066_v23  ;;  %v4068_v23 = vld [vmem:[%s7726_s29 + $0x1f8] sm:$0xff]  ;;  %7768 = vst [vmem:[#allocation43_spill] sm:$0xff] %v5356_v39 }
 0x142   :  { %4125 = vmatmul.msk.f32.gmra.mxu1 %vm122_vm1, %v4067_v53  ;;  %4207 = vmatmul.msk.f32.gmra.mxu3 %vm122_vm1, %v4149_v26 }
 0x144   :  { %4183 = vmatmul.msk.f32.gmra.mxu2 %vm122_vm1, %v4150_v59 }
 0x145   :  { %v630_v42 = vpop.f32.mrf.mxu3 }
 0x146   :  { %v5349_v44 = vadd.f32 %v630_v42, %v374_v13  ;;  %v5351_v22 = vpop.f32.mrf.mxu0  ;;  %v4151_v13 = vld [vmem:[%s7726_s29 + $0x2c0] sm:$0xff] }
 0x147   :  { %7767 = vst [vmem:[#allocation42_spill] sm:$0xff] %v5351_v22  ;;  %v377_v35 = vpop.f32.mrf.mxu1 }
 0x148   :  { %7766 = vst [vmem:[#allocation41_spill] sm:$0xff] %v5349_v44 }
 0x149   :  { %4100 = vmatmul.msk.f32.gmra.mxu0 %vm122_vm1, %v4067_v53  ;;  %v4069_v53 = vld [vmem:[%s7726_s29 + $0x200] sm:$0xff] }
 0x14a   :  { %4126 = vmatmul.msk.f32.gmra.mxu1 %vm122_vm1, %v4068_v23  ;;  %4208 = vmatmul.msk.f32.gmra.mxu3 %vm122_vm1, %v4150_v59  ;;  %v5375_v59 = vpop.f32.mrf.mxu2 }
 0x14b   :  { %7770 = vst [vmem:[#allocation45_spill] sm:$0xff] %v5375_v59 }
 0x14c   :  { %4184 = vmatmul.msk.f32.gmra.mxu2 %vm122_vm1, %v4151_v13 }
 0x14d   :  { %v633_v26 = vpop.f32.mrf.mxu3 }
 0x14e   :  { %v5365_v42 = vadd.f32 %v633_v26, %v377_v35  ;;  %v5367_v22 = vpop.f32.mrf.mxu0  ;;  %v4152_v35 = vld [vmem:[%s7726_s29 + $0x2c8] sm:$0xff] }
 0x14f   :  { %v5369_v44 = vpop.f32.mrf.mxu1 }
 0x150   :  { %7769 = vst [vmem:[#allocation44_spill] sm:$0xff] %v5365_v42 }
 0x151   :  { %4101 = vmatmul.msk.f32.gmra.mxu0 %vm122_vm1, %v4068_v23  ;;  %v4070_v23 = vld [vmem:[%s7726_s29 + $0x208] sm:$0xff] }
 0x152   :  { %4127 = vmatmul.msk.f32.gmra.mxu1 %vm122_vm1, %v4069_v53  ;;  %4209 = vmatmul.msk.f32.gmra.mxu3 %vm122_vm1, %v4151_v13  ;;  %v4153_v13 = vld [vmem:[%s7726_s29 + $0x2d0] sm:$0xff]  ;;  %v5396_v59 = vpop.f32.mrf.mxu2 }
 0x153   :  { %7771 = vst [vmem:[#allocation46_spill] sm:$0xff] %v5396_v59 }
 0x154   :  { %4185 = vmatmul.msk.f32.gmra.mxu2 %vm122_vm1, %v4152_v35 }
 0x156   :  { %v5383_v26 = vpop.f32.mrf.mxu0 }
 0x157   :  { %v5385_v42 = vpop.f32.mrf.mxu1 }
 0x159   :  { %4102 = vmatmul.msk.f32.gmra.mxu0 %vm122_vm1, %v4069_v53  ;;  %v4071_v53 = vld [vmem:[%s7726_s29 + $0x210] sm:$0xff] }
 0x15a   :  { %4128 = vmatmul.msk.f32.gmra.mxu1 %vm122_vm1, %v4070_v23  ;;  %4210 = vmatmul.msk.f32.gmra.mxu3 %vm122_vm1, %v4152_v35  ;;  %v4154_v35 = vld [vmem:[%s7726_s29 + $0x2d8] sm:$0xff]  ;;  %v5413_v59 = vpop.f32.mrf.mxu2 }
 0x15b   :  { %7772 = vst [vmem:[#allocation47_spill] sm:$0xff] %v5413_v59  ;;  %v4248_v59 = vld [vmem:[%s7725_s26 + $0x138] sm:$0xf] }
 0x15c   :  { %4186 = vmatmul.msk.f32.gmra.mxu2 %vm122_vm1, %v4153_v13  ;;  %4274 = vmatpush.msk.msra.mxu1 %vm195_vm0, %v4248_v59 }
 0x15e   :  { %v5399_v52 = vpop.f32.mrf.mxu0 }
 0x15f   :  { %v5401_v9 = vpop.f32.mrf.mxu1 }
 0x161   :  { %4103 = vmatmul.msk.f32.gmra.mxu0 %vm122_vm1, %v4070_v23  ;;  %v4072_v23 = vld [vmem:[%s7726_s29 + $0x218] sm:$0xff] }
 0x162   :  { %4129 = vmatmul.msk.f32.gmra.mxu1 %vm122_vm1, %v4071_v53  ;;  %4211 = vmatmul.msk.f32.gmra.mxu3 %vm122_vm1, %v4153_v13  ;;  %v4247_v13 = vld [vmem:[%s7725_s26 + $0x130] sm:$0xf]  ;;  %v5450_v59 = vpop.f32.mrf.mxu2 }
 0x163   :  { %4249 = vmatpush.msk.msrb.mxu0 %vm195_vm0, %v4247_v13  ;;  %v4073_v13 = vld [vmem:[%s7726_s29 + $0x220] sm:$0xff]  ;;  %7773 = vst [vmem:[#allocation48_spill] sm:$0xff] %v5450_v59 }
 0x164   :  { %4187 = vmatmul.msk.f32.gmra.mxu2 %vm122_vm1, %v4154_v35 }
 0x166   :  { %v5415_v39 = vpop.f32.mrf.mxu0 }
 0x167   :  { %v5417_v34 = vpop.f32.mrf.mxu1 }
 0x169   :  { %4104 = vmatmul.msk.f32.gmra.mxu0 %vm122_vm1, %v4071_v53  ;;  %v4246_v53 = vld [vmem:[%s7725_s26 + $0x128] sm:$0xff] }
 0x16a   :  { %4130 = vmatmul.msk.f32.gmra.mxu1 %vm122_vm1, %v4072_v23  ;;  %4212 = vmatmul.msk.f32.gmra.mxu3 %vm122_vm1, %v4154_v35 }
 0x16b   :  { %1526 = vmatpush.msra.mxu1 %v4246_v53  ;;  %v4156_v53 = vld [vmem:[%s7726_s29 + $0x2e8] sm:$0xff] }
 0x16c   :  { %4188 = vmatmul.msk.f32.gmra.mxu2 %vm122_vm1, %v4155_v45 }
 0x16d   :  { %1527 = vmatpush.msra.mxu1 %v4244_v8  ;;  %v4245_v8 = vld [vmem:[%s7725_s26 + $0x120] sm:$0xff] }
 0x16e   :  { %v5440_v35 = vpop.f32.mrf.mxu0  ;;  %1437 = vmatpush.msrb.mxu0 %v4245_v8  ;;  %v5479_v8 = vpop.f32.mrf.mxu2 }
 0x16f   :  { %v5445_v19 = vpop.f32.mrf.mxu1  ;;  %1528 = vmatpush.msra.mxu1 %v4242_v33  ;;  %v4243_v33 = vld [vmem:[%s7725_s26 + $0x110] sm:$0xff]  ;;  %7774 = vst [vmem:[#allocation49_spill] sm:$0xff] %v5479_v8 }
 0x170   :  { %1438 = vmatpush.msrb.mxu0 %v4243_v33 }
 0x171   :  { %4105 = vmatmul.msk.f32.gmra.mxu0 %vm122_vm1, %v4072_v23 }
 0x172   :  { %4131 = vmatmul.msk.f32.gmra.mxu1 %vm122_vm1, %v4073_v13  ;;  %4213 = vmatmul.msk.f32.gmra.mxu3 %vm122_vm1, %v4155_v45  ;;  %v4074_v45 = vld [vmem:[%s7726_s29 + $0x228] sm:$0xff] }
 0x173   :  { %1439 = vmatpush.msrb.mxu0 %v4241_v16  ;;  %v4158_v16 = vld [vmem:[%s7726_s29 + $0x2f8] sm:$0xff] }
 0x174   :  { %4189 = vmatmul.msk.f32.gmra.mxu2 %vm122_vm1, %v4156_v53 }
 0x176   :  { %v5465_v59 = vpop.f32.mrf.mxu0 }
 0x177   :  { %v5470_v23 = vpop.f32.mrf.mxu1 }
 0x179   :  { %4106 = vmatmul.msk.f32.gmra.mxu0 %vm122_vm1, %v4073_v13  ;;  %v4075_v13 = vld [vmem:[%s7726_s29 + $0x230] sm:$0xff] }
 0x17a   :  { %4132 = vmatmul.msk.f32.gmra.mxu1 %vm122_vm1, %v4074_v45  ;;  %4214 = vmatmul.msk.f32.gmra.mxu3 %vm122_vm1, %v4156_v53  ;;  %v5500_v53 = vpop.f32.mrf.mxu2 }
 0x17b   :  { %7775 = vst [vmem:[#allocation50_spill] sm:$0xff] %v5500_v53  ;;  %v4217_v53 = vld [vmem:[%s7726_s29 + $0x300] sm:$0xff] }
 0x17c   :  { %4190 = vmatmul.msk.f32.gmra.mxu2 %vm122_vm1, %v4157_v5 }
 0x17e   :  { %v5487_v33 = vpop.f32.mrf.mxu0 }
 0x17f   :  { %v5489_v17 = vpop.f32.mrf.mxu1 }
 0x181   :  { %4107 = vmatmul.msk.f32.gmra.mxu0 %vm122_vm1, %v4074_v45  ;;  %v4076_v45 = vld [vmem:[%s7726_s29 + $0x238] sm:$0xff] }
 0x182   :  { %4133 = vmatmul.msk.f32.gmra.mxu1 %vm122_vm1, %v4075_v13  ;;  %4215 = vmatmul.msk.f32.gmra.mxu3 %vm122_vm1, %v4157_v5 }
 0x184   :  { %4191 = vmatmul.msk.f32.gmra.mxu2 %vm122_vm1, %v4158_v16 }
 0x186   :  { %v5503_v8 = vpop.f32.mrf.mxu0 }
 0x187   :  { %v5505_v24 = vpop.f32.mrf.mxu1 }
 0x189   :  { %4108 = vmatmul.msk.f32.gmra.mxu0 %vm122_vm1, %v4075_v13  ;;  %v4218_v13 = vld [vmem:[%s7726_s29 + $0x308] sm:$0xff] }
 0x18a   :  { %4134 = vmatmul.msk.f32.gmra.mxu1 %vm122_vm1, %v4076_v45  ;;  %4216 = vmatmul.msk.f32.gmra.mxu3 %vm122_vm1, %v4158_v16 }
 0x18e   :  { %v5513_v5 = vpop.f32.mrf.mxu0 }
 0x18f   :  { %7776 = vst [vmem:[#allocation51_spill] sm:$0xff] %v5513_v5  ;;  %v5515_v51 = vpop.f32.mrf.mxu1 }
 0x190   :  { %7777 = vst [vmem:[#allocation52_spill] sm:$0xff] %v5515_v51 }
 0x191   :  { %4109 = vmatmul.msk.f32.gmra.mxu0 %vm122_vm1, %v4076_v45  ;;  %v4219_v45 = vld [vmem:[%s7726_s29 + $0x310] sm:$0xff] }
 0x192   :  { %4275 = vmatmul.msk.f32.vlgmr.msra.gmra.mxu1 %vm122_vm1, %v4217_v53 }
 0x196   :  { %v5522_v0 = vpop.f32.mrf.mxu0 }
 0x197   :  { %7778 = vst [vmem:[#allocation53_spill] sm:$0xff] %v5522_v0  ;;  %v5524_v63 = vpop.f32.mrf.mxu1 }
 0x198   :  { %7779 = vst [vmem:[#allocation54_spill] sm:$0xff] %v5524_v63 }
 0x199   :  { %4250 = vmatmul.msk.f32.vlgmr.msrb.gmra.mxu0 %vm122_vm1, %v4217_v53  ;;  %v4220_v53 = vld [vmem:[%s7726_s29 + $0x318] sm:$0xff] }
 0x19a   :  { %4276 = vmatmul.msk.f32.gmra.mxu1 %vm122_vm1, %v4218_v13 }
 0x19e   :  { %v5531_v16 = vpop.f32.mrf.mxu0 }
 0x19f   :  { %7780 = vst [vmem:[#allocation55_spill] sm:$0xff] %v5531_v16  ;;  %v5533_v37 = vpop.f32.mrf.mxu1 }
 0x1a0   :  { %7781 = vst [vmem:[#allocation56_spill] sm:$0xff] %v5533_v37 }
 0x1a1   :  { %4251 = vmatmul.msk.f32.gmra.mxu0 %vm122_vm1, %v4218_v13  ;;  %v4221_v13 = vld [vmem:[%s7726_s29 + $0x320] sm:$0xff] }
 0x1a2   :  { %4277 = vmatmul.msk.f32.gmra.mxu1 %vm122_vm1, %v4219_v45 }
 0x1a6   :  { %v5540_v50 = vpop.f32.mrf.mxu0 }
 0x1a7   :  { %7782 = vst [vmem:[#allocation57_spill] sm:$0xff] %v5540_v50  ;;  %v5542_v30 = vpop.f32.mrf.mxu1 }
 0x1a8   :  { %7783 = vst [vmem:[#allocation58_spill] sm:$0xff] %v5542_v30  ;;  %v5565_v30 = vpop.f32.mrf.mxu2 }
 0x1a9   :  { %4252 = vmatmul.msk.f32.gmra.mxu0 %vm122_vm1, %v4219_v45  ;;  %v4222_v45 = vld [vmem:[%s7726_s29 + $0x328] sm:$0xff] }
 0x1aa   :  { %4278 = vmatmul.msk.f32.gmra.mxu1 %vm122_vm1, %v4220_v53 }
 0x1ae   :  { %v5549_v29 = vpop.f32.mrf.mxu0 }
 0x1af   :  { %7784 = vst [vmem:[#allocation59_spill] sm:$0xff] %v5549_v29  ;;  %v5551_v36 = vpop.f32.mrf.mxu1  ;;  %v5567_v29 = vpop.f32.mrf.mxu3 }
 0x1b0   :  { %7785 = vst [vmem:[#allocation60_spill] sm:$0xff] %v5551_v36 }
 0x1b1   :  { %4253 = vmatmul.msk.f32.gmra.mxu0 %vm122_vm1, %v4220_v53 }
 0x1b2   :  { %4279 = vmatmul.msk.f32.gmra.mxu1 %vm122_vm1, %v4221_v13 }
 0x1b6   :  { %v5558_v12 = vpop.f32.mrf.mxu0 }
 0x1b7   :  { %7786 = vst [vmem:[#allocation61_spill] sm:$0xff] %v5558_v12  ;;  %v5560_v21 = vpop.f32.mrf.mxu1  ;;  %v5579_v12 = vpop.f32.mrf.mxu2 }
 0x1b8   :  { %7787 = vst [vmem:[#allocation62_spill] sm:$0xff] %v5560_v21  ;;  %v4223_v21 = vld [vmem:[%s7726_s29 + $0x330] sm:$0xff]  ;;  %v5582_v28 = vpop.f32.mrf.mxu3 }
 0x1b9   :  { %4254 = vmatmul.msk.f32.gmra.mxu0 %vm122_vm1, %v4221_v13 }
 0x1ba   :  { %4280 = vmatmul.msk.f32.gmra.mxu1 %vm122_vm1, %v4222_v45 }
 0x1be   :  { %v5571_v36 = vpop.f32.mrf.mxu0 }
 0x1bf   :  { %7788 = vst [vmem:[#allocation63_spill] sm:$0xff] %v5571_v36  ;;  %v5573_v53 = vpop.f32.mrf.mxu1  ;;  %v5593_v36 = vpop.f32.mrf.mxu2 }
 0x1c0   :  { %7789 = vst [vmem:[#allocation64_spill] sm:$0xff] %v5573_v53  ;;  %v4224_v53 = vld [vmem:[%s7726_s29 + $0x338] sm:$0xff] }
 0x1c1   :  { %4255 = vmatmul.msk.f32.gmra.mxu0 %vm122_vm1, %v4222_v45  ;;  %v5595_v45 = vpop.f32.mrf.mxu3 }
 0x1c2   :  { %4281 = vmatmul.msk.f32.gmra.mxu1 %vm122_vm1, %v4223_v21 }
 0x1c6   :  { %v5584_v50 = vpop.f32.mrf.mxu0 }
 0x1c7   :  { %7790 = vst [vmem:[#allocation65_spill] sm:$0xff] %v5584_v50  ;;  %v5586_v13 = vpop.f32.mrf.mxu1  ;;  %v5606_v50 = vpop.f32.mrf.mxu2 }
 0x1c8   :  { %7791 = vst [vmem:[#allocation66_spill] sm:$0xff] %v5586_v13  ;;  %v4225_v13 = vld [vmem:[%s7726_s29 + $0x340] sm:$0xff] }
 0x1c9   :  { %4256 = vmatmul.msk.f32.gmra.mxu0 %vm122_vm1, %v4223_v21  ;;  %v5610_v37 = vpop.f32.mrf.mxu3 }
 0x1ca   :  { %4282 = vmatmul.msk.f32.gmra.mxu1 %vm122_vm1, %v4224_v53 }
 0x1ce   :  { %v5597_v58 = vpop.f32.mrf.mxu0 }
 0x1cf   :  { %7792 = vst [vmem:[#allocation67_spill] sm:$0xff] %v5597_v58  ;;  %v5599_v11 = vpop.f32.mrf.mxu1 }
 0x1d0   :  { %7793 = vst [vmem:[#allocation68_spill] sm:$0xff] %v5599_v11  ;;  %v4226_v11 = vld [vmem:[%s7726_s29 + $0x348] sm:$0xff] }
 0x1d1   :  { %4257 = vmatmul.msk.f32.gmra.mxu0 %vm122_vm1, %v4224_v53  ;;  %v1767_v53 = vld [vmem:[%s7705_s3 + $0x78] sm:$0xff]  ;;  %v5634_v43 = vpop.f32.mrf.mxu3 }
 0x1d2   :  { %4283 = vmatmul.msk.f32.gmra.mxu1 %vm122_vm1, %v4225_v13  ;;  %1843 = vmatpush.msra.mxu2 %v1767_v53  ;;  %v1764_v53 = vld [vmem:[%s7705_s3 + $0x60] sm:$0xff] }
 0x1d6   :  { %v5608_v21 = vpop.f32.mrf.mxu0 }
 0x1d7   :  { %7794 = vst [vmem:[#allocation69_spill] sm:$0xff] %v5608_v21  ;;  %v5612_v20 = vpop.f32.mrf.mxu1  ;;  %v5629_v21 = vpop.f32.mrf.mxu2 }
 0x1d8   :  { %7795 = vst [vmem:[#allocation70_spill] sm:$0xff] %v5612_v20  ;;  %v4227_v20 = vld [vmem:[%s7726_s29 + $0x350] sm:$0xff] }
 0x1d9   :  { %4258 = vmatmul.msk.f32.gmra.mxu0 %vm122_vm1, %v4225_v13  ;;  %v1766_v13 = vld [vmem:[%s7705_s3 + $0x70] sm:$0xff] }
 0x1da   :  { %4284 = vmatmul.msk.f32.gmra.mxu1 %vm122_vm1, %v4226_v11  ;;  %1844 = vmatpush.msra.mxu2 %v1766_v13  ;;  %v4228_v13 = vld [vmem:[%s7726_s29 + $0x358] sm:$0xff] }
 0x1de   :  { %v5619_v58 = vpop.f32.mrf.mxu0 }
 0x1df   :  { %7796 = vst [vmem:[#allocation71_spill] sm:$0xff] %v5619_v58  ;;  %v5624_v16 = vpop.f32.mrf.mxu1 }
 0x1e0   :  { %7797 = vst [vmem:[#allocation72_spill] sm:$0xff] %v5624_v16  ;;  %v1765_v16 = vld [vmem:[%s7705_s3 + $0x68] sm:$0xff] }
 0x1e1   :  { %4259 = vmatmul.msk.f32.gmra.mxu0 %vm122_vm1, %v4226_v11  ;;  %1845 = vmatpush.msra.mxu2 %v1765_v16  ;;  %v1762_v16 = vld [vmem:[%s7705_s3 + $0x50] sm:$0xff] }
 0x1e2   :  { %4285 = vmatmul.msk.f32.gmra.mxu1 %vm122_vm1, %v4227_v20 }
 0x1e3   :  { %1846 = vmatpush.msra.mxu2 %v1764_v53  ;;  %v5658_v53 = vpop.f32.mrf.mxu2 }
 0x1e5   :  { %1847 = vmatpush.msra.mxu2 %v1763_v4  ;;  %v1760_v4 = vld [vmem:[%s7705_s3 + $0x40] sm:$0xff] }
 0x1e6   :  { %v5644_v58 = vpop.f32.mrf.mxu0 }
 0x1e7   :  { %7798 = vst [vmem:[#allocation73_spill] sm:$0xff] %v5644_v58  ;;  %v5649_v11 = vpop.f32.mrf.mxu1  ;;  %1848 = vmatpush.msra.mxu2 %v1762_v16  ;;  %v5664_v58 = vpop.f32.mrf.mxu3 }
 0x1e8   :  { %7799 = vst [vmem:[#allocation74_spill] sm:$0xff] %v5649_v11  ;;  %v1761_v11 = vld [vmem:[%s7705_s3 + $0x48] sm:$0xff] }
 0x1e9   :  { %4260 = vmatmul.msk.f32.gmra.mxu0 %vm122_vm1, %v4227_v20  ;;  %1849 = vmatpush.msra.mxu2 %v1761_v11  ;;  %v1759_v20 = vld [vmem:[%s7705_s3 + $0x38] sm:$0xff]  ;;  %v1758_v11 = vld [vmem:[%s7705_s3 + $0x30] sm:$0xff] }
 0x1ea   :  { %4286 = vmatmul.msk.f32.gmra.mxu1 %vm122_vm1, %v4228_v13 }
 0x1eb   :  { %1850 = vmatpush.msra.mxu2 %v1760_v4  ;;  %v1757_v4 = vld [vmem:[%s7705_s3 + $0x28] sm:$0xff] }
 0x1ed   :  { %1851 = vmatpush.msra.mxu2 %v1759_v20  ;;  %v5690_v20 = vpop.f32.mrf.mxu2 }
 0x1ee   :  { %v5669_v63 = vpop.f32.mrf.mxu0 }
 0x1ef   :  { %7800 = vst [vmem:[#allocation75_spill] sm:$0xff] %v5669_v63  ;;  %v5674_v16 = vpop.f32.mrf.mxu1  ;;  %1852 = vmatpush.msra.mxu2 %v1758_v11  ;;  %v1756_v63 = vld [vmem:[%s7705_s3 + $0x20] sm:$0xff]  ;;  %v5698_v11 = vpop.f32.mrf.mxu3 }
 0x1f0   :  { %7801 = vst [vmem:[#allocation76_spill] sm:$0xff] %v5674_v16  ;;  %v1769_v16 = vld [vmem:[%s7705_s3 + $0x88] sm:$0xff] }
 0x1f1   :  { %4261 = vmatmul.msk.f32.gmra.mxu0 %vm122_vm1, %v4228_v13  ;;  %1853 = vmatpush.msra.mxu2 %v1757_v4  ;;  %v1768_v13 = vld [vmem:[%s7705_s3 + $0x80] sm:$0xff] }
 0x1f2   :  { %4287 = vmatmul.msk.f32.gmra.mxu1 %vm122_vm1, %v4229_v10  ;;  %1946 = vmatpush.msra.mxu3 %v1769_v16  ;;  %v1755_v16 = vld [vmem:[%s7705_s3 + $0x18] sm:$0xff] }
 0x1f3   :  { %1854 = vmatpush.msra.mxu2 %v1756_v63  ;;  %v1753_v63 = vld [vmem:[%s7705_s3 + $0x8] sm:$0xff] }
 0x1f4   :  { %1947 = vmatpush.msra.mxu3 %v1768_v13  ;;  %v1752_v13 = vld [vmem:[%s7705_s3] sm:$0xff] }
 0x1f5   :  { %1855 = vmatpush.msra.mxu2 %v1755_v16  ;;  %v5721_v16 = vpop.f32.mrf.mxu2 }
 0x1f6   :  { %v5700_v0 = vpop.f32.mrf.mxu0  ;;  %7804 = vst [vmem:[#allocation79_spill] sm:$0xff] %v5721_v16 }
 0x1f7   :  { %7802 = vst [vmem:[#allocation77_spill] sm:$0xff] %v5700_v0  ;;  %v5705_v4 = vpop.f32.mrf.mxu1  ;;  %1856 = vmatpush.msra.mxu2 %v1754_v57  ;;  %v5725_v0 = vpop.f32.mrf.mxu3  ;;  %v4231_v57 = vld [vmem:[%s7726_s29 + $0x370] sm:$0xff] }
 0x1f8   :  { %7803 = vst [vmem:[#allocation78_spill] sm:$0xff] %v5705_v4 }
 0x1f9   :  { %4262 = vmatmul.msk.f32.gmra.mxu0 %vm122_vm1, %v4229_v10  ;;  %1857 = vmatpush.msra.mxu2 %v1753_v63 }
 0x1fa   :  { %4288 = vmatmul.msk.f32.gmra.mxu1 %vm122_vm1, %v4230_v27 }
 0x1fb   :  { %1858 = vmatpush.msra.mxu2 %v1752_v13  ;;  %v4232_v13 = vld [vmem:[%s7726_s29 + $0x378] sm:$0xff] }
 0x1fe   :  { %v5723_v4 = vpop.f32.mrf.mxu0 }
 0x1ff   :  { %7805 = vst [vmem:[#allocation80_spill] sm:$0xff] %v5723_v4  ;;  %v5727_v10 = vpop.f32.mrf.mxu1  ;;  %v5741_v4 = vpop.f32.mrf.mxu2 }
 0x200   :  { %7806 = vst [vmem:[#allocation81_spill] sm:$0xff] %v5727_v10  ;;  %v5743_v16 = vpop.f32.mrf.mxu3 }
 0x201   :  { %4263 = vmatmul.msk.f32.gmra.mxu0 %vm122_vm1, %v4230_v27  ;;  %7809 = vst [vmem:[#allocation84_spill] sm:$0xff] %v5741_v4  ;;  %v1650_v27 = vld [vmem:[%s7706_s2] sm:$0x3]  ;;  %v476_v4 = vadd.f32 %v5367_v22, %v4944_v49  ;;  %v929_v49 = vadd.f32 %v5385_v42, %v4970_v60  ;;  %v4234_v60 = vld [vmem:[%s7726_s29 + $0x388] sm:$0xff] }
 0x202   :  { %4289 = vmatmul.msk.f32.gmra.mxu1 %vm122_vm1, %v4231_v57  ;;  %7810 = vst [vmem:[#allocation85_spill] sm:$0xff] %v5743_v16  ;;  %v5755_v1 = vperm.slane %v1650_v27, 1 }
 0x203   :  { %v926_v18 = vadd.f32 %v5383_v26, %v476_v4  ;;  %v5776_v26 = vperm.slane %v1650_v27, 0  ;;  %v1267_v4 = vadd.f32 %v5582_v28, %v929_v49 }
 0x206   :  { %v5734_v63 = vpop.f32.mrf.mxu0 }
 0x207   :  { %7807 = vst [vmem:[#allocation82_spill] sm:$0xff] %v5734_v63  ;;  %v5736_v51 = vpop.f32.mrf.mxu1  ;;  %v927_v63 = vadd.f32 %v5369_v44, %v4956_v54  ;;  %v5764_v54 = vpop.f32.mrf.mxu2 }
 0x208   :  { %7808 = vst [vmem:[#allocation83_spill] sm:$0xff] %v5736_v51  ;;  %v5770_v44 = vpop.f32.mrf.mxu3 }
 0x209   :  { %4264 = vmatmul.msk.f32.gmra.mxu0 %vm122_vm1, %v4231_v57  ;;  %v1265_v51 = vadd.f32 %v5567_v29, %v927_v63  ;;  %v4233_v57 = vld [vmem:[%s7726_s29 + $0x380] sm:$0xff] }
 0x20a   :  { %4290 = vmatmul.msk.f32.gmra.mxu1 %vm122_vm1, %v4232_v13 }
 0x20e   :  { %v5753_v10 = vpop.f32.mrf.mxu0 }
 0x20f   :  { %v1530_v16 = vpop.f32.mrf.mxu1  ;;  %v5802_v27 = vpop.f32.mrf.mxu2 }
 0x210   :  { %v1603_v5 = vadd.f32 %v1530_v16, %v1265_v51  ;;  %v1264_v51 = vadd.f32 %v5565_v30, %v926_v18  ;;  %v479_v16 = vadd.f32 %v4991_v6, %v4958_v55  ;;  %v4338_v55 = vld [vmem:[%s7705_s3 + $0x108] sm:$0xff] }
 0x211   :  { %4265 = vmatmul.msk.f32.gmra.mxu0 %vm122_vm1, %v4232_v13 }
 0x212   :  { %v5767_v29 = vadd.f32 %v5755_v1, %v1603_v5  ;;  %4291 = vmatmul.msk.f32.gmra.mxu1 %vm122_vm1, %v4233_v57  ;;  %v928_v18 = vadd.f32 %v5399_v52, %v479_v16  ;;  %2040 = vmatpush.msra.mxu0 %v4338_v55  ;;  %v931_v52 = vadd.f32 %v5401_v9, %v4984_v2  ;;  %v4336_v9 = vld [vmem:[%s7705_s3 + $0xf8] sm:$0xff] }
 0x214   :  { %v1705_v22 = vmax.f32 %v5767_v29, 0.0 }
 0x216   :  { %4299 = vmatmul.msk.f32.vlgmr.msra.gmra.mxu3 %vm1770_vm2, %v1705_v22  ;;  %v1441_v5 = vpop.f32.mrf.mxu0 }
 0x217   :  { %v1602_v63 = vadd.f32 %v1441_v5, %v1264_v51  ;;  %v1533_v13 = vpop.f32.mrf.mxu1  ;;  %v1266_v51 = vadd.f32 %v5579_v12, %v928_v18  ;;  %v1269_v5 = vadd.f32 %v5595_v45, %v931_v52  ;;  %v482_v12 = vadd.f32 %v5044_v25, %v4972_v61  ;;  %v4334_v25 = vld [vmem:[%s7705_s3 + $0xe8] sm:$0xff] }
 0x218   :  { %v1605_v42 = vadd.f32 %v1533_v13, %v1267_v4  ;;  %v5809_v4 = vpop.f32.mrf.mxu3  ;;  %v4235_v13 = vld [vmem:[%s7726_s29 + $0x390] sm:$0xff] }
 0x219   :  { %v5789_v30 = vadd.f32 %v5776_v26, %v1602_v63  ;;  %4266 = vmatmul.msk.f32.gmra.mxu0 %vm122_vm1, %v4233_v57  ;;  %v4337_v57 = vld [vmem:[%s7705_s3 + $0x100] sm:$0xff]  ;;  %v930_v18 = vadd.f32 %v5415_v39, %v482_v12  ;;  %v933_v39 = vadd.f32 %v5417_v34, %v5017_v14  ;;  %v4332_v34 = vld [vmem:[%s7705_s3 + $0xd8] sm:$0xff] }
 0x21a   :  { %v5793_v28 = vadd.f32 %v5755_v1, %v1605_v42  ;;  %4292 = vmatmul.msk.f32.gmra.mxu1 %vm122_vm1, %v4234_v60  ;;  %2041 = vmatpush.msra.mxu0 %v4337_v57  ;;  %v4335_v42 = vld [vmem:[%s7705_s3 + $0xf0] sm:$0xff] }
 0x21b   :  { %v1704_v6 = vmax.f32 %v5789_v30, 0.0 }
 0x21c   :  { %v1707_v49 = vmax.f32 %v5793_v28, 0.0  ;;  %2042 = vmatpush.msra.mxu0 %v4336_v9 }
 0x21d   :  { %1859 = vmatmul.f32.vlgmr.msra.gmra.mxu2 %v1704_v6 }
 0x21e   :  { %4300 = vmatmul.msk.f32.gmra.mxu3 %vm1770_vm2, %v1707_v49  ;;  %v1444_v2 = vpop.f32.mrf.mxu0  ;;  %2043 = vmatpush.msra.mxu0 %v4335_v42 }
 0x21f   :  { %v1604_v16 = vadd.f32 %v1444_v2, %v1266_v51  ;;  %v1536_v63 = vpop.f32.mrf.mxu1  ;;  %v1268_v51 = vadd.f32 %v5593_v36, %v930_v18  ;;  %v5851_v2 = vpop.f32.mrf.mxu2  ;;  %v485_v36 = vadd.f32 %v5081_v38, %v4986_v3  ;;  %v4330_v38 = vld [vmem:[%s7705_s3 + $0xc8] sm:$0xff] }
 0x220   :  { %v1607_v45 = vadd.f32 %v1536_v63, %v1269_v5  ;;  %2044 = vmatpush.msra.mxu0 %v4334_v25  ;;  %v1271_v5 = vadd.f32 %v5610_v37, %v933_v39  ;;  %v5861_v9 = vpop.f32.mrf.mxu3  ;;  %v4236_v37 = vld [vmem:[%s7726_s29 + $0x398] sm:$0xff] }
 0x221   :  { %v5830_v55 = vadd.f32 %v5776_v26, %v1604_v16  ;;  %4267 = vmatmul.msk.f32.gmra.mxu0 %vm122_vm1, %v4234_v60  ;;  %v4333_v60 = vld [vmem:[%s7705_s3 + $0xe0] sm:$0xff]  ;;  %v932_v42 = vadd.f32 %v5440_v35, %v485_v36  ;;  %v935_v35 = vadd.f32 %v5445_v19, %v5062_v31  ;;  %v4328_v19 = vld [vmem:[%s7705_s3 + $0xb8] sm:$0xff] }
 0x222   :  { %v5834_v61 = vadd.f32 %v5755_v1, %v1607_v45  ;;  %4293 = vmatmul.msk.f32.gmra.mxu1 %vm122_vm1, %v4235_v13  ;;  %2045 = vmatpush.msra.mxu0 %v4333_v60  ;;  %v4331_v45 = vld [vmem:[%s7705_s3 + $0xd0] sm:$0xff]  ;;  %v4329_v60 = vld [vmem:[%s7705_s3 + $0xc0] sm:$0xff] }
 0x223   :  { %v1706_v52 = vmax.f32 %v5830_v55, 0.0  ;;  %v4237_v36 = vld [vmem:[%s7726_s29 + $0x3a0] sm:$0xff] }
 0x224   :  { %v1709_v57 = vmax.f32 %v5834_v61, 0.0  ;;  %2046 = vmatpush.msra.mxu0 %v4332_v34 }
 0x225   :  { %1862 = vmatmul.f32.gmra.mxu2 %v1706_v52 }
 0x226   :  { %4301 = vmatmul.msk.f32.gmra.mxu3 %vm1770_vm2, %v1709_v57  ;;  %v1447_v14 = vpop.f32.mrf.mxu0  ;;  %2047 = vmatpush.msra.mxu0 %v4331_v45 }
 0x227   :  { %v1606_v12 = vadd.f32 %v1447_v14, %v1268_v51  ;;  %v1539_v16 = vpop.f32.mrf.mxu1  ;;  %v1270_v51 = vadd.f32 %v5606_v50, %v932_v42  ;;  %v488_v14 = vadd.f32 %v5098_v46, %v5019_v15 }
 0x228   :  { %v1609_v63 = vadd.f32 %v1539_v16, %v1271_v5  ;;  %2048 = vmatpush.msra.mxu0 %v4330_v38  ;;  %v1273_v5 = vadd.f32 %v5634_v43, %v935_v35  ;;  %v5906_v43 = vpop.f32.mrf.mxu2  ;;  %v4327_v16 = vld [vmem:[%s7705_s3 + $0xb0] sm:$0xff]  ;;  %v5915_v46 = vpop.f32.mrf.mxu3  ;;  %v4326_v38 = vld [vmem:[%s7705_s3 + $0xa8] sm:$0xff]  ;;  %v937_v35 = vadd.f32 %v5470_v23, %v5084_v40  ;;  %v4324_v40 = vld [vmem:[%s7705_s3 + $0x98] sm:$0xff]  ;;  %v491_v23 = vadd.f32 %v5121_v62, %v5064_v32 }
 0x229   :  { %v5871_v18 = vadd.f32 %v5776_v26, %v1606_v12  ;;  %4268 = vmatmul.msk.f32.gmra.mxu0 %vm122_vm1, %v4235_v13  ;;  %v4340_v13 = vld [vmem:[%s7705_s3 + $0x118] sm:$0xff]  ;;  %v934_v15 = vadd.f32 %v5465_v59, %v488_v14  ;;  %v4323_v14 = vld [vmem:[%s7705_s3 + $0x90] sm:$0xff] }
 0x22a   :  { %v5875_v3 = vadd.f32 %v5755_v1, %v1609_v63  ;;  %4294 = vmatmul.msk.f32.gmra.mxu1 %vm122_vm1, %v4236_v37  ;;  %2049 = vmatpush.msra.mxu0 %v4329_v60  ;;  %v4339_v63 = vld [vmem:[%s7705_s3 + $0x110] sm:$0xff] }
 0x22b   :  { %v1708_v25 = vmax.f32 %v5871_v18, 0.0  ;;  %2143 = vmatpush.msrb.mxu1 %v4340_v13  ;;  %v1272_v60 = vadd.f32 %v5629_v21, %v934_v15 }
 0x22c   :  { %v1711_v39 = vmax.f32 %v5875_v3, 0.0  ;;  %2050 = vmatpush.msra.mxu0 %v4328_v19  ;;  %v4238_v19 = vld [vmem:[%s7726_s29 + $0x3a8] sm:$0xff] }
 0x22d   :  { %1865 = vmatmul.f32.gmra.mxu2 %v1708_v25  ;;  %2144 = vmatpush.msrb.mxu1 %v4339_v63 }
 0x22e   :  { %4302 = vmatmul.msk.f32.gmra.mxu3 %vm1770_vm2, %v1711_v39  ;;  %v1450_v31 = vpop.f32.mrf.mxu0  ;;  %2051 = vmatpush.msra.mxu0 %v4327_v16 }
 0x22f   :  { %v1608_v50 = vadd.f32 %v1450_v31, %v1270_v51  ;;  %v1542_v34 = vpop.f32.mrf.mxu1  ;;  %v1275_v51 = vadd.f32 %v5664_v58, %v937_v35  ;;  %v494_v35 = vadd.f32 %v5139_v7, %v5086_v41  ;;  %v941_v7 = vadd.f32 %v5505_v24, %v5114_v56  ;;  %v7811_v56 = vld [vmem:[#allocation7_spill] sm:$0xff] }
 0x230   :  { %v1611_v12 = vadd.f32 %v1542_v34, %v1273_v5  ;;  %2052 = vmatpush.msra.mxu0 %v4326_v38  ;;  %v5958_v32 = vpop.f32.mrf.mxu2  ;;  %v497_v24 = vadd.f32 %v7811_v56, %v5102_v48 }
 0x231   :  { %v5918_v45 = vadd.f32 %v5776_v26, %v1608_v50  ;;  %4269 = vmatmul.msk.f32.gmra.mxu0 %vm122_vm1, %v4236_v37  ;;  %v4325_v37 = vld [vmem:[%s7705_s3 + $0xa0] sm:$0xff]  ;;  %v936_v50 = vadd.f32 %v5487_v33, %v491_v23  ;;  %v939_v33 = vadd.f32 %v5489_v17, %v5100_v47  ;;  %v4239_v47 = vld [vmem:[%s7726_s29 + $0x3b0] sm:$0xff] }
 0x232   :  { %v5922_v42 = vadd.f32 %v5755_v1, %v1611_v12  ;;  %4295 = vmatmul.msk.f32.gmra.mxu1 %vm122_vm1, %v4237_v36  ;;  %2053 = vmatpush.msra.mxu0 %v4325_v37  ;;  %v5964_v12 = vpop.f32.mrf.mxu3 }
 0x233   :  { %v1710_v59 = vmax.f32 %v5918_v45, 0.0  ;;  %v1274_v15 = vadd.f32 %v5658_v53, %v936_v50  ;;  %v938_v53 = vadd.f32 %v5503_v8, %v494_v35  ;;  %v7812_v50 = vld [vmem:[#allocation51_spill] sm:$0xff] }
 0x234   :  { %v1713_v13 = vmax.f32 %v5922_v42, 0.0  ;;  %2054 = vmatpush.msra.mxu0 %v4324_v40 }
 0x235   :  { %1868 = vmatmul.f32.gmra.mxu2 %v1710_v59  ;;  %v1276_v8 = vadd.f32 %v5690_v20, %v938_v53  ;;  %v4240_v20 = vld [vmem:[%s7726_s29 + $0x3b8] sm:$0xff] }
 0x236   :  { %4303 = vmatmul.msk.f32.gmra.mxu3 %vm1770_vm2, %v1713_v13  ;;  %v1453_v5 = vpop.f32.mrf.mxu0  ;;  %2055 = vmatpush.msra.mxu0 %v4323_v14  ;;  %v7816_v53 = vld [vmem:[#allocation85_spill] sm:$0xff] }
 0x237   :  { %v1610_v31 = vadd.f32 %v1453_v5, %v1272_v60  ;;  %v1545_v21 = vpop.f32.mrf.mxu1 }
 0x238   :  { %v1613_v58 = vadd.f32 %v1545_v21, %v1275_v51  ;;  %v5994_v5 = vpop.f32.mrf.mxu2 }
 0x239   :  { %v5955_v34 = vadd.f32 %v5776_v26, %v1610_v31  ;;  %4270 = vmatmul.msk.f32.gmra.mxu0 %vm122_vm1, %v4237_v36  ;;  %v1277_v36 = vadd.f32 %v5698_v11, %v939_v33  ;;  %v1279_v31 = vadd.f32 %v5725_v0, %v941_v7  ;;  %v940_v33 = vadd.f32 %v7812_v50, %v497_v24  ;;  %v7819_v50 = vld [vmem:[#allocation53_spill] sm:$0xff] }
 0x23a   :  { %v5961_v62 = vadd.f32 %v5755_v1, %v1613_v58  ;;  %4296 = vmatmul.msk.f32.gmra.mxu1 %vm122_vm1, %v4238_v19  ;;  %v5998_v23 = vpop.f32.mrf.mxu3 }
 0x23b   :  { %v1712_v16 = vmax.f32 %v5955_v34, 0.0 }
 0x23c   :  { %v1715_v63 = vmax.f32 %v5961_v62, 0.0 }
 0x23d   :  { %1871 = vmatmul.f32.gmra.mxu2 %v1712_v16 }
 0x23e   :  { %4304 = vmatmul.msk.f32.gmra.mxu3 %vm1770_vm2, %v1715_v63  ;;  %v1456_v38 = vpop.f32.mrf.mxu0 }
 0x23f   :  { %v1612_v37 = vadd.f32 %v1456_v38, %v1274_v15  ;;  %v1548_v60 = vpop.f32.mrf.mxu1  ;;  %v7814_v38 = vld [vmem:[#allocation52_spill] sm:$0xff] }
 0x240   :  { %v1615_v17 = vadd.f32 %v1548_v60, %v1277_v36  ;;  %v7813_v36 = vld [vmem:[#allocation3_spill] sm:$0xff] }
 0x241   :  { %v5984_v51 = vadd.f32 %v5776_v26, %v1612_v37  ;;  %4271 = vmatmul.msk.f32.gmra.mxu0 %vm122_vm1, %v4238_v19  ;;  %v943_v35 = vadd.f32 %v7814_v38, %v7813_v36  ;;  %v7815_v60 = vld [vmem:[#allocation79_spill] sm:$0xff] }
 0x242   :  { %v5988_v11 = vadd.f32 %v5755_v1, %v1615_v17  ;;  %4297 = vmatmul.msk.f32.gmra.mxu1 %vm122_vm1, %v4239_v47  ;;  %v1278_v17 = vadd.f32 %v7815_v60, %v940_v33  ;;  %v6035_v24 = vpop.f32.mrf.mxu3  ;;  %v7820_v60 = vld [vmem:[#allocation5_spill] sm:$0xff] }
 0x243   :  { %v1714_v41 = vmax.f32 %v5984_v51, 0.0  ;;  %v1281_v7 = vadd.f32 %v7816_v53, %v943_v35 }
 0x244   :  { %v1717_v40 = vmax.f32 %v5988_v11, 0.0 }
 0x245   :  { %1874 = vmatmul.f32.gmra.mxu2 %v1714_v41 }
 0x246   :  { %4305 = vmatmul.msk.f32.gmra.mxu3 %vm1770_vm2, %v1717_v40  ;;  %v1459_v21 = vpop.f32.mrf.mxu0 }
 0x247   :  { %v1614_v19 = vadd.f32 %v1459_v21, %v1276_v8  ;;  %v1551_v58 = vpop.f32.mrf.mxu1  ;;  %v7818_v21 = vld [vmem:[#allocation10_spill] sm:$0xff] }
 0x248   :  { %v1617_v14 = vadd.f32 %v1551_v58, %v1279_v31  ;;  %v7817_v31 = vld [vmem:[#allocation2_spill] sm:$0xff] }
 0x249   :  { %v6013_v15 = vadd.f32 %v5776_v26, %v1614_v19  ;;  %4272 = vmatmul.msk.f32.gmra.mxu0 %vm122_vm1, %v4239_v47  ;;  %v6028_v47 = vpop.f32.mrf.mxu2  ;;  %v500_v56 = vadd.f32 %v7818_v21, %v7817_v31  ;;  %v7824_v21 = vld [vmem:[#allocation15_spill] sm:$0xff] }
 0x24a   :  { %v6017_v0 = vadd.f32 %v5755_v1, %v1617_v14  ;;  %4298 = vmatmul.msk.f32.gmra.mxu1 %vm122_vm1, %v4240_v20 }
 0x24b   :  { %v1716_v48 = vmax.f32 %v6013_v15, 0.0  ;;  %v942_v33 = vadd.f32 %v7819_v50, %v500_v56 }
 0x24c   :  { %v1719_v37 = vmax.f32 %v6017_v0, 0.0 }
 0x24d   :  { %1877 = vmatmul.f32.gmra.mxu2 %v1716_v48 }
 0x24e   :  { %4306 = vmatmul.msk.f32.gmra.mxu3 %vm1770_vm2, %v1719_v37  ;;  %v1462_v8 = vpop.f32.mrf.mxu0 }
 0x24f   :  { %v1616_v19 = vadd.f32 %v1462_v8, %v1278_v17  ;;  %v1554_v58 = vpop.f32.mrf.mxu1  ;;  %v7821_v17 = vld [vmem:[#allocation54_spill] sm:$0xff]  ;;  %v7822_v8 = vld [vmem:[#allocation84_spill] sm:$0xff] }
 0x250   :  { %v1619_v14 = vadd.f32 %v1554_v58, %v1281_v7  ;;  %v945_v53 = vadd.f32 %v7821_v17, %v7820_v60  ;;  %v1280_v31 = vadd.f32 %v7822_v8, %v942_v33  ;;  %v7825_v60 = vld [vmem:[#allocation55_spill] sm:$0xff]  ;;  %v6064_v17 = vpop.f32.mrf.mxu3 }
 0x251   :  { %v6039_v36 = vadd.f32 %v5776_v26, %v1616_v19  ;;  %4273 = vmatmul.msk.f32.gmra.mxu0 %vm122_vm1, %v4240_v20 }
 0x252   :  { %v6043_v38 = vadd.f32 %v5755_v1, %v1619_v14  ;;  %4341 = vmatmul.msk.f32.vlgmr.msrb.gmra.mxu1 %vm1770_vm2, %v1705_v22  ;;  %v1283_v20 = vadd.f32 %v5770_v44, %v945_v53  ;;  %v7823_v22 = vld [vmem:[#allocation4_spill] sm:$0xff]  ;;  %v6061_v14 = vpop.f32.mrf.mxu2 }
 0x253   :  { %v1718_v35 = vmax.f32 %v6039_v36, 0.0  ;;  %v503_v56 = vadd.f32 %v7824_v21, %v7823_v22 }
 0x254   :  { %v1721_v7 = vmax.f32 %v6043_v38, 0.0 }
 0x255   :  { %1880 = vmatmul.f32.gmra.mxu2 %v1718_v35  ;;  %v944_v33 = vadd.f32 %v7825_v60, %v503_v56  ;;  %v7830_v60 = vld [vmem:[#allocation57_spill] sm:$0xff] }
 0x256   :  { %4307 = vmatmul.msk.f32.gmra.mxu3 %vm1770_vm2, %v1721_v7  ;;  %v1465_v29 = vpop.f32.mrf.mxu0 }
 0x257   :  { %v1618_v19 = vadd.f32 %v1465_v29, %v1280_v31  ;;  %v1557_v58 = vpop.f32.mrf.mxu1  ;;  %v7826_v31 = vld [vmem:[#allocation8_spill] sm:$0xff]  ;;  %v1282_v21 = vadd.f32 %v5764_v54, %v944_v33 }
 0x258   :  { %v1621_v50 = vadd.f32 %v1557_v58, %v1283_v20  ;;  %v7827_v20 = vld [vmem:[#allocation56_spill] sm:$0xff] }
 0x259   :  { %v6067_v8 = vadd.f32 %v5776_v26, %v1618_v19  ;;  %2056 = vmatmul.f32.vlgmr.msra.gmra.mxu0 %v1704_v6  ;;  %v947_v29 = vadd.f32 %v7827_v20, %v7826_v31  ;;  %v7828_v6 = vld [vmem:[#allocation6_spill] sm:$0xff]  ;;  %v6104_v20 = vpop.f32.mrf.mxu3 }
 0x25a   :  { %v6072_v44 = vadd.f32 %v5755_v1, %v1621_v50  ;;  %4342 = vmatmul.msk.f32.gmra.mxu1 %vm1770_vm2, %v1707_v49  ;;  %v7829_v49 = vld [vmem:[#allocation18_spill] sm:$0xff] }
 0x25b   :  { %v1720_v53 = vmax.f32 %v6067_v8, 0.0  ;;  %v1285_v30 = vadd.f32 %v5809_v4, %v947_v29  ;;  %v506_v56 = vadd.f32 %v7829_v49, %v7828_v6  ;;  %v6096_v4 = vpop.f32.mrf.mxu2  ;;  %v7834_v49 = vld [vmem:[#allocation21_spill] sm:$0xff] }
 0x25c   :  { %v1723_v22 = vmax.f32 %v6072_v44, 0.0 }
 0x25d   :  { %1883 = vmatmul.f32.gmra.mxu2 %v1720_v53  ;;  %v946_v31 = vadd.f32 %v7830_v60, %v506_v56  ;;  %v7835_v60 = vld [vmem:[#allocation59_spill] sm:$0xff] }
 0x25e   :  { %4308 = vmatmul.msk.f32.gmra.mxu3 %vm1770_vm2, %v1723_v22  ;;  %v1468_v28 = vpop.f32.mrf.mxu0 }
 0x25f   :  { %v1620_v19 = vadd.f32 %v1468_v28, %v1282_v21  ;;  %v1560_v58 = vpop.f32.mrf.mxu1  ;;  %v7831_v21 = vld [vmem:[#allocation11_spill] sm:$0xff]  ;;  %v1284_v55 = vadd.f32 %v5802_v27, %v946_v31 }
 0x260   :  { %v1623_v50 = vadd.f32 %v1560_v58, %v1285_v30  ;;  %v7832_v30 = vld [vmem:[#allocation58_spill] sm:$0xff] }
 0x261   :  { %v6092_v54 = vadd.f32 %v5776_v26, %v1620_v19  ;;  %2059 = vmatmul.f32.gmra.mxu0 %v1706_v52  ;;  %v949_v28 = vadd.f32 %v7832_v30, %v7831_v21  ;;  %v7836_v30 = vld [vmem:[#allocation13_spill] sm:$0xff]  ;;  %v6138_v18 = vpop.f32.mrf.mxu3 }
 0x262   :  { %v6099_v33 = vadd.f32 %v5755_v1, %v1623_v50  ;;  %4343 = vmatmul.msk.f32.gmra.mxu1 %vm1770_vm2, %v1709_v57  ;;  %v7833_v57 = vld [vmem:[#allocation9_spill] sm:$0xff] }
 0x263   :  { %v1722_v29 = vmax.f32 %v6092_v54, 0.0  ;;  %v1287_v52 = vadd.f32 %v5861_v9, %v949_v28  ;;  %v509_v56 = vadd.f32 %v7834_v49, %v7833_v57  ;;  %v7837_v28 = vld [vmem:[#allocation60_spill] sm:$0xff] }
 0x264   :  { %v1725_v6 = vmax.f32 %v6099_v33, 0.0  ;;  %v7839_v49 = vld [vmem:[#allocation24_spill] sm:$0xff] }
 0x265   :  { %1886 = vmatmul.f32.gmra.mxu2 %v1722_v29  ;;  %v948_v21 = vadd.f32 %v7835_v60, %v509_v56  ;;  %v7840_v60 = vld [vmem:[#allocation61_spill] sm:$0xff] }
 0x266   :  { %4309 = vmatmul.msk.f32.gmra.mxu3 %vm1770_vm2, %v1725_v6  ;;  %v1471_v61 = vpop.f32.mrf.mxu0 }
 0x267   :  { %v1622_v19 = vadd.f32 %v1471_v61, %v1284_v55  ;;  %v1563_v58 = vpop.f32.mrf.mxu1  ;;  %v951_v55 = vadd.f32 %v7837_v28, %v7836_v30  ;;  %v1286_v57 = vadd.f32 %v5851_v2, %v948_v21  ;;  %v7841_v28 = vld [vmem:[#allocation16_spill] sm:$0xff] }
 0x268   :  { %v1625_v50 = vadd.f32 %v1563_v58, %v1287_v52  ;;  %v6134_v52 = vpop.f32.mrf.mxu2 }
 0x269   :  { %v6121_v27 = vadd.f32 %v5776_v26, %v1622_v19  ;;  %2062 = vmatmul.f32.gmra.mxu0 %v1708_v25  ;;  %v1289_v3 = vadd.f32 %v5915_v46, %v951_v55  ;;  %v7842_v55 = vld [vmem:[#allocation62_spill] sm:$0xff] }
 0x26a   :  { %v6126_v9 = vadd.f32 %v5755_v1, %v1625_v50  ;;  %4344 = vmatmul.msk.f32.gmra.mxu1 %vm1770_vm2, %v1711_v39  ;;  %v7838_v39 = vld [vmem:[#allocation12_spill] sm:$0xff] }
 0x26b   :  { %v1724_v31 = vmax.f32 %v6121_v27, 0.0  ;;  %v512_v56 = vadd.f32 %v7839_v49, %v7838_v39  ;;  %v7844_v39 = vld [vmem:[#allocation29_spill] sm:$0xff] }
 0x26c   :  { %v1727_v61 = vmax.f32 %v6126_v9, 0.0 }
 0x26d   :  { %1889 = vmatmul.f32.gmra.mxu2 %v1724_v31  ;;  %v950_v2 = vadd.f32 %v7840_v60, %v512_v56  ;;  %v6175_v56 = vpop.f32.mrf.mxu3 }
 0x26e   :  { %4310 = vmatmul.msk.f32.gmra.mxu3 %vm1770_vm2, %v1727_v61  ;;  %v1474_v25 = vpop.f32.mrf.mxu0 }
 0x26f   :  { %v1624_v19 = vadd.f32 %v1474_v25, %v1286_v57  ;;  %v1566_v58 = vpop.f32.mrf.mxu1  ;;  %v953_v57 = vadd.f32 %v7842_v55, %v7841_v28  ;;  %v1288_v25 = vadd.f32 %v5906_v43, %v950_v2  ;;  %v7846_v55 = vld [vmem:[#allocation19_spill] sm:$0xff] }
 0x270   :  { %v1627_v50 = vadd.f32 %v1566_v58, %v1289_v3 }
 0x271   :  { %v6150_v21 = vadd.f32 %v5776_v26, %v1624_v19  ;;  %2065 = vmatmul.f32.gmra.mxu0 %v1710_v59  ;;  %v1291_v45 = vadd.f32 %v5964_v12, %v953_v57  ;;  %v6168_v59 = vpop.f32.mrf.mxu2  ;;  %v7847_v57 = vld [vmem:[#allocation64_spill] sm:$0xff] }
 0x272   :  { %v6155_v46 = vadd.f32 %v5755_v1, %v1627_v50  ;;  %4345 = vmatmul.msk.f32.gmra.mxu1 %vm1770_vm2, %v1713_v13  ;;  %v7843_v13 = vld [vmem:[#allocation14_spill] sm:$0xff]  ;;  %v7845_v50 = vld [vmem:[#allocation63_spill] sm:$0xff] }
 0x273   :  { %v1726_v30 = vmax.f32 %v6150_v21, 0.0  ;;  %v515_v49 = vadd.f32 %v7844_v39, %v7843_v13 }
 0x274   :  { %v1729_v3 = vmax.f32 %v6155_v46, 0.0 }
 0x275   :  { %1892 = vmatmul.f32.gmra.mxu2 %v1726_v30  ;;  %v952_v60 = vadd.f32 %v7845_v50, %v515_v49  ;;  %v6205_v50 = vpop.f32.mrf.mxu3 }
 0x276   :  { %4311 = vmatmul.msk.f32.gmra.mxu3 %vm1770_vm2, %v1729_v3  ;;  %v1477_v42 = vpop.f32.mrf.mxu0 }
 0x277   :  { %v1626_v19 = vadd.f32 %v1477_v42, %v1288_v25  ;;  %v1569_v58 = vpop.f32.mrf.mxu1  ;;  %v955_v25 = vadd.f32 %v7847_v57, %v7846_v55  ;;  %v1290_v42 = vadd.f32 %v5958_v32, %v952_v60  ;;  %v7851_v57 = vld [vmem:[#allocation22_spill] sm:$0xff] }
 0x278   :  { %v1629_v43 = vadd.f32 %v1569_v58, %v1291_v45 }
 0x279   :  { %v6179_v2 = vadd.f32 %v5776_v26, %v1626_v19  ;;  %2068 = vmatmul.f32.gmra.mxu0 %v1712_v16  ;;  %v1293_v34 = vadd.f32 %v5998_v23, %v955_v25  ;;  %v7848_v16 = vld [vmem:[#allocation17_spill] sm:$0xff]  ;;  %v6202_v19 = vpop.f32.mrf.mxu2  ;;  %v7852_v25 = vld [vmem:[#allocation66_spill] sm:$0xff] }
 0x27a   :  { %v6184_v12 = vadd.f32 %v5755_v1, %v1629_v43  ;;  %4346 = vmatmul.msk.f32.gmra.mxu1 %vm1770_vm2, %v1715_v63  ;;  %v7849_v63 = vld [vmem:[#allocation32_spill] sm:$0xff]  ;;  %v7850_v43 = vld [vmem:[#allocation65_spill] sm:$0xff] }
 0x27b   :  { %v1728_v28 = vmax.f32 %v6179_v2, 0.0  ;;  %v518_v13 = vadd.f32 %v7849_v63, %v7848_v16 }
 0x27c   :  { %v1731_v45 = vmax.f32 %v6184_v12, 0.0 }
 0x27d   :  { %1895 = vmatmul.f32.gmra.mxu2 %v1728_v28  ;;  %v954_v32 = vadd.f32 %v7850_v43, %v518_v13 }
 0x27e   :  { %4312 = vmatmul.msk.f32.gmra.mxu3 %vm1770_vm2, %v1731_v45  ;;  %v1480_v62 = vpop.f32.mrf.mxu0 }
 0x27f   :  { %v1628_v39 = vadd.f32 %v1480_v62, %v1290_v42  ;;  %v1572_v49 = vpop.f32.mrf.mxu1  ;;  %v957_v42 = vadd.f32 %v7852_v25, %v7851_v57  ;;  %v1292_v62 = vadd.f32 %v5994_v5, %v954_v32  ;;  %v6245_v32 = vpop.f32.mrf.mxu3  ;;  %v7856_v25 = vld [vmem:[#allocation25_spill] sm:$0xff] }
 0x280   :  { %v1631_v58 = vadd.f32 %v1572_v49, %v1293_v34  ;;  %v7855_v49 = vld [vmem:[#allocation67_spill] sm:$0xff] }
 0x281   :  { %v6208_v60 = vadd.f32 %v5776_v26, %v1628_v39  ;;  %2071 = vmatmul.f32.gmra.mxu0 %v1714_v41  ;;  %v1295_v51 = vadd.f32 %v6035_v24, %v957_v42  ;;  %v7853_v41 = vld [vmem:[#allocation20_spill] sm:$0xff]  ;;  %v6237_v24 = vpop.f32.mrf.mxu2 }
 0x282   :  { %v6213_v23 = vadd.f32 %v5755_v1, %v1631_v58  ;;  %4347 = vmatmul.msk.f32.gmra.mxu1 %vm1770_vm2, %v1717_v40  ;;  %v7854_v40 = vld [vmem:[#allocation35_spill] sm:$0xff]  ;;  %v7857_v42 = vld [vmem:[#allocation68_spill] sm:$0xff] }
 0x283   :  { %v1730_v55 = vmax.f32 %v6208_v60, 0.0  ;;  %v521_v16 = vadd.f32 %v7854_v40, %v7853_v41 }
 0x284   :  { %v1733_v34 = vmax.f32 %v6213_v23, 0.0 }
 0x285   :  { %1898 = vmatmul.f32.gmra.mxu2 %v1730_v55  ;;  %v956_v58 = vadd.f32 %v7855_v49, %v521_v16 }
 0x286   :  { %4313 = vmatmul.msk.f32.gmra.mxu3 %vm1770_vm2, %v1733_v34  ;;  %v1483_v11 = vpop.f32.mrf.mxu0 }
 0x287   :  { %v1630_v63 = vadd.f32 %v1483_v11, %v1292_v62  ;;  %v1575_v13 = vpop.f32.mrf.mxu1  ;;  %v959_v62 = vadd.f32 %v7857_v42, %v7856_v25  ;;  %v1294_v15 = vadd.f32 %v6028_v47, %v956_v58  ;;  %v7859_v11 = vld [vmem:[#allocation38_spill] sm:$0xff]  ;;  %v7861_v58 = vld [vmem:[#allocation27_spill] sm:$0xff]  ;;  %v6279_v36 = vpop.f32.mrf.mxu3 }
 0x288   :  { %v1633_v39 = vadd.f32 %v1575_v13, %v1295_v51  ;;  %v7860_v13 = vld [vmem:[#allocation69_spill] sm:$0xff]  ;;  %v7862_v25 = vld [vmem:[#allocation70_spill] sm:$0xff] }
 0x289   :  { %v6233_v5 = vadd.f32 %v5776_v26, %v1630_v63  ;;  %2074 = vmatmul.f32.gmra.mxu0 %v1716_v48  ;;  %v1297_v48 = vadd.f32 %v6064_v17, %v959_v62  ;;  %v961_v42 = vadd.f32 %v7862_v25, %v7861_v58  ;;  %v6275_v62 = vpop.f32.mrf.mxu2  ;;  %v7867_v58 = vld [vmem:[#allocation72_spill] sm:$0xff] }
 0x28a   :  { %v6240_v43 = vadd.f32 %v5755_v1, %v1633_v39  ;;  %4348 = vmatmul.msk.f32.gmra.mxu1 %vm1770_vm2, %v1719_v37  ;;  %v7858_v37 = vld [vmem:[#allocation23_spill] sm:$0xff] }
 0x28b   :  { %v1732_v57 = vmax.f32 %v6233_v5, 0.0  ;;  %v524_v41 = vadd.f32 %v7859_v11, %v7858_v37  ;;  %v1299_v38 = vadd.f32 %v6104_v20, %v961_v42 }
 0x28c   :  { %v1735_v51 = vmax.f32 %v6240_v43, 0.0 }
 0x28d   :  { %1901 = vmatmul.f32.gmra.mxu2 %v1732_v57  ;;  %v958_v39 = vadd.f32 %v7860_v13, %v524_v41 }
 0x28e   :  { %4314 = vmatmul.msk.f32.gmra.mxu3 %vm1770_vm2, %v1735_v51  ;;  %v1486_v0 = vpop.f32.mrf.mxu0 }
 0x28f   :  { %v1632_v40 = vadd.f32 %v1486_v0, %v1294_v15  ;;  %v1578_v16 = vpop.f32.mrf.mxu1  ;;  %v7864_v0 = vld [vmem:[#allocation43_spill] sm:$0xff] }
 0x290   :  { %v1635_v63 = vadd.f32 %v1578_v16, %v1297_v48  ;;  %v1296_v48 = vadd.f32 %v6061_v14, %v958_v39  ;;  %v7865_v16 = vld [vmem:[#allocation71_spill] sm:$0xff]  ;;  %v7866_v39 = vld [vmem:[#allocation30_spill] sm:$0xff] }
 0x291   :  { %v6262_v47 = vadd.f32 %v5776_v26, %v1632_v40  ;;  %2077 = vmatmul.f32.gmra.mxu0 %v1718_v35  ;;  %v963_v25 = vadd.f32 %v7867_v58, %v7866_v39  ;;  %v7872_v39 = vld [vmem:[#allocation74_spill] sm:$0xff] }
 0x292   :  { %v6267_v17 = vadd.f32 %v5755_v1, %v1635_v63  ;;  %4349 = vmatmul.msk.f32.gmra.mxu1 %vm1770_vm2, %v1721_v7  ;;  %v7863_v7 = vld [vmem:[#allocation26_spill] sm:$0xff] }
 0x293   :  { %v1734_v49 = vmax.f32 %v6262_v47, 0.0  ;;  %v527_v37 = vadd.f32 %v7864_v0, %v7863_v7  ;;  %v1301_v8 = vadd.f32 %v6138_v18, %v963_v25  ;;  %v6316_v7 = vpop.f32.mrf.mxu3 }
 0x294   :  { %v1737_v15 = vmax.f32 %v6267_v17, 0.0 }
 0x295   :  { %1904 = vmatmul.f32.gmra.mxu2 %v1734_v49  ;;  %v960_v14 = vadd.f32 %v7865_v16, %v527_v37 }
 0x296   :  { %4315 = vmatmul.msk.f32.gmra.mxu3 %vm1770_vm2, %v1737_v15  ;;  %v1489_v35 = vpop.f32.mrf.mxu0 }
 0x297   :  { %v1634_v11 = vadd.f32 %v1489_v35, %v1296_v48  ;;  %v1581_v41 = vpop.f32.mrf.mxu1  ;;  %v1298_v48 = vadd.f32 %v6096_v4, %v960_v14  ;;  %v7871_v14 = vld [vmem:[#allocation33_spill] sm:$0xff] }
 0x298   :  { %v1637_v40 = vadd.f32 %v1581_v41, %v1299_v38  ;;  %v7869_v38 = vld [vmem:[#allocation45_spill] sm:$0xff]  ;;  %v965_v58 = vadd.f32 %v7872_v39, %v7871_v14  ;;  %v7879_v14 = vld [vmem:[#allocation76_spill] sm:$0xff] }
 0x299   :  { %v6291_v63 = vadd.f32 %v5776_v26, %v1634_v11  ;;  %2080 = vmatmul.f32.gmra.mxu0 %v1720_v53  ;;  %v6309_v53 = vpop.f32.mrf.mxu2  ;;  %v7870_v11 = vld [vmem:[#allocation73_spill] sm:$0xff] }
 0x29a   :  { %v6296_v20 = vadd.f32 %v5755_v1, %v1637_v40  ;;  %4350 = vmatmul.msk.f32.gmra.mxu1 %vm1770_vm2, %v1723_v22  ;;  %v7868_v22 = vld [vmem:[#allocation28_spill] sm:$0xff]  ;;  %v1303_v54 = vadd.f32 %v6175_v56, %v965_v58 }
 0x29b   :  { %v1736_v13 = vmax.f32 %v6291_v63, 0.0  ;;  %v530_v35 = vadd.f32 %v7869_v38, %v7868_v22  ;;  %v6345_v22 = vpop.f32.mrf.mxu3 }
 0x29c   :  { %v1739_v42 = vmax.f32 %v6296_v20, 0.0  ;;  %7876 = vst [vmem:[#allocation51_spill] sm:$0xff] %v6345_v22 }
 0x29d   :  { %1907 = vmatmul.f32.gmra.mxu2 %v1736_v13  ;;  %v962_v41 = vadd.f32 %v7870_v11, %v530_v35 }
 0x29e   :  { %4316 = vmatmul.msk.f32.gmra.mxu3 %vm1770_vm2, %v1739_v42  ;;  %v1492_v44 = vpop.f32.mrf.mxu0 }
 0x29f   :  { %v1636_v0 = vadd.f32 %v1492_v44, %v1298_v48  ;;  %v1584_v37 = vpop.f32.mrf.mxu1  ;;  %v1300_v48 = vadd.f32 %v6134_v52, %v962_v41  ;;  %v7878_v41 = vld [vmem:[#allocation36_spill] sm:$0xff] }
 0x2a0   :  { %v1639_v4 = vadd.f32 %v1584_v37, %v1301_v8  ;;  %v7875_v8 = vld [vmem:[#allocation46_spill] sm:$0xff]  ;;  %v967_v39 = vadd.f32 %v7879_v14, %v7878_v41 }
 0x2a1   :  { %v6320_v40 = vadd.f32 %v5776_v26, %v1636_v0  ;;  %2083 = vmatmul.f32.gmra.mxu0 %v1722_v29  ;;  %v6338_v29 = vpop.f32.mrf.mxu2  ;;  %v7877_v0 = vld [vmem:[#allocation75_spill] sm:$0xff]  ;;  %v7886_v41 = vld [vmem:[#allocation78_spill] sm:$0xff] }
 0x2a2   :  { %v6325_v18 = vadd.f32 %v5755_v1, %v1639_v4  ;;  %4351 = vmatmul.msk.f32.gmra.mxu1 %vm1770_vm2, %v1725_v6  ;;  %7873 = vst [vmem:[#allocation7_spill] sm:$0xff] %v6338_v29  ;;  %v7874_v6 = vld [vmem:[#allocation31_spill] sm:$0xff]  ;;  %v1305_v27 = vadd.f32 %v6205_v50, %v967_v39 }
 0x2a3   :  { %v1738_v16 = vmax.f32 %v6320_v40, 0.0  ;;  %v533_v44 = vadd.f32 %v7875_v8, %v7874_v6 }
 0x2a4   :  { %v1741_v25 = vmax.f32 %v6325_v18, 0.0 }
 0x2a5   :  { %1910 = vmatmul.f32.gmra.mxu2 %v1738_v16  ;;  %v964_v37 = vadd.f32 %v7877_v0, %v533_v44 }
 0x2a6   :  { %4317 = vmatmul.msk.f32.gmra.mxu3 %vm1770_vm2, %v1741_v25  ;;  %v1495_v33 = vpop.f32.mrf.mxu0 }
 0x2a7   :  { %v1638_v38 = vadd.f32 %v1495_v33, %v1300_v48  ;;  %v1587_v35 = vpop.f32.mrf.mxu1  ;;  %v1302_v48 = vadd.f32 %v6168_v59, %v964_v37  ;;  %v7885_v37 = vld [vmem:[#allocation39_spill] sm:$0xff] }
 0x2a8   :  { %v1641_v52 = vadd.f32 %v1587_v35, %v1303_v54  ;;  %v6375_v35 = vpop.f32.mrf.mxu3  ;;  %v969_v14 = vadd.f32 %v7886_v41, %v7885_v37  ;;  %v7893_v37 = vld [vmem:[#allocation81_spill] sm:$0xff] }
 0x2a9   :  { %v6349_v4 = vadd.f32 %v5776_v26, %v1638_v38  ;;  %2086 = vmatmul.f32.gmra.mxu0 %v1724_v31  ;;  %v7880_v31 = vld [vmem:[#allocation34_spill] sm:$0xff]  ;;  %v6372_v8 = vpop.f32.mrf.mxu2  ;;  %v7883_v38 = vld [vmem:[#allocation77_spill] sm:$0xff]  ;;  %7884 = vst [vmem:[#allocation52_spill] sm:$0xff] %v6375_v35 }
 0x2aa   :  { %v6354_v56 = vadd.f32 %v5755_v1, %v1641_v52  ;;  %4352 = vmatmul.msk.f32.gmra.mxu1 %vm1770_vm2, %v1727_v61  ;;  %v7881_v61 = vld [vmem:[#allocation47_spill] sm:$0xff]  ;;  %7882 = vst [vmem:[#allocation3_spill] sm:$0xff] %v6372_v8  ;;  %v1307_v21 = vadd.f32 %v6245_v32, %v969_v14 }
 0x2ab   :  { %v1740_v11 = vmax.f32 %v6349_v4, 0.0  ;;  %v536_v54 = vadd.f32 %v7881_v61, %v7880_v31 }
 0x2ac   :  { %v1743_v58 = vmax.f32 %v6354_v56, 0.0 }
 0x2ad   :  { %1913 = vmatmul.f32.gmra.mxu2 %v1740_v11  ;;  %v966_v59 = vadd.f32 %v7883_v38, %v536_v54  ;;  %v7889_v54 = vld [vmem:[#allocation80_spill] sm:$0xff] }
 0x2ae   :  { %4318 = vmatmul.msk.f32.gmra.mxu3 %vm1770_vm2, %v1743_v58  ;;  %v1498_v9 = vpop.f32.mrf.mxu0 }
 0x2af   :  { %v1640_v33 = vadd.f32 %v1498_v9, %v1302_v48  ;;  %v1590_v6 = vpop.f32.mrf.mxu1  ;;  %v1304_v48 = vadd.f32 %v6202_v19, %v966_v59  ;;  %v7892_v59 = vld [vmem:[#allocation41_spill] sm:$0xff] }
 0x2b0   :  { %v1643_v44 = vadd.f32 %v1590_v6, %v1305_v27  ;;  %v971_v41 = vadd.f32 %v7893_v37, %v7892_v59 }
 0x2b1   :  { %v6378_v52 = vadd.f32 %v5776_v26, %v1640_v33  ;;  %2089 = vmatmul.f32.gmra.mxu0 %v1726_v30  ;;  %v7887_v30 = vld [vmem:[#allocation37_spill] sm:$0xff]  ;;  %v6407_v32 = vpop.f32.mrf.mxu2 }
 0x2b2   :  { %v6383_v50 = vadd.f32 %v5755_v1, %v1643_v44  ;;  %4353 = vmatmul.msk.f32.gmra.mxu1 %vm1770_vm2, %v1729_v3  ;;  %v7888_v3 = vld [vmem:[#allocation48_spill] sm:$0xff]  ;;  %7890 = vst [vmem:[#allocation79_spill] sm:$0xff] %v6407_v32  ;;  %v6415_v44 = vpop.f32.mrf.mxu3 }
 0x2b3   :  { %v1742_v0 = vmax.f32 %v6378_v52, 0.0  ;;  %v539_v27 = vadd.f32 %v7888_v3, %v7887_v30  ;;  %7891 = vst [vmem:[#allocation85_spill] sm:$0xff] %v6415_v44 }
 0x2b4   :  { %v1745_v39 = vmax.f32 %v6383_v50, 0.0 }
 0x2b5   :  { %1916 = vmatmul.f32.gmra.mxu2 %v1742_v0  ;;  %v968_v33 = vadd.f32 %v7889_v54, %v539_v27  ;;  %v7896_v27 = vld [vmem:[#allocation82_spill] sm:$0xff]  ;;  %v7898_v54 = vld [vmem:[#allocation83_spill] sm:$0xff] }
 0x2b6   :  { %4319 = vmatmul.msk.f32.gmra.mxu3 %vm1770_vm2, %v1745_v39  ;;  %v1501_v46 = vpop.f32.mrf.mxu0 }
 0x2b7   :  { %v1642_v9 = vadd.f32 %v1501_v46, %v1304_v48  ;;  %v1593_v31 = vpop.f32.mrf.mxu1  ;;  %v1306_v2 = vadd.f32 %v6237_v24, %v968_v33  ;;  %v7895_v48 = vld [vmem:[#allocation49_spill] sm:$0xff] }
 0x2b8   :  { %v1645_v61 = vadd.f32 %v1593_v31, %v1307_v21 }
 0x2b9   :  { %v6403_v19 = vadd.f32 %v5776_v26, %v1642_v9  ;;  %2092 = vmatmul.f32.gmra.mxu0 %v1728_v28  ;;  %v1309_v28 = vadd.f32 %v6279_v36, %v971_v41  ;;  %v6445_v59 = vpop.f32.mrf.mxu2 }
 0x2ba   :  { %v6410_v6 = vadd.f32 %v5755_v1, %v1645_v61  ;;  %4354 = vmatmul.msk.f32.gmra.mxu1 %vm1770_vm2, %v1731_v45  ;;  %v7894_v45 = vld [vmem:[#allocation40_spill] sm:$0xff]  ;;  %v6449_v60 = vpop.f32.mrf.mxu3 }
 0x2bb   :  { %v1744_v38 = vmax.f32 %v6403_v19, 0.0  ;;  %v542_v21 = vadd.f32 %v7895_v48, %v7894_v45  ;;  %v7897_v61 = vld [vmem:[#allocation44_spill] sm:$0xff]  ;;  %7899 = vst [vmem:[#allocation2_spill] sm:$0xff] %v6449_v60 }
 0x2bc   :  { %v1747_v14 = vmax.f32 %v6410_v6, 0.0  ;;  %v973_v33 = vadd.f32 %v7898_v54, %v7897_v61 }
 0x2bd   :  { %1919 = vmatmul.f32.gmra.mxu2 %v1744_v38  ;;  %v970_v9 = vadd.f32 %v7896_v27, %v542_v21 }
 0x2be   :  { %4320 = vmatmul.msk.f32.gmra.mxu3 %vm1770_vm2, %v1747_v14  ;;  %v1504_v12 = vpop.f32.mrf.mxu0  ;;  %v1311_v23 = vadd.f32 %v6316_v7, %v973_v33 }
 0x2bf   :  { %v1644_v46 = vadd.f32 %v1504_v12, %v1306_v2  ;;  %v1596_v30 = vpop.f32.mrf.mxu1  ;;  %v1308_v41 = vadd.f32 %v6275_v62, %v970_v9  ;;  %v7901_v2 = vld [vmem:[#allocation50_spill] sm:$0xff] }
 0x2c0   :  { %v1647_v3 = vadd.f32 %v1596_v30, %v1309_v28 }
 0x2c1   :  { %v6432_v24 = vadd.f32 %v5776_v26, %v1644_v46  ;;  %2095 = vmatmul.f32.gmra.mxu0 %v1730_v55  ;;  %v6468_v27 = vpop.f32.mrf.mxu2 }
 0x2c2   :  { %v6437_v36 = vadd.f32 %v5755_v1, %v1647_v3  ;;  %4355 = vmatmul.msk.f32.gmra.mxu1 %vm1770_vm2, %v1733_v34  ;;  %v7900_v34 = vld [vmem:[#allocation42_spill] sm:$0xff]  ;;  %v6471_v9 = vpop.f32.mrf.mxu3 }
 0x2c3   :  { %v1746_v31 = vmax.f32 %v6432_v24, 0.0  ;;  %v545_v28 = vadd.f32 %v7901_v2, %v7900_v34 }
 0x2c4   :  { %v1749_v37 = vmax.f32 %v6437_v36, 0.0 }
 0x2c5   :  { %1922 = vmatmul.f32.gmra.mxu2 %v1746_v31  ;;  %v972_v62 = vadd.f32 %v5753_v10, %v545_v28 }
 0x2c6   :  { %4321 = vmatmul.msk.f32.gmra.mxu3 %vm1770_vm2, %v1749_v37  ;;  %v1507_v55 = vpop.f32.mrf.mxu0 }
 0x2c7   :  { %v1646_v12 = vadd.f32 %v1507_v55, %v1308_v41  ;;  %v1599_v45 = vpop.f32.mrf.mxu1  ;;  %v1310_v3 = vadd.f32 %v6309_v53, %v972_v62 }
 0x2c8   :  { %v1649_v48 = vadd.f32 %v1599_v45, %v1311_v23 }
 0x2c9   :  { %v1700_v21 = vadd.f32 %v5776_v26, %v1646_v12  ;;  %2098 = vmatmul.f32.gmra.mxu0 %v1732_v57  ;;  %v6485_v61 = vpop.f32.mrf.mxu2 }
 0x2ca   :  { %v1703_v7 = vadd.f32 %v5755_v1, %v1649_v48  ;;  %4356 = vmatmul.msk.f32.gmra.mxu1 %vm1770_vm2, %v1735_v51  ;;  %v6487_v54 = vpop.f32.mrf.mxu3 }
 0x2cb   :  { %v1748_v46 = vmax.f32 %v1700_v21, 0.0 }
 0x2cc   :  { %v1751_v30 = vmax.f32 %v1703_v7, 0.0 }
 0x2cd   :  { %1925 = vmatmul.f32.gmra.mxu2 %v1748_v46 }
 0x2ce   :  { %4322 = vmatmul.msk.f32.gmra.mxu3 %vm1770_vm2, %v1751_v30  ;;  %v1510_v10 = vpop.f32.mrf.mxu0 }
 0x2cf   :  { %v1648_v5 = vadd.f32 %v1510_v10, %v1310_v3  ;;  %v6473_v57 = vpop.f32.mrf.mxu1 }
 0x2d0   :  { %7902 = vst [vmem:[#allocation10_spill] sm:$0xff] %v6473_v57 }
 0x2d1   :  { %v1702_v1 = vadd.f32 %v5776_v26, %v1648_v5  ;;  %2101 = vmatmul.f32.gmra.mxu0 %v1734_v49  ;;  %v6500_v17 = vpop.f32.mrf.mxu2 }
 0x2d2   :  { %4357 = vmatmul.msk.f32.gmra.mxu1 %vm1770_vm2, %v1737_v15  ;;  %v6505_v49 = vpop.f32.mrf.mxu3 }
 0x2d3   :  { %v1750_v43 = vmax.f32 %v1702_v1, 0.0 }
 0x2d5   :  { %1928 = vmatmul.f32.gmra.mxu2 %v1750_v43 }
 0x2d6   :  { %v6481_v51 = vpop.f32.mrf.mxu0 }
 0x2d7   :  { %7903 = vst [vmem:[#allocation53_spill] sm:$0xff] %v6481_v51  ;;  %v6483_v53 = vpop.f32.mrf.mxu1 }
 0x2d8   :  { %7904 = vst [vmem:[#allocation5_spill] sm:$0xff] %v6483_v53 }
 0x2d9   :  { %2104 = vmatmul.f32.gmra.mxu0 %v1736_v13  ;;  %v6516_v20 = vpop.f32.mrf.mxu2 }
 0x2da   :  { %4358 = vmatmul.msk.f32.gmra.mxu1 %vm1770_vm2, %v1739_v42  ;;  %v6518_v13 = vpop.f32.mrf.mxu3 }
 0x2de   :  { %v6494_v26 = vpop.f32.mrf.mxu0 }
 0x2df   :  { %7905 = vst [vmem:[#allocation54_spill] sm:$0xff] %v6494_v26  ;;  %v6496_v47 = vpop.f32.mrf.mxu1 }
 0x2e0   :  { %7906 = vst [vmem:[#allocation84_spill] sm:$0xff] %v6496_v47 }
 0x2e1   :  { %2107 = vmatmul.f32.gmra.mxu0 %v1738_v16  ;;  %v6529_v18 = vpop.f32.mrf.mxu2 }
 0x2e2   :  { %4359 = vmatmul.msk.f32.gmra.mxu1 %vm1770_vm2, %v1741_v25  ;;  %v6533_v25 = vpop.f32.mrf.mxu3 }
 0x2e6   :  { %v6507_v15 = vpop.f32.mrf.mxu0 }
 0x2e7   :  { %7907 = vst [vmem:[#allocation4_spill] sm:$0xff] %v6507_v15  ;;  %v6509_v63 = vpop.f32.mrf.mxu1 }
 0x2e9   :  { %2110 = vmatmul.f32.gmra.mxu0 %v1740_v11 }
 0x2ea   :  { %4360 = vmatmul.msk.f32.gmra.mxu1 %vm1770_vm2, %v1743_v58  ;;  %v6546_v58 = vpop.f32.mrf.mxu2  ;;  %v6548_v52 = vpop.f32.mrf.mxu3 }
 0x2ee   :  { %v6520_v42 = vpop.f32.mrf.mxu0 }
 0x2ef   :  { %v6522_v40 = vpop.f32.mrf.mxu1 }
 0x2f1   :  { %2113 = vmatmul.f32.gmra.mxu0 %v1742_v0 }
 0x2f2   :  { %4361 = vmatmul.msk.f32.gmra.mxu1 %vm1770_vm2, %v1745_v39  ;;  %v1890_v39 = vpop.f32.mrf.mxu2  ;;  %v1979_v19 = vpop.f32.mrf.mxu3 }
 0x2f6   :  { %v6531_v16 = vpop.f32.mrf.mxu0 }
 0x2f7   :  { %v6535_v4 = vpop.f32.mrf.mxu1 }
 0x2f9   :  { %2116 = vmatmul.f32.gmra.mxu0 %v1744_v38 }
 0x2fa   :  { %4362 = vmatmul.msk.f32.gmra.mxu1 %vm1770_vm2, %v1747_v14  ;;  %v1893_v14 = vpop.f32.mrf.mxu2  ;;  %v1982_v24 = vpop.f32.mrf.mxu3 }
 0x2fe   :  { %v6542_v56 = vpop.f32.mrf.mxu0 }
 0x2ff   :  { %v6544_v11 = vpop.f32.mrf.mxu1 }
 0x301   :  { %2119 = vmatmul.f32.gmra.mxu0 %v1746_v31 }
 0x302   :  { %4363 = vmatmul.msk.f32.gmra.mxu1 %vm1770_vm2, %v1749_v37  ;;  %v1896_v36 = vpop.f32.mrf.mxu2  ;;  %v1985_v37 = vpop.f32.mrf.mxu3 }
 0x306   :  { %v6555_v50 = vpop.f32.mrf.mxu0 }
 0x307   :  { %v6557_v0 = vpop.f32.mrf.mxu1 }
 0x309   :  { %2122 = vmatmul.f32.gmra.mxu0 %v1748_v46 }
 0x30a   :  { %4364 = vmatmul.msk.f32.gmra.mxu1 %vm1770_vm2, %v1751_v30  ;;  %v1899_v2 = vpop.f32.mrf.mxu2  ;;  %v1988_v28 = vpop.f32.mrf.mxu3 }
 0x30b   :  { %v1989_v15 = vadd.f32 %v1988_v28, %v1899_v2 }
 0x30e   :  { %v6560_v6 = vpop.f32.mrf.mxu0 }
 0x30f   :  { %v2170_v38 = vpop.f32.mrf.mxu1 }
 0x311   :  { %2125 = vmatmul.f32.gmra.mxu0 %v1750_v43 }
 0x312   :  { %v1902_v48 = vpop.f32.mrf.mxu2  ;;  %v1991_v62 = vpop.f32.mrf.mxu3 }
 0x313   :  { %v1992_v26 = vadd.f32 %v1991_v62, %v1902_v48 }
 0x316   :  { %v2081_v31 = vpop.f32.mrf.mxu0 }
 0x317   :  { %v2173_v33 = vpop.f32.mrf.mxu1 }
 0x31a   :  { %v1905_v46 = vpop.f32.mrf.mxu2  ;;  %v1994_v30 = vpop.f32.mrf.mxu3 }
 0x31b   :  { %v1995_v57 = vadd.f32 %v1994_v30, %v1905_v46 }
 0x31e   :  { %v2084_v41 = vpop.f32.mrf.mxu0 }
 0x31f   :  { %v2176_v23 = vpop.f32.mrf.mxu1 }
 0x322   :  { %v6562_v5 = vpop.f32.mrf.mxu2  ;;  %v6564_v43 = vpop.f32.mrf.mxu3 }
 0x323   :  { %7908 = vst [vmem:[#allocation15_spill] sm:$0xff] %v6562_v5 }
 0x324   :  { %7909 = vst [vmem:[#allocation55_spill] sm:$0xff] %v6564_v43  ;;  %v1986_v43 = vadd.f32 %v1985_v37, %v1896_v36  ;;  %v2171_v36 = vadd.f32 %v2170_v38, %v2081_v31  ;;  %v1974_v37 = vadd.f32 %v6533_v25, %v6529_v18  ;;  %v1968_v18 = vadd.f32 %v6505_v49, %v6500_v17 }
 0x325   :  { %v2162_v25 = vadd.f32 %v6535_v4, %v6542_v56  ;;  %v2156_v17 = vadd.f32 %v6509_v63, %v6520_v42  ;;  %v7915_v63 = vld [vmem:[#allocation54_spill] sm:$0xff]  ;;  %v7916_v42 = vld [vmem:[#allocation5_spill] sm:$0xff] }
 0x326   :  { %v2087_v55 = vpop.f32.mrf.mxu0  ;;  %v2150_v2 = vadd.f32 %v7916_v42, %v7915_v63  ;;  %v2248_v63 = vld [vmem:[%s7707_s4 + $0x30] sm:$0xff] }
 0x327   :  { %v2179_v34 = vpop.f32.mrf.mxu1  ;;  %v2177_v48 = vadd.f32 %v2176_v23, %v2087_v55 }
 0x32a   :  { %v6568_v53 = vpop.f32.mrf.mxu2  ;;  %v6570_v44 = vpop.f32.mrf.mxu3 }
 0x32e   :  { %v2090_v12 = vpop.f32.mrf.mxu0 }
 0x32f   :  { %v2182_v45 = vpop.f32.mrf.mxu1  ;;  %v2180_v46 = vadd.f32 %v2179_v34, %v2090_v12  ;;  %v7917_v12 = vld [vmem:[#allocation3_spill] sm:$0xff] }
 0x336   :  { %v2093_v21 = vpop.f32.mrf.mxu0 }
 0x337   :  { %v2185_v7 = vpop.f32.mrf.mxu1  ;;  %v2183_v5 = vadd.f32 %v2182_v45, %v2093_v21  ;;  %v7918_v45 = vld [vmem:[#allocation52_spill] sm:$0xff] }
 0x338   :  { %v1953_v21 = vadd.f32 %v7918_v45, %v7917_v12 }
 0x339   :  { %v6582_v62 = vmax.f32 %v1986_v43, %v2183_v5  ;;  %v7921_v5 = vld [vmem:[#allocation7_spill] sm:$0xff] }
 0x33e   :  { %v2096_v3 = vpop.f32.mrf.mxu0 }
 0x33f   :  { %v2188_v10 = vpop.f32.mrf.mxu1  ;;  %v2186_v32 = vadd.f32 %v2185_v7, %v2096_v3  ;;  %v7919_v7 = vld [vmem:[#allocation53_spill] sm:$0xff] }
 0x341   :  { %v6577_v30 = vmax.f32 %v1989_v15, %v2186_v32  ;;  %v6590_v32 = vpop.f32.mrf.mxu2  ;;  %v1977_v15 = vadd.f32 %v6548_v52, %v6546_v58  ;;  %v2165_v58 = vadd.f32 %v6544_v11, %v6555_v50  ;;  %v2226_v52 = vmax.f32 %v1974_v37, %v2171_v36 }
 0x342   :  { %v1962_v50 = vadd.f32 %v6471_v9, %v6468_v27  ;;  %v7913_v27 = vld [vmem:[#allocation79_spill] sm:$0xff]  ;;  %v7914_v9 = vld [vmem:[#allocation85_spill] sm:$0xff] }
 0x343   :  { %v1956_v34 = vadd.f32 %v7914_v9, %v7913_v27 }
 0x346   :  { %v2099_v1 = vpop.f32.mrf.mxu0 }
 0x347   :  { %v2191_v22 = vpop.f32.mrf.mxu1  ;;  %v2189_v51 = vadd.f32 %v2188_v10, %v2099_v1  ;;  %v7922_v1 = vld [vmem:[#allocation51_spill] sm:$0xff] }
 0x348   :  { %v1950_v43 = vadd.f32 %v7922_v1, %v7921_v5  ;;  %v2255_v5 = vld [vmem:[%s7707_s4 + $0x68] sm:$0xff]  ;;  %v2262_v1 = vld [vmem:[%s7707_s4 + $0xa0] sm:$0xff] }
 0x349   :  { %v6574_v60 = vmax.f32 %v1992_v26, %v2189_v51  ;;  %v2174_v51 = vadd.f32 %v2173_v33, %v2084_v41  ;;  %v1971_v41 = vadd.f32 %v6518_v13, %v6516_v20  ;;  %v2159_v20 = vadd.f32 %v6522_v40, %v6531_v16  ;;  %v6617_v11 = vpop.f32.mrf.mxu2  ;;  %v7911_v40 = vld [vmem:[#allocation4_spill] sm:$0xff] }
 0x34a   :  { %v2224_v13 = vmax.f32 %v1968_v18, %v2165_v58  ;;  %v7912_v16 = vld [vmem:[#allocation84_spill] sm:$0xff] }
 0x34b   :  { %v2153_v31 = vadd.f32 %v7912_v16, %v7911_v40  ;;  %v2222_v23 = vmax.f32 %v1962_v50, %v2159_v20 }
 0x34d   :  { %v2220_v10 = vmax.f32 %v1956_v34, %v2153_v31 }
 0x34e   :  { %v2102_v29 = vpop.f32.mrf.mxu0 }
 0x34f   :  { %v2192_v35 = vadd.f32 %v2191_v22, %v2102_v29  ;;  %v6566_v8 = vpop.f32.mrf.mxu1  ;;  %v1983_v22 = vadd.f32 %v1982_v24, %v1893_v14  ;;  %v6594_v24 = vpop.f32.mrf.mxu3 }
 0x350   :  { %v2004_v42 = vadd.f32 %v6594_v24, %v6590_v32  ;;  %v2254_v24 = vld [vmem:[%s7707_s4 + $0x60] sm:$0xff] }
 0x351   :  { %v6572_v47 = vmax.f32 %v1995_v57, %v2192_v35  ;;  %v1980_v57 = vadd.f32 %v1979_v19, %v1890_v39  ;;  %v6587_v26 = vmax.f32 %v1983_v22, %v2180_v46  ;;  %v2168_v39 = vadd.f32 %v6557_v0, %v6560_v6  ;;  %v1920_v22 = vpop.f32.mrf.mxu2 }
 0x352   :  { %v2227_v19 = vmax.f32 %v1977_v15, %v2174_v51  ;;  %v1965_v6 = vadd.f32 %v6487_v54, %v6485_v61  ;;  %v7910_v61 = vld [vmem:[#allocation2_spill] sm:$0xff]  ;;  %v2219_v46 = vmax.f32 %v1953_v21, %v2150_v2  ;;  %v2256_v21 = vld [vmem:[%s7707_s4 + $0x70] sm:$0xff] }
 0x353   :  { %2303 = vmatpush.msrb.mxu2 %v6572_v47  ;;  %v2228_v14 = vmax.f32 %v1980_v57, %v2177_v48  ;;  %v2225_v0 = vmax.f32 %v1971_v41, %v2168_v39  ;;  %v1959_v54 = vadd.f32 %v7910_v61, %v6445_v59  ;;  %v7920_v59 = vld [vmem:[#allocation10_spill] sm:$0xff] }
 0x354   :  { %v2223_v49 = vmax.f32 %v1965_v6, %v2162_v25  ;;  %v2147_v3 = vadd.f32 %v7920_v59, %v7919_v7  ;;  %v2251_v7 = vld [vmem:[%s7707_s4 + $0x48] sm:$0xff]  ;;  %v2258_v59 = vld [vmem:[%s7707_s4 + $0x80] sm:$0xff] }
 0x355   :  { %2304 = vmatpush.msrb.mxu2 %v6574_v60  ;;  %v2221_v28 = vmax.f32 %v1959_v54, %v2156_v17 }
 0x356   :  { %v6580_v29 = vpop.f32.mrf.mxu0  ;;  %v2218_v57 = vmax.f32 %v1950_v43, %v2147_v3  ;;  %v2253_v3 = vld [vmem:[%s7707_s4 + $0x58] sm:$0xff] }
 0x357   :  { %v6584_v35 = vpop.f32.mrf.mxu1  ;;  %2305 = vmatpush.msrb.mxu2 %v6577_v30  ;;  %v6623_v4 = vpop.f32.mrf.mxu3  ;;  %v2257_v43 = vld [vmem:[%s7707_s4 + $0x78] sm:$0xff] }
 0x358   :  { %v2007_v27 = vadd.f32 %v6623_v4, %v6617_v11  ;;  %v2001_v11 = vadd.f32 %v6570_v44, %v6568_v53  ;;  %v2250_v44 = vld [vmem:[%s7707_s4 + $0x40] sm:$0xff]  ;;  %v2252_v53 = vld [vmem:[%s7707_s4 + $0x50] sm:$0xff] }
 0x359   :  { %2306 = vmatpush.msrb.mxu2 %v6582_v62  ;;  %v1923_v37 = vpop.f32.mrf.mxu2 }
 0x35b   :  { %2307 = vmatpush.msrb.mxu2 %v6587_v26 }
 0x35d   :  { %2308 = vmatpush.msrb.mxu2 %v2228_v14 }
 0x35e   :  { %v6601_v33 = vpop.f32.mrf.mxu0 }
 0x35f   :  { %v6607_v38 = vpop.f32.mrf.mxu1  ;;  %2309 = vmatpush.msrb.mxu2 %v2227_v19  ;;  %v2009_v51 = vpop.f32.mrf.mxu3 }
 0x360   :  { %v2010_v16 = vadd.f32 %v2009_v51, %v1920_v22  ;;  %v2259_v22 = vld [vmem:[%s7707_s4 + $0x88] sm:$0xff]  ;;  %v4379_v51 = vld [vmem:[%s7707_s4 + $0xd0] sm:$0xff] }
 0x361   :  { %2310 = vmatpush.msrb.mxu2 %v2226_v52  ;;  %v1926_v18 = vpop.f32.mrf.mxu2 }
 0x363   :  { %2311 = vmatpush.msrb.mxu2 %v2225_v0 }
 0x365   :  { %2312 = vmatpush.msrb.mxu2 %v2224_v13 }
 0x366   :  { %v6625_v56 = vpop.f32.mrf.mxu0 }
 0x367   :  { %v6631_v55 = vpop.f32.mrf.mxu1  ;;  %2313 = vmatpush.msrb.mxu2 %v2223_v49  ;;  %v2012_v39 = vpop.f32.mrf.mxu3  ;;  %v2201_v9 = vadd.f32 %v6607_v38, %v6625_v56  ;;  %v2195_v38 = vadd.f32 %v6566_v8, %v6580_v29  ;;  %v7923_v56 = vld [vmem:[#allocation15_spill] sm:$0xff]  ;;  %v2245_v8 = vld [vmem:[%s7707_s4 + $0x18] sm:$0xff] }
 0x368   :  { %v2013_v61 = vadd.f32 %v2012_v39, %v1923_v37  ;;  %v2247_v29 = vld [vmem:[%s7707_s4 + $0x28] sm:$0xff]  ;;  %v2265_v37 = vld [vmem:[%s7707_s4 + $0xb8] sm:$0xff]  ;;  %v4383_v39 = vld [vmem:[%s7707_s4 + $0xf0] sm:$0xff] }
 0x369   :  { %2314 = vmatpush.msrb.mxu2 %v2222_v23  ;;  %v2236_v4 = vmax.f32 %v2004_v42, %v2201_v9 }
 0x36b   :  { %2315 = vmatpush.msrb.mxu2 %v2221_v28 }
 0x36d   :  { %2316 = vmatpush.msrb.mxu2 %v2220_v10 }
 0x36e   :  { %v2114_v48 = vpop.f32.mrf.mxu0 }
 0x36f   :  { %2317 = vmatpush.msrb.mxu2 %v2219_v46  ;;  %v2206_v15 = vpop.f32.mrf.mxu1  ;;  %v2204_v31 = vadd.f32 %v6631_v55, %v2114_v48  ;;  %v2198_v55 = vadd.f32 %v6584_v35, %v6601_v33  ;;  %v2243_v35 = vld [vmem:[%s7707_s4 + $0x8] sm:$0xff]  ;;  %v2249_v33 = vld [vmem:[%s7707_s4 + $0x38] sm:$0xff]  ;;  %v4377_v48 = vld [vmem:[%s7707_s4 + $0xc0] sm:$0xff] }
 0x371   :  { %2318 = vmatpush.msrb.mxu2 %v2218_v57  ;;  %v2237_v2 = vmax.f32 %v2007_v27, %v2204_v31  ;;  %v2235_v45 = vmax.f32 %v2001_v11, %v2198_v55  ;;  %v4399_v27 = vld [vmem:[%s7707_s4 + $0x170] sm:$0xff] }
 0x373   :  { %2470 = vmatpush.msra.mxu2 %v6572_v47  ;;  %v2242_v47 = vld [vmem:[%s7707_s4] sm:$0xff] }
 0x374   :  { %2319 = vmatmul.f32.vlgmr.msrb.gmra.mxu2 %v2242_v47 }
 0x375   :  { %2471 = vmatpush.msra.mxu2 %v6574_v60  ;;  %v2015_v60 = vpop.f32.mrf.mxu3 }
 0x376   :  { %v2117_v36 = vpop.f32.mrf.mxu0 }
 0x377   :  { %2472 = vmatpush.msra.mxu2 %v6577_v30  ;;  %v2209_v41 = vpop.f32.mrf.mxu1  ;;  %v2207_v54 = vadd.f32 %v2206_v15, %v2117_v36  ;;  %v2263_v15 = vld [vmem:[%s7707_s4 + $0xa8] sm:$0xff]  ;;  %v4381_v36 = vld [vmem:[%s7707_s4 + $0xe0] sm:$0xff] }
 0x379   :  { %2473 = vmatpush.msra.mxu2 %v6582_v62  ;;  %v2244_v62 = vld [vmem:[%s7707_s4 + $0x10] sm:$0xff]  ;;  %v2238_v34 = vmax.f32 %v2010_v16, %v2207_v54  ;;  %v4390_v54 = vld [vmem:[%s7707_s4 + $0x128] sm:$0xff] }
 0x37b   :  { %2474 = vmatpush.msra.mxu2 %v6587_v26  ;;  %v1929_v26 = vpop.f32.mrf.mxu2 }
 0x37c   :  { %2322 = vmatmul.f32.gmra.mxu2 %v2244_v62  ;;  %v4389_v62 = vld [vmem:[%s7707_s4 + $0x120] sm:$0xff] }
 0x37d   :  { %2475 = vmatpush.msra.mxu2 %v2228_v14  ;;  %v2018_v14 = vpop.f32.mrf.mxu3 }
 0x37e   :  { %v2120_v58 = vpop.f32.mrf.mxu0 }
 0x37f   :  { %2476 = vmatpush.msra.mxu2 %v2227_v19  ;;  %v2212_v30 = vpop.f32.mrf.mxu1  ;;  %v2210_v50 = vadd.f32 %v2209_v41, %v2120_v58  ;;  %v4378_v41 = vld [vmem:[%s7707_s4 + $0xc8] sm:$0xff]  ;;  %v4385_v58 = vld [vmem:[%s7707_s4 + $0x100] sm:$0xff] }
 0x381   :  { %2477 = vmatpush.msra.mxu2 %v2226_v52 }
 0x383   :  { %2478 = vmatpush.msra.mxu2 %v2225_v0  ;;  %v2019_v0 = vadd.f32 %v2018_v14, %v1929_v26  ;;  %v4384_v14 = vld [vmem:[%s7707_s4 + $0xf8] sm:$0xff] }
 0x385   :  { %2479 = vmatpush.msra.mxu2 %v2224_v13  ;;  %v2016_v13 = vadd.f32 %v2015_v60, %v1926_v18  ;;  %v4380_v18 = vld [vmem:[%s7707_s4 + $0xd8] sm:$0xff]  ;;  %v4387_v60 = vld [vmem:[%s7707_s4 + $0x110] sm:$0xff] }
 0x386   :  { %v2123_v25 = vpop.f32.mrf.mxu0 }
 0x387   :  { %2480 = vmatpush.msra.mxu2 %v2223_v49  ;;  %v2215_v19 = vpop.f32.mrf.mxu1  ;;  %v2213_v6 = vadd.f32 %v2212_v30, %v2123_v25  ;;  %v2246_v49 = vld [vmem:[%s7707_s4 + $0x20] sm:$0xff]  ;;  %v4382_v25 = vld [vmem:[%s7707_s4 + $0xe8] sm:$0xff] }
 0x388   :  { %2325 = vmatmul.f32.gmra.mxu2 %v2246_v49 }
 0x389   :  { %2481 = vmatpush.msra.mxu2 %v2222_v23  ;;  %v2240_v40 = vmax.f32 %v2016_v13, %v2213_v6  ;;  %v2239_v23 = vmax.f32 %v2013_v61, %v2210_v50  ;;  %v4393_v6 = vld [vmem:[%s7707_s4 + $0x140] sm:$0xff]  ;;  %v4388_v50 = vld [vmem:[%s7707_s4 + $0x118] sm:$0xff] }
 0x38b   :  { %2482 = vmatpush.msra.mxu2 %v2221_v28  ;;  %v7924_v28 = vld [vmem:[#allocation55_spill] sm:$0xff] }
 0x38c   :  { %v1998_v12 = vadd.f32 %v7924_v28, %v7923_v56  ;;  %v4400_v28 = vld [vmem:[%s7707_s4 + $0x178] sm:$0xff] }
 0x38d   :  { %2483 = vmatpush.msra.mxu2 %v2220_v10  ;;  %v2260_v10 = vld [vmem:[%s7707_s4 + $0x90] sm:$0xff] }
 0x38e   :  { %v2126_v52 = vpop.f32.mrf.mxu0  ;;  %v2234_v32 = vmax.f32 %v1998_v12, %v2195_v38  ;;  %v4398_v38 = vld [vmem:[%s7707_s4 + $0x168] sm:$0xff] }
 0x38f   :  { %2484 = vmatpush.msra.mxu2 %v2219_v46  ;;  %v2216_v20 = vadd.f32 %v2215_v19, %v2126_v52  ;;  %v2264_v46 = vld [vmem:[%s7707_s4 + $0xb0] sm:$0xff] }
 0x390   :  { %2328 = vmatmul.f32.gmra.mxu2 %v2248_v63  ;;  %v4391_v19 = vld [vmem:[%s7707_s4 + $0x130] sm:$0xff]  ;;  %v4394_v63 = vld [vmem:[%s7707_s4 + $0x148] sm:$0xff] }
 0x391   :  { %2485 = vmatpush.msra.mxu2 %v2218_v57  ;;  %v2241_v17 = vmax.f32 %v2019_v0, %v2216_v20  ;;  %v2261_v57 = vld [vmem:[%s7707_s4 + $0x98] sm:$0xff]  ;;  %v4386_v0 = vld [vmem:[%s7707_s4 + $0x108] sm:$0xff] }
 0x393   :  { %2364 = vmatpush.msrb.mxu3 %v2241_v17 }
 0x395   :  { %2365 = vmatpush.msrb.mxu3 %v2240_v40 }
 0x397   :  { %2366 = vmatpush.msrb.mxu3 %v2239_v23 }
 0x398   :  { %2331 = vmatmul.f32.gmra.mxu2 %v2250_v44 }
 0x399   :  { %2367 = vmatpush.msrb.mxu3 %v2238_v34 }
 0x39b   :  { %2368 = vmatpush.msrb.mxu3 %v2237_v2 }
 0x39d   :  { %2369 = vmatpush.msrb.mxu3 %v2236_v4 }
 0x39f   :  { %2370 = vmatpush.msrb.mxu3 %v2235_v45 }
 0x3a0   :  { %2334 = vmatmul.f32.gmra.mxu2 %v2252_v53 }
 0x3a1   :  { %2371 = vmatpush.msrb.mxu3 %v2234_v32 }
 0x3a2   :  { %4365 = vmatmul.msk.f32.vlgmr.msrb.gmra.mxu3 %vm2266_vm3, %v2243_v35 }
 0x3a3   :  { %2531 = vmatpush.msra.mxu3 %v2241_v17  ;;  %v4395_v17 = vld [vmem:[%s7707_s4 + $0x150] sm:$0xff] }
 0x3a5   :  { %2532 = vmatpush.msra.mxu3 %v2240_v40  ;;  %v4397_v40 = vld [vmem:[%s7707_s4 + $0x160] sm:$0xff] }
 0x3a7   :  { %2533 = vmatpush.msra.mxu3 %v2239_v23  ;;  %v4392_v23 = vld [vmem:[%s7707_s4 + $0x138] sm:$0xff] }
 0x3a8   :  { %2337 = vmatmul.f32.gmra.mxu2 %v2254_v24 }
 0x3a9   :  { %2534 = vmatpush.msra.mxu3 %v2238_v34 }
 0x3aa   :  { %4366 = vmatmul.msk.f32.gmra.mxu3 %vm2266_vm3, %v2245_v8 }
 0x3ab   :  { %2535 = vmatpush.msra.mxu3 %v2237_v2  ;;  %v4396_v2 = vld [vmem:[%s7707_s4 + $0x158] sm:$0xff] }
 0x3ad   :  { %2536 = vmatpush.msra.mxu3 %v2236_v4 }
 0x3af   :  { %2537 = vmatpush.msra.mxu3 %v2235_v45 }
 0x3b0   :  { %2340 = vmatmul.f32.gmra.mxu2 %v2256_v21 }
 0x3b1   :  { %2538 = vmatpush.msra.mxu3 %v2234_v32 }
 0x3b2   :  { %4367 = vmatmul.msk.f32.gmra.mxu3 %vm2266_vm3, %v2247_v29 }
 0x3b8   :  { %2343 = vmatmul.f32.gmra.mxu2 %v2258_v59 }
 0x3ba   :  { %4368 = vmatmul.msk.f32.gmra.mxu3 %vm2266_vm3, %v2249_v33 }
 0x3c0   :  { %2346 = vmatmul.f32.gmra.mxu2 %v2260_v10 }
 0x3c2   :  { %4369 = vmatmul.msk.f32.gmra.mxu3 %vm2266_vm3, %v2251_v7 }
 0x3c8   :  { %2349 = vmatmul.f32.gmra.mxu2 %v2262_v1 }
 0x3ca   :  { %4370 = vmatmul.msk.f32.gmra.mxu3 %vm2266_vm3, %v2253_v3 }
 0x3d0   :  { %2352 = vmatmul.f32.gmra.mxu2 %v2264_v46 }
 0x3d2   :  { %4371 = vmatmul.msk.f32.gmra.mxu3 %vm2266_vm3, %v2255_v5 }
 0x3d8   :  { %2486 = vmatmul.f32.vlgmr.msra.gmra.mxu2 %v4377_v48  ;;  %v4445_v48 = vld [vmem:[%s7708_s5 + $0x88] sm:$0xff] }
 0x3d9   :  { %2787 = vmatpush.msrb.mxu2 %v4445_v48 }
 0x3da   :  { %4372 = vmatmul.msk.f32.gmra.mxu3 %vm2266_vm3, %v2257_v43 }
 0x3e0   :  { %2489 = vmatmul.f32.gmra.mxu2 %v4379_v51 }
 0x3e2   :  { %4373 = vmatmul.msk.f32.gmra.mxu3 %vm2266_vm3, %v2259_v22 }
 0x3e8   :  { %2492 = vmatmul.f32.gmra.mxu2 %v4381_v36  ;;  %v4443_v36 = vld [vmem:[%s7708_s5 + $0x78] sm:$0xff] }
 0x3ea   :  { %4374 = vmatmul.msk.f32.gmra.mxu3 %vm2266_vm3, %v2261_v57  ;;  %v4444_v57 = vld [vmem:[%s7708_s5 + $0x80] sm:$0xff] }
 0x3eb   :  { %2788 = vmatpush.msrb.mxu2 %v4444_v57 }
 0x3ed   :  { %2789 = vmatpush.msrb.mxu2 %v4443_v36 }
 0x3f0   :  { %2495 = vmatmul.f32.gmra.mxu2 %v4383_v39  ;;  %v4441_v39 = vld [vmem:[%s7708_s5 + $0x68] sm:$0xff] }
 0x3f2   :  { %4375 = vmatmul.msk.f32.gmra.mxu3 %vm2266_vm3, %v2263_v15 }
 0x3f7   :  { %v6766_v47 = vpop.f32.mrf.mxu2 }
 0x3f8   :  { %2498 = vmatmul.f32.gmra.mxu2 %v4385_v58 }
 0x3fa   :  { %4376 = vmatmul.msk.f32.gmra.mxu3 %vm2266_vm3, %v2265_v37  ;;  %v4442_v37 = vld [vmem:[%s7708_s5 + $0x70] sm:$0xff] }
 0x3fb   :  { %2790 = vmatpush.msrb.mxu2 %v4442_v37 }
 0x3fd   :  { %2791 = vmatpush.msrb.mxu2 %v4441_v39  ;;  %v4428_v39 = vld [vmem:[%s7709_s8 + $0x78] sm:$0xff] }
 0x3ff   :  { %v6775_v30 = vpop.f32.mrf.mxu2 }
 0x400   :  { %2501 = vmatmul.f32.gmra.mxu2 %v4387_v60  ;;  %v4439_v60 = vld [vmem:[%s7708_s5 + $0x58] sm:$0xff] }
 0x402   :  { %4401 = vmatmul.msk.f32.vlgmr.msra.gmra.mxu3 %vm2266_vm3, %v4378_v41  ;;  %v4440_v41 = vld [vmem:[%s7708_s5 + $0x60] sm:$0xff] }
 0x403   :  { %2792 = vmatpush.msrb.mxu2 %v4440_v41  ;;  %v2595_v41 = vld [vmem:[%s7709_s8 + $0x38] sm:$0xff] }
 0x405   :  { %2793 = vmatpush.msrb.mxu2 %v4439_v60  ;;  %v2670_v60 = vld [vmem:[%s7708_s5 + $0x40] sm:$0xff] }
 0x406   :  { %2852 = vmatpush.msrb.mxu3 %v2670_v60 }
 0x408   :  { %2504 = vmatmul.f32.gmra.mxu2 %v4389_v62  ;;  %v4437_v62 = vld [vmem:[%s7708_s5 + $0x48] sm:$0xff] }
 0x40a   :  { %4402 = vmatmul.msk.f32.gmra.mxu3 %vm2266_vm3, %v4380_v18 }
 0x40b   :  { %v6784_v26 = vpop.f32.mrf.mxu2 }
 0x410   :  { %2507 = vmatmul.f32.gmra.mxu2 %v4391_v19 }
 0x412   :  { %4403 = vmatmul.msk.f32.gmra.mxu3 %vm2266_vm3, %v4382_v25  ;;  %v4438_v25 = vld [vmem:[%s7708_s5 + $0x50] sm:$0xff] }
 0x413   :  { %v6793_v52 = vpop.f32.mrf.mxu2  ;;  %2794 = vmatpush.msrb.mxu2 %v4438_v25  ;;  %v4464_v25 = vld [vmem:[%s7709_s8 + $0x90] sm:$0xff] }
 0x415   :  { %2795 = vmatpush.msrb.mxu2 %v4437_v62  ;;  %v2669_v62 = vld [vmem:[%s7708_s5 + $0x38] sm:$0xff] }
 0x416   :  { %2853 = vmatpush.msrb.mxu3 %v2669_v62 }
 0x418   :  { %2510 = vmatmul.f32.gmra.mxu2 %v4393_v6 }
 0x41a   :  { %4404 = vmatmul.msk.f32.gmra.mxu3 %vm2266_vm3, %v4384_v14 }
 0x41b   :  { %v6804_v13 = vpop.f32.mrf.mxu2 }
 0x420   :  { %2513 = vmatmul.f32.gmra.mxu2 %v4395_v17 }
 0x422   :  { %4405 = vmatmul.msk.f32.gmra.mxu3 %vm2266_vm3, %v4386_v0 }
 0x423   :  { %v6815_v61 = vpop.f32.mrf.mxu2 }
 0x425   :  { %v6802_v20 = vpop.f32.mrf.mxu3 }
 0x428   :  { %2516 = vmatmul.f32.gmra.mxu2 %v4397_v40 }
 0x42a   :  { %4406 = vmatmul.msk.f32.gmra.mxu3 %vm2266_vm3, %v4388_v50 }
 0x42b   :  { %v6826_v31 = vpop.f32.mrf.mxu2 }
 0x42d   :  { %v6813_v49 = vpop.f32.mrf.mxu3 }
 0x430   :  { %2519 = vmatmul.f32.gmra.mxu2 %v4399_v27 }
 0x432   :  { %4407 = vmatmul.msk.f32.gmra.mxu3 %vm2266_vm3, %v4390_v54 }
 0x433   :  { %v6837_v34 = vpop.f32.mrf.mxu2 }
 0x435   :  { %v6824_v16 = vpop.f32.mrf.mxu3 }
 0x43a   :  { %4408 = vmatmul.msk.f32.gmra.mxu3 %vm2266_vm3, %v4392_v23 }
 0x43b   :  { %v6845_v55 = vpop.f32.mrf.mxu2 }
 0x43d   :  { %v6835_v9 = vpop.f32.mrf.mxu3 }
 0x442   :  { %4409 = vmatmul.msk.f32.gmra.mxu3 %vm2266_vm3, %v4394_v63 }
 0x443   :  { %v2347_v4 = vpop.f32.mrf.mxu2 }
 0x445   :  { %v6843_v42 = vpop.f32.mrf.mxu3 }
 0x44a   :  { %4410 = vmatmul.msk.f32.gmra.mxu3 %vm2266_vm3, %v4396_v2 }
 0x44b   :  { %v2350_v12 = vpop.f32.mrf.mxu2 }
 0x44d   :  { %v6851_v11 = vpop.f32.mrf.mxu3 }
 0x452   :  { %4411 = vmatmul.msk.f32.gmra.mxu3 %vm2266_vm3, %v4398_v38 }
 0x453   :  { %v2353_v32 = vpop.f32.mrf.mxu2 }
 0x455   :  { %v6857_v56 = vpop.f32.mrf.mxu3 }
 0x45a   :  { %4412 = vmatmul.msk.f32.gmra.mxu3 %vm2266_vm3, %v4400_v28 }
 0x45b   :  { %v6865_v8 = vpop.f32.mrf.mxu2 }
 0x45d   :  { %v6863_v45 = vpop.f32.mrf.mxu3 }
 0x463   :  { %v6867_v29 = vpop.f32.mrf.mxu2 }
 0x465   :  { %v2397_v35 = vpop.f32.mrf.mxu3 }
 0x466   :  { %v2398_v36 = vadd.f32 %v2397_v35, %v6845_v55  ;;  %v2392_v55 = vadd.f32 %v6857_v56, %v6826_v31  ;;  %v2386_v31 = vadd.f32 %v6843_v42, %v6804_v13  ;;  %v2380_v13 = vadd.f32 %v6824_v16, %v6784_v26 }
 0x467   :  { %v2374_v26 = vadd.f32 %v6802_v20, %v6766_v47  ;;  %v4422_v47 = vld [vmem:[%s7709_s8 + $0x48] sm:$0xff] }
 0x468   :  { %v2589_v20 = vld [vmem:[%s7709_s8 + $0x8] sm:$0xff] }
 0x46b   :  { %v6869_v33 = vpop.f32.mrf.mxu2 }
 0x46d   :  { %v2400_v44 = vpop.f32.mrf.mxu3 }
 0x46e   :  { %v2401_v28 = vadd.f32 %v2400_v44, %v2347_v4  ;;  %v2395_v4 = vadd.f32 %v6863_v45, %v6837_v34  ;;  %v2389_v34 = vadd.f32 %v6851_v11, %v6815_v61  ;;  %v2383_v61 = vadd.f32 %v6835_v9, %v6793_v52 }
 0x46f   :  { %v2377_v52 = vadd.f32 %v6813_v49, %v6775_v30  ;;  %v4421_v30 = vld [vmem:[%s7709_s8 + $0x40] sm:$0xff] }
 0x470   :  { %v2588_v49 = vld [vmem:[%s7709_s8] sm:$0xff] }
 0x473   :  { %v6873_v7 = vpop.f32.mrf.mxu2 }
 0x475   :  { %v2403_v53 = vpop.f32.mrf.mxu3 }
 0x476   :  { %v2404_v63 = vadd.f32 %v2403_v53, %v2350_v12 }
 0x47b   :  { %v6879_v10 = vpop.f32.mrf.mxu2 }
 0x47d   :  { %v2406_v24 = vpop.f32.mrf.mxu3 }
 0x47e   :  { %v2407_v40 = vadd.f32 %v2406_v24, %v2353_v32 }
 0x483   :  { %v2502_v1 = vpop.f32.mrf.mxu2 }
 0x485   :  { %v6871_v21 = vpop.f32.mrf.mxu3 }
 0x486   :  { %v2541_v9 = vadd.f32 %v6871_v21, %v6865_v8  ;;  %v4423_v8 = vld [vmem:[%s7709_s8 + $0x50] sm:$0xff] }
 0x487   :  { %v2590_v21 = vld [vmem:[%s7709_s8 + $0x10] sm:$0xff] }
 0x48b   :  { %v2505_v46 = vpop.f32.mrf.mxu2 }
 0x48d   :  { %v6875_v59 = vpop.f32.mrf.mxu3 }
 0x48e   :  { %v2544_v42 = vadd.f32 %v6875_v59, %v6867_v29  ;;  %v2576_v29 = vmax.f32 %v2374_v26, %v2541_v9  ;;  %v4424_v59 = vld [vmem:[%s7709_s8 + $0x58] sm:$0xff]  ;;  %v4530_v9 = vld [vmem:[%s7709_s8 + $0x110] sm:$0xff]  ;;  %v4495_v26 = vld [vmem:[%s7709_s8 + $0xc0] sm:$0xff] }
 0x490   :  { %v2577_v16 = vmax.f32 %v2377_v52, %v2544_v42  ;;  %v4529_v42 = vld [vmem:[%s7709_s8 + $0x108] sm:$0xff] }
 0x493   :  { %v2508_v51 = vpop.f32.mrf.mxu2 }
 0x495   :  { %v6877_v3 = vpop.f32.mrf.mxu3 }
 0x496   :  { %v2547_v11 = vadd.f32 %v6877_v3, %v6869_v33  ;;  %v2591_v3 = vld [vmem:[%s7709_s8 + $0x18] sm:$0xff] }
 0x498   :  { %v2578_v33 = vmax.f32 %v2380_v13, %v2547_v11  ;;  %v4528_v11 = vld [vmem:[%s7709_s8 + $0x100] sm:$0xff] }
 0x49b   :  { %v2511_v18 = vpop.f32.mrf.mxu2 }
 0x49d   :  { %v6881_v5 = vpop.f32.mrf.mxu3 }
 0x49e   :  { %v2550_v56 = vadd.f32 %v6881_v5, %v6873_v7  ;;  %v4425_v5 = vld [vmem:[%s7709_s8 + $0x60] sm:$0xff] }
 0x4a0   :  { %v6970_v7 = vmax.f32 %v2383_v61, %v2550_v56  ;;  %v4478_v56 = vld [vmem:[%s7708_s5 + $0x90] sm:$0xff] }
 0x4a3   :  { %v2514_v19 = vpop.f32.mrf.mxu2 }
 0x4a5   :  { %v6883_v43 = vpop.f32.mrf.mxu3 }
 0x4a6   :  { %v2553_v45 = vadd.f32 %v6883_v43, %v6879_v10  ;;  %v2592_v43 = vld [vmem:[%s7709_s8 + $0x20] sm:$0xff] }
 0x4a8   :  { %v6961_v10 = vmax.f32 %v2386_v31, %v2553_v45  ;;  %v4480_v45 = vld [vmem:[%s7708_s5 + $0xa0] sm:$0xff]  ;;  %v4479_v31 = vld [vmem:[%s7708_s5 + $0x98] sm:$0xff] }
 0x4ab   :  { %v2517_v6 = vpop.f32.mrf.mxu2 }
 0x4ad   :  { %v2555_v22 = vpop.f32.mrf.mxu3 }
 0x4ae   :  { %v2556_v35 = vadd.f32 %v2555_v22, %v2502_v1  ;;  %v2593_v22 = vld [vmem:[%s7709_s8 + $0x28] sm:$0xff] }
 0x4b0   :  { %v6952_v1 = vmax.f32 %v2389_v34, %v2556_v35  ;;  %v4482_v35 = vld [vmem:[%s7708_s5 + $0xb0] sm:$0xff]  ;;  %v4481_v34 = vld [vmem:[%s7708_s5 + $0xa8] sm:$0xff] }
 0x4b3   :  { %v2520_v17 = vpop.f32.mrf.mxu2 }
 0x4b5   :  { %v2558_v15 = vpop.f32.mrf.mxu3 }
 0x4b6   :  { %v2559_v12 = vadd.f32 %v2558_v15, %v2505_v46  ;;  %v4426_v46 = vld [vmem:[%s7709_s8 + $0x68] sm:$0xff]  ;;  %v2594_v15 = vld [vmem:[%s7709_s8 + $0x30] sm:$0xff] }
 0x4b8   :  { %v6943_v24 = vmax.f32 %v2392_v55, %v2559_v12  ;;  %v4484_v12 = vld [vmem:[%s7708_s5 + $0xc0] sm:$0xff]  ;;  %v4483_v55 = vld [vmem:[%s7708_s5 + $0xb8] sm:$0xff] }
 0x4bd   :  { %v2561_v58 = vpop.f32.mrf.mxu3 }
 0x4be   :  { %v2562_v37 = vadd.f32 %v2561_v58, %v2508_v51  ;;  %v4427_v51 = vld [vmem:[%s7709_s8 + $0x70] sm:$0xff]  ;;  %v4462_v58 = vld [vmem:[%s7709_s8 + $0x80] sm:$0xff] }
 0x4c0   :  { %v6934_v53 = vmax.f32 %v2395_v4, %v2562_v37  ;;  %v4485_v4 = vld [vmem:[%s7708_s5 + $0xc8] sm:$0xff] }
 0x4c5   :  { %v2564_v14 = vpop.f32.mrf.mxu3 }
 0x4c6   :  { %v2565_v48 = vadd.f32 %v2564_v14, %v2511_v18  ;;  %v4463_v18 = vld [vmem:[%s7709_s8 + $0x88] sm:$0xff]  ;;  %v2668_v14 = vld [vmem:[%s7708_s5 + $0x30] sm:$0xff] }
 0x4c7   :  { %2854 = vmatpush.msrb.mxu3 %v2668_v14  ;;  %v4519_v14 = vld [vmem:[%s7708_s5 + $0x118] sm:$0xff] }
 0x4c8   :  { %v6927_v44 = vmax.f32 %v2398_v36, %v2565_v48 }
 0x4cd   :  { %v2567_v0 = vpop.f32.mrf.mxu3 }
 0x4ce   :  { %v2568_v2 = vadd.f32 %v2567_v0, %v2514_v19  ;;  %v2667_v19 = vld [vmem:[%s7708_s5 + $0x28] sm:$0xff]  ;;  %v2666_v0 = vld [vmem:[%s7708_s5 + $0x20] sm:$0xff] }
 0x4cf   :  { %2855 = vmatpush.msrb.mxu3 %v2667_v19  ;;  %v4518_v19 = vld [vmem:[%s7708_s5 + $0x110] sm:$0xff] }
 0x4d0   :  { %v6920_v32 = vmax.f32 %v2401_v28, %v2568_v2  ;;  %v4469_v2 = vld [vmem:[%s7709_s8 + $0xb8] sm:$0xff] }
 0x4d1   :  { %2856 = vmatpush.msrb.mxu3 %v2666_v0  ;;  %v4517_v0 = vld [vmem:[%s7708_s5 + $0x108] sm:$0xff] }
 0x4d5   :  { %v2570_v50 = vpop.f32.mrf.mxu3 }
 0x4d6   :  { %v2571_v23 = vadd.f32 %v2570_v50, %v2517_v6  ;;  %v4465_v6 = vld [vmem:[%s7709_s8 + $0x98] sm:$0xff] }
 0x4d7   :  { %v2665_v50 = vld [vmem:[%s7708_s5 + $0x18] sm:$0xff] }
 0x4d8   :  { %v6914_v57 = vmax.f32 %v2404_v63, %v2571_v23  ;;  %2857 = vmatpush.msrb.mxu3 %v2665_v50  ;;  %v4466_v23 = vld [vmem:[%s7709_s8 + $0xa0] sm:$0xff]  ;;  %v4468_v63 = vld [vmem:[%s7709_s8 + $0xb0] sm:$0xff] }
 0x4dd   :  { %v2573_v54 = vpop.f32.mrf.mxu3 }
 0x4de   :  { %v2574_v27 = vadd.f32 %v2573_v54, %v2520_v17  ;;  %v2664_v17 = vld [vmem:[%s7708_s5 + $0x10] sm:$0xff]  ;;  %v2663_v54 = vld [vmem:[%s7708_s5 + $0x8] sm:$0xff] }
 0x4df   :  { %2858 = vmatpush.msrb.mxu3 %v2664_v17  ;;  %v4515_v17 = vld [vmem:[%s7708_s5 + $0xf8] sm:$0xff] }
 0x4e0   :  { %v6912_v38 = vmax.f32 %v2407_v40, %v2574_v27  ;;  %v2662_v40 = vld [vmem:[%s7708_s5] sm:$0xff]  ;;  %v4467_v27 = vld [vmem:[%s7709_s8 + $0xa8] sm:$0xff] }
 0x4e1   :  { %2859 = vmatpush.msrb.mxu3 %v2663_v54  ;;  %v4552_v54 = vld [vmem:[%s7708_s5 + $0x160] sm:$0xff] }
 0x4e2   :  { %2625 = vmatpush.msrb.mxu0 %v6912_v38  ;;  %2708 = vmatpush.msra.mxu1 %v6912_v38 }
 0x4e3   :  { %3080 = vmatpush.msra.mxu2 %v6912_v38  ;;  %2860 = vmatpush.msrb.mxu3 %v2662_v40  ;;  %v4514_v40 = vld [vmem:[%s7708_s5 + $0xf0] sm:$0xff] }
 0x4e4   :  { %2626 = vmatpush.msrb.mxu0 %v6914_v57  ;;  %2709 = vmatpush.msra.mxu1 %v6914_v57 }
 0x4e5   :  { %3081 = vmatpush.msra.mxu2 %v6914_v57  ;;  %3158 = vmatpush.msra.mxu3 %v4519_v14 }
 0x4e6   :  { %2627 = vmatpush.msrb.mxu0 %v6920_v32  ;;  %2710 = vmatpush.msra.mxu1 %v6920_v32 }
 0x4e7   :  { %3082 = vmatpush.msra.mxu2 %v6920_v32  ;;  %3159 = vmatpush.msra.mxu3 %v4518_v19 }
 0x4e8   :  { %2628 = vmatpush.msrb.mxu0 %v6927_v44  ;;  %2711 = vmatpush.msra.mxu1 %v6927_v44 }
 0x4e9   :  { %3083 = vmatpush.msra.mxu2 %v6927_v44  ;;  %3160 = vmatpush.msra.mxu3 %v4517_v0 }
 0x4ea   :  { %2629 = vmatpush.msrb.mxu0 %v6934_v53  ;;  %2712 = vmatpush.msra.mxu1 %v6934_v53 }
 0x4eb   :  { %3084 = vmatpush.msra.mxu2 %v6934_v53 }
 0x4ec   :  { %2630 = vmatpush.msrb.mxu0 %v6943_v24  ;;  %2713 = vmatpush.msra.mxu1 %v6943_v24 }
 0x4ed   :  { %3085 = vmatpush.msra.mxu2 %v6943_v24 }
 0x4ee   :  { %2631 = vmatpush.msrb.mxu0 %v6952_v1  ;;  %2714 = vmatpush.msra.mxu1 %v6952_v1 }
 0x4ef   :  { %3086 = vmatpush.msra.mxu2 %v6952_v1 }
 0x4f0   :  { %2632 = vmatpush.msrb.mxu0 %v6961_v10  ;;  %2715 = vmatpush.msra.mxu1 %v6961_v10 }
 0x4f1   :  { %3087 = vmatpush.msra.mxu2 %v6961_v10 }
 0x4f2   :  { %2633 = vmatpush.msrb.mxu0 %v6970_v7  ;;  %2716 = vmatpush.msra.mxu1 %v6970_v7 }
 0x4f3   :  { %3088 = vmatpush.msra.mxu2 %v6970_v7 }
 0x4f4   :  { %2634 = vmatpush.msrb.mxu0 %v2578_v33  ;;  %2717 = vmatpush.msra.mxu1 %v2578_v33 }
 0x4f5   :  { %3089 = vmatpush.msra.mxu2 %v2578_v33 }
 0x4f6   :  { %2635 = vmatpush.msrb.mxu0 %v2577_v16  ;;  %2718 = vmatpush.msra.mxu1 %v2577_v16 }
 0x4f7   :  { %3090 = vmatpush.msra.mxu2 %v2577_v16 }
 0x4f8   :  { %2636 = vmatpush.msrb.mxu0 %v2576_v29  ;;  %2719 = vmatpush.msra.mxu1 %v2576_v29 }
 0x4f9   :  { %3091 = vmatpush.msra.mxu2 %v2576_v29  ;;  %4429 = vmatmul.msk.f32.vlgmr.msra.gmra.mxu1 %vm2596_vm4, %v4421_v30  ;;  %v4496_v30 = vld [vmem:[%s7709_s8 + $0xc8] sm:$0xff] }
 0x4fa   :  { %2923 = vmatpush.msra.mxu0 %v6912_v38 }
 0x4fb   :  { %4413 = vmatmul.msk.f32.vlgmr.msrb.gmra.mxu0 %vm2596_vm4, %v2588_v49  ;;  %v4532_v49 = vld [vmem:[%s7709_s8 + $0x120] sm:$0xff] }
 0x4fc   :  { %2924 = vmatpush.msra.mxu0 %v6914_v57 }
 0x4fe   :  { %2925 = vmatpush.msra.mxu0 %v6920_v32 }
 0x500   :  { %2926 = vmatpush.msra.mxu0 %v6927_v44 }
 0x501   :  { %4430 = vmatmul.msk.f32.gmra.mxu1 %vm2596_vm4, %v4422_v47 }
 0x502   :  { %2927 = vmatpush.msra.mxu0 %v6934_v53 }
 0x503   :  { %4414 = vmatmul.msk.f32.gmra.mxu0 %vm2596_vm4, %v2589_v20  ;;  %v4497_v20 = vld [vmem:[%s7709_s8 + $0xd0] sm:$0xff] }
 0x504   :  { %2928 = vmatpush.msra.mxu0 %v6943_v24 }
 0x506   :  { %2929 = vmatpush.msra.mxu0 %v6952_v1 }
 0x508   :  { %2930 = vmatpush.msra.mxu0 %v6961_v10 }
 0x509   :  { %4431 = vmatmul.msk.f32.gmra.mxu1 %vm2596_vm4, %v4423_v8  ;;  %v4533_v8 = vld [vmem:[%s7709_s8 + $0x128] sm:$0xff] }
 0x50a   :  { %2931 = vmatpush.msra.mxu0 %v6970_v7 }
 0x50b   :  { %4415 = vmatmul.msk.f32.gmra.mxu0 %vm2596_vm4, %v2590_v21 }
 0x50c   :  { %2932 = vmatpush.msra.mxu0 %v2578_v33 }
 0x50e   :  { %2933 = vmatpush.msra.mxu0 %v2577_v16 }
 0x510   :  { %2934 = vmatpush.msra.mxu0 %v2576_v29 }
 0x511   :  { %4432 = vmatmul.msk.f32.gmra.mxu1 %vm2596_vm4, %v4424_v59  ;;  %v4498_v59 = vld [vmem:[%s7709_s8 + $0xd8] sm:$0xff] }
 0x512   :  { %3237 = vmatpush.msrb.mxu0 %v6912_v38 }
 0x513   :  { %4416 = vmatmul.msk.f32.gmra.mxu0 %vm2596_vm4, %v2591_v3  ;;  %v4534_v3 = vld [vmem:[%s7709_s8 + $0x130] sm:$0xff] }
 0x514   :  { %3238 = vmatpush.msrb.mxu0 %v6914_v57 }
 0x516   :  { %3239 = vmatpush.msrb.mxu0 %v6920_v32  ;;  %v4486_v32 = vld [vmem:[%s7708_s5 + $0xd0] sm:$0xff] }
 0x517   :  { %3001 = vmatpush.msrb.mxu1 %v4486_v32  ;;  %v4545_v32 = vld [vmem:[%s7708_s5 + $0x128] sm:$0xff] }
 0x518   :  { %3240 = vmatpush.msrb.mxu0 %v6927_v44 }
 0x519   :  { %4433 = vmatmul.msk.f32.gmra.mxu1 %vm2596_vm4, %v4425_v5 }
 0x51a   :  { %3241 = vmatpush.msrb.mxu0 %v6934_v53  ;;  %3002 = vmatpush.msrb.mxu1 %v4485_v4 }
 0x51b   :  { %4417 = vmatmul.msk.f32.gmra.mxu0 %vm2596_vm4, %v2592_v43  ;;  %v4499_v43 = vld [vmem:[%s7709_s8 + $0xe0] sm:$0xff] }
 0x51c   :  { %3242 = vmatpush.msrb.mxu0 %v6943_v24  ;;  %3003 = vmatpush.msrb.mxu1 %v4484_v12 }
 0x51e   :  { %3243 = vmatpush.msrb.mxu0 %v6952_v1  ;;  %3004 = vmatpush.msrb.mxu1 %v4483_v55 }
 0x520   :  { %3244 = vmatpush.msrb.mxu0 %v6961_v10  ;;  %3005 = vmatpush.msrb.mxu1 %v4482_v35 }
 0x521   :  { %4434 = vmatmul.msk.f32.gmra.mxu1 %vm2596_vm4, %v4426_v46 }
 0x522   :  { %3245 = vmatpush.msrb.mxu0 %v6970_v7  ;;  %3006 = vmatpush.msrb.mxu1 %v4481_v34 }
 0x523   :  { %4418 = vmatmul.msk.f32.gmra.mxu0 %vm2596_vm4, %v2593_v22  ;;  %v4535_v22 = vld [vmem:[%s7709_s8 + $0x138] sm:$0xff] }
 0x524   :  { %3246 = vmatpush.msrb.mxu0 %v2578_v33  ;;  %3007 = vmatpush.msrb.mxu1 %v4480_v45 }
 0x526   :  { %3247 = vmatpush.msrb.mxu0 %v2577_v16  ;;  %3008 = vmatpush.msrb.mxu1 %v4479_v31  ;;  %v4531_v16 = vld [vmem:[%s7709_s8 + $0x118] sm:$0xff] }
 0x528   :  { %3248 = vmatpush.msrb.mxu0 %v2576_v29  ;;  %3009 = vmatpush.msrb.mxu1 %v4478_v56 }
 0x529   :  { %4435 = vmatmul.msk.f32.gmra.mxu1 %vm2596_vm4, %v4427_v51  ;;  %v4500_v51 = vld [vmem:[%s7709_s8 + $0xe8] sm:$0xff] }
 0x52a   :  { %3315 = vmatpush.msra.mxu1 %v4552_v54 }
 0x52b   :  { %4419 = vmatmul.msk.f32.gmra.mxu0 %vm2596_vm4, %v2594_v15 }
 0x531   :  { %4436 = vmatmul.msk.f32.gmra.mxu1 %vm2596_vm4, %v4428_v39  ;;  %v4501_v39 = vld [vmem:[%s7709_s8 + $0xf0] sm:$0xff] }
 0x533   :  { %4420 = vmatmul.msk.f32.gmra.mxu0 %vm2596_vm4, %v2595_v41 }
 0x53b   :  { %4470 = vmatmul.msk.f32.vlgmr.msra.gmra.mxu0 %vm2596_vm4, %v4462_v58  ;;  %v4502_v58 = vld [vmem:[%s7709_s8 + $0xf8] sm:$0xff] }
 0x543   :  { %4471 = vmatmul.msk.f32.gmra.mxu0 %vm2596_vm4, %v4463_v18 }
 0x54b   :  { %4472 = vmatmul.msk.f32.gmra.mxu0 %vm2596_vm4, %v4464_v25 }
 0x553   :  { %4473 = vmatmul.msk.f32.gmra.mxu0 %vm2596_vm4, %v4465_v6  ;;  %v4516_v6 = vld [vmem:[%s7708_s5 + $0x100] sm:$0xff] }
 0x554   :  { %3161 = vmatpush.msra.mxu3 %v4516_v6 }
 0x556   :  { %3162 = vmatpush.msra.mxu3 %v4515_v17 }
 0x558   :  { %3163 = vmatpush.msra.mxu3 %v4514_v40 }
 0x55b   :  { %4474 = vmatmul.msk.f32.gmra.mxu0 %vm2596_vm4, %v4466_v23  ;;  %v4551_v23 = vld [vmem:[%s7708_s5 + $0x158] sm:$0xff] }
 0x55c   :  { %3316 = vmatpush.msra.mxu1 %v4551_v23 }
 0x563   :  { %4475 = vmatmul.msk.f32.gmra.mxu0 %vm2596_vm4, %v4467_v27  ;;  %v4513_v27 = vld [vmem:[%s7708_s5 + $0xe8] sm:$0xff] }
 0x564   :  { %3164 = vmatpush.msra.mxu3 %v4513_v27 }
 0x56b   :  { %4476 = vmatmul.msk.f32.gmra.mxu0 %vm2596_vm4, %v4468_v63  ;;  %v4550_v63 = vld [vmem:[%s7708_s5 + $0x150] sm:$0xff] }
 0x56c   :  { %3317 = vmatpush.msra.mxu1 %v4550_v63 }
 0x573   :  { %4477 = vmatmul.msk.f32.gmra.mxu0 %vm2596_vm4, %v4469_v2  ;;  %v4512_v2 = vld [vmem:[%s7708_s5 + $0xe0] sm:$0xff] }
 0x574   :  { %3165 = vmatpush.msra.mxu3 %v4512_v2 }
 0x576   :  { %v2721_v38 = vpop.f32.mrf.mxu1 }
 0x577   :  { %4446 = vmatmul.msk.f32.vlgmr.msrb.gmra.mxu2 %vm2755_vm5, %v2721_v38  ;;  %v4549_v38 = vld [vmem:[%s7708_s5 + $0x148] sm:$0xff] }
 0x578   :  { %v2638_v28 = vpop.f32.mrf.mxu0  ;;  %3318 = vmatpush.msra.mxu1 %v4549_v38 }
 0x579   :  { %4454 = vmatmul.msk.f32.vlgmr.msrb.gmra.mxu3 %vm2755_vm5, %v2638_v28 }
 0x57b   :  { %4536 = vmatmul.msk.f32.vlgmr.msrb.gmra.mxu0 %vm2596_vm4, %v4528_v11 }
 0x57e   :  { %v2724_v48 = vpop.f32.mrf.mxu1 }
 0x57f   :  { %4447 = vmatmul.msk.f32.gmra.mxu2 %vm2755_vm5, %v2724_v48  ;;  %v4511_v48 = vld [vmem:[%s7708_s5 + $0xd8] sm:$0xff] }
 0x580   :  { %v2641_v57 = vpop.f32.mrf.mxu0  ;;  %3166 = vmatpush.msra.mxu3 %v4511_v48  ;;  %v3381_v48 = vld [vmem:[%s7711_s7 + $0x20] sm:$0xff] }
 0x581   :  { %4455 = vmatmul.msk.f32.gmra.mxu3 %vm2755_vm5, %v2641_v57  ;;  %v4548_v57 = vld [vmem:[%s7708_s5 + $0x140] sm:$0xff] }
 0x582   :  { %3319 = vmatpush.msra.mxu1 %v4548_v57  ;;  %v4565_v57 = vld [vmem:[%s7711_s7 + $0xa0] sm:$0xff] }
 0x583   :  { %4537 = vmatmul.msk.f32.gmra.mxu0 %vm2596_vm4, %v4529_v42  ;;  %v4576_v42 = vld [vmem:[%s7711_s7 + $0xf8] sm:$0xff] }
 0x584   :  { %3451 = vmatpush.msrb.mxu3 %v4576_v42 }
 0x586   :  { %v2727_v36 = vpop.f32.mrf.mxu1 }
 0x587   :  { %4448 = vmatmul.msk.f32.gmra.mxu2 %vm2755_vm5, %v2727_v36  ;;  %v4547_v36 = vld [vmem:[%s7708_s5 + $0x138] sm:$0xff] }
 0x588   :  { %v2644_v37 = vpop.f32.mrf.mxu0  ;;  %3320 = vmatpush.msra.mxu1 %v4547_v36 }
 0x589   :  { %4456 = vmatmul.msk.f32.gmra.mxu3 %vm2755_vm5, %v2644_v37  ;;  %v4546_v37 = vld [vmem:[%s7708_s5 + $0x130] sm:$0xff] }
 0x58a   :  { %3321 = vmatpush.msra.mxu1 %v4546_v37  ;;  %v3380_v37 = vld [vmem:[%s7711_s7 + $0x18] sm:$0xff] }
 0x58b   :  { %4538 = vmatmul.msk.f32.gmra.mxu0 %vm2596_vm4, %v4530_v9  ;;  %v3390_v9 = vld [vmem:[%s7711_s7 + $0x68] sm:$0xff] }
 0x58c   :  { %3322 = vmatpush.msra.mxu1 %v4545_v32  ;;  %v4564_v32 = vld [vmem:[%s7711_s7 + $0x98] sm:$0xff] }
 0x58e   :  { %v2730_v44 = vpop.f32.mrf.mxu1 }
 0x58f   :  { %4449 = vmatmul.msk.f32.gmra.mxu2 %vm2755_vm5, %v2730_v44  ;;  %v4544_v44 = vld [vmem:[%s7708_s5 + $0x120] sm:$0xff] }
 0x590   :  { %v2647_v53 = vpop.f32.mrf.mxu0  ;;  %3323 = vmatpush.msra.mxu1 %v4544_v44  ;;  %v4563_v44 = vld [vmem:[%s7711_s7 + $0x90] sm:$0xff] }
 0x591   :  { %4457 = vmatmul.msk.f32.gmra.mxu3 %vm2755_vm5, %v2647_v53 }
 0x593   :  { %4539 = vmatmul.msk.f32.gmra.mxu0 %vm2596_vm4, %v4531_v16  ;;  %v4573_v16 = vld [vmem:[%s7711_s7 + $0xe0] sm:$0xff] }
 0x596   :  { %v2733_v24 = vpop.f32.mrf.mxu1 }
 0x597   :  { %4450 = vmatmul.msk.f32.gmra.mxu2 %vm2755_vm5, %v2733_v24 }
 0x598   :  { %v2650_v1 = vpop.f32.mrf.mxu0 }
 0x599   :  { %4458 = vmatmul.msk.f32.gmra.mxu3 %vm2755_vm5, %v2650_v1 }
 0x59b   :  { %4540 = vmatmul.msk.f32.gmra.mxu0 %vm2596_vm4, %v4532_v49  ;;  %v3388_v49 = vld [vmem:[%s7711_s7 + $0x58] sm:$0xff] }
 0x59e   :  { %v2736_v61 = vpop.f32.mrf.mxu1 }
 0x59f   :  { %4451 = vmatmul.msk.f32.gmra.mxu2 %vm2755_vm5, %v2736_v61 }
 0x5a0   :  { %v2653_v10 = vpop.f32.mrf.mxu0 }
 0x5a1   :  { %4459 = vmatmul.msk.f32.gmra.mxu3 %vm2755_vm5, %v2653_v10 }
 0x5a3   :  { %4541 = vmatmul.msk.f32.gmra.mxu0 %vm2596_vm4, %v4533_v8  ;;  %v4571_v8 = vld [vmem:[%s7711_s7 + $0xd0] sm:$0xff] }
 0x5a6   :  { %v2739_v13 = vpop.f32.mrf.mxu1 }
 0x5a7   :  { %4452 = vmatmul.msk.f32.gmra.mxu2 %vm2755_vm5, %v2739_v13  ;;  %v3392_v13 = vld [vmem:[%s7711_s7 + $0x78] sm:$0xff] }
 0x5a8   :  { %v2656_v7 = vpop.f32.mrf.mxu0  ;;  %3393 = vmatpush.msrb.mxu2 %v3392_v13 }
 0x5a9   :  { %4460 = vmatmul.msk.f32.gmra.mxu3 %vm2755_vm5, %v2656_v7  ;;  %v3391_v7 = vld [vmem:[%s7711_s7 + $0x70] sm:$0xff] }
 0x5aa   :  { %3394 = vmatpush.msrb.mxu2 %v3391_v7 }
 0x5ab   :  { %4542 = vmatmul.msk.f32.gmra.mxu0 %vm2596_vm4, %v4534_v3  ;;  %v3385_v3 = vld [vmem:[%s7711_s7 + $0x40] sm:$0xff] }
 0x5ac   :  { %3395 = vmatpush.msrb.mxu2 %v3390_v9 }
 0x5ae   :  { %v2742_v52 = vpop.f32.mrf.mxu1 }
 0x5af   :  { %4453 = vmatmul.msk.f32.gmra.mxu2 %vm2755_vm5, %v2742_v52  ;;  %v4575_v52 = vld [vmem:[%s7711_s7 + $0xf0] sm:$0xff] }
 0x5b0   :  { %v2659_v33 = vpop.f32.mrf.mxu0  ;;  %3452 = vmatpush.msrb.mxu3 %v4575_v52  ;;  %v7440_v52 = vld [vmem:[%s7710_s6] ss:$0 sm:$0xff] }
 0x5b1   :  { %4461 = vmatmul.msk.f32.gmra.mxu3 %vm2755_vm5, %v2659_v33  ;;  %v4574_v33 = vld [vmem:[%s7711_s7 + $0xe8] sm:$0xff] }
 0x5b2   :  { %3453 = vmatpush.msrb.mxu3 %v4574_v33 }
 0x5b3   :  { %4543 = vmatmul.msk.f32.gmra.mxu0 %vm2596_vm4, %v4535_v22  ;;  %v3384_v22 = vld [vmem:[%s7711_s7 + $0x38] sm:$0xff] }
 0x5b4   :  { %3454 = vmatpush.msrb.mxu3 %v4573_v16 }
 0x5b7   :  { %4503 = vmatmul.msk.f32.vlgmr.msra.gmra.mxu2 %vm2596_vm4, %v4495_v26  ;;  %v3389_v26 = vld [vmem:[%s7711_s7 + $0x60] sm:$0xff] }
 0x5b8   :  { %v2936_v29 = vpop.f32.mrf.mxu0  ;;  %3396 = vmatpush.msrb.mxu2 %v3389_v26 }
 0x5b9   :  { %4487 = vmatmul.msk.f32.vlgmr.msrb.gmra.mxu1 %vm2755_vm5, %v2936_v29 }
 0x5ba   :  { %3397 = vmatpush.msrb.mxu2 %v3388_v49 }
 0x5bf   :  { %4504 = vmatmul.msk.f32.gmra.mxu2 %vm2596_vm4, %v4496_v30 }
 0x5c0   :  { %v2939_v47 = vpop.f32.mrf.mxu0 }
 0x5c1   :  { %4488 = vmatmul.msk.f32.gmra.mxu1 %vm2755_vm5, %v2939_v47  ;;  %v4572_v47 = vld [vmem:[%s7711_s7 + $0xd8] sm:$0xff] }
 0x5c2   :  { %3455 = vmatpush.msrb.mxu3 %v4572_v47 }
 0x5c4   :  { %3456 = vmatpush.msrb.mxu3 %v4571_v8 }
 0x5c7   :  { %4505 = vmatmul.msk.f32.gmra.mxu2 %vm2596_vm4, %v4497_v20  ;;  %v3387_v20 = vld [vmem:[%s7711_s7 + $0x50] sm:$0xff] }
 0x5c8   :  { %v2942_v21 = vpop.f32.mrf.mxu0  ;;  %3398 = vmatpush.msrb.mxu2 %v3387_v20 }
 0x5c9   :  { %4489 = vmatmul.msk.f32.gmra.mxu1 %vm2755_vm5, %v2942_v21  ;;  %v3386_v21 = vld [vmem:[%s7711_s7 + $0x48] sm:$0xff] }
 0x5ca   :  { %3399 = vmatpush.msrb.mxu2 %v3386_v21 }
 0x5cc   :  { %3400 = vmatpush.msrb.mxu2 %v3385_v3 }
 0x5ce   :  { %3401 = vmatpush.msrb.mxu2 %v3384_v22 }
 0x5cf   :  { %4506 = vmatmul.msk.f32.gmra.mxu2 %vm2596_vm4, %v4498_v59  ;;  %v4570_v59 = vld [vmem:[%s7711_s7 + $0xc8] sm:$0xff] }
 0x5d0   :  { %v2945_v5 = vpop.f32.mrf.mxu0  ;;  %3457 = vmatpush.msrb.mxu3 %v4570_v59 }
 0x5d1   :  { %4490 = vmatmul.msk.f32.gmra.mxu1 %vm2755_vm5, %v2945_v5  ;;  %v4569_v5 = vld [vmem:[%s7711_s7 + $0xc0] sm:$0xff] }
 0x5d2   :  { %3458 = vmatpush.msrb.mxu3 %v4569_v5 }
 0x5d7   :  { %4507 = vmatmul.msk.f32.gmra.mxu2 %vm2596_vm4, %v4499_v43 }
 0x5d8   :  { %v2948_v46 = vpop.f32.mrf.mxu0 }
 0x5d9   :  { %4491 = vmatmul.msk.f32.gmra.mxu1 %vm2755_vm5, %v2948_v46 }
 0x5df   :  { %4508 = vmatmul.msk.f32.gmra.mxu2 %vm2596_vm4, %v4500_v51  ;;  %v4568_v51 = vld [vmem:[%s7711_s7 + $0xb8] sm:$0xff] }
 0x5e0   :  { %v2951_v15 = vpop.f32.mrf.mxu0  ;;  %3459 = vmatpush.msrb.mxu3 %v4568_v51 }
 0x5e1   :  { %4492 = vmatmul.msk.f32.gmra.mxu1 %vm2755_vm5, %v2951_v15  ;;  %v3383_v15 = vld [vmem:[%s7711_s7 + $0x30] sm:$0xff] }
 0x5e2   :  { %3402 = vmatpush.msrb.mxu2 %v3383_v15 }
 0x5e7   :  { %4509 = vmatmul.msk.f32.gmra.mxu2 %vm2596_vm4, %v4501_v39  ;;  %v4567_v39 = vld [vmem:[%s7711_s7 + $0xb0] sm:$0xff] }
 0x5e8   :  { %v2954_v41 = vpop.f32.mrf.mxu0  ;;  %3460 = vmatpush.msrb.mxu3 %v4567_v39 }
 0x5e9   :  { %4493 = vmatmul.msk.f32.gmra.mxu1 %vm2755_vm5, %v2954_v41  ;;  %v3382_v41 = vld [vmem:[%s7711_s7 + $0x28] sm:$0xff] }
 0x5ea   :  { %3403 = vmatpush.msrb.mxu2 %v3382_v41 }
 0x5ec   :  { %3404 = vmatpush.msrb.mxu2 %v3381_v48 }
 0x5ee   :  { %3405 = vmatpush.msrb.mxu2 %v3380_v37 }
 0x5ef   :  { %4510 = vmatmul.msk.f32.gmra.mxu2 %vm2596_vm4, %v4502_v58  ;;  %v4566_v58 = vld [vmem:[%s7711_s7 + $0xa8] sm:$0xff] }
 0x5f0   :  { %v2957_v18 = vpop.f32.mrf.mxu0  ;;  %3461 = vmatpush.msrb.mxu3 %v4566_v58 }
 0x5f1   :  { %4494 = vmatmul.msk.f32.gmra.mxu1 %vm2755_vm5, %v2957_v18 }
 0x5f2   :  { %3462 = vmatpush.msrb.mxu3 %v4565_v57 }
 0x5f4   :  { %3463 = vmatpush.msrb.mxu3 %v4564_v32 }
 0x5f6   :  { %3464 = vmatpush.msrb.mxu3 %v4563_v44 }
 0x5f8   :  { %v3250_v12 = vpop.f32.mrf.mxu0 }
 0x5f9   :  { %4553 = vmatmul.msk.f32.vlgmr.msra.gmra.mxu1 %vm2755_vm5, %v3250_v12  ;;  %v3379_v12 = vld [vmem:[%s7711_s7 + $0x10] sm:$0xff] }
 0x5fa   :  { %v7240_v60 = vpop.f32.mrf.mxu2  ;;  %3406 = vmatpush.msrb.mxu2 %v3379_v12 }
 0x5fc   :  { %v2862_v19 = vpop.f32.mrf.mxu3 }
 0x600   :  { %v3253_v35 = vpop.f32.mrf.mxu0 }
 0x601   :  { %4554 = vmatmul.msk.f32.gmra.mxu1 %vm2755_vm5, %v3253_v35  ;;  %v3378_v35 = vld [vmem:[%s7711_s7 + $0x8] sm:$0xff] }
 0x602   :  { %v7242_v25 = vpop.f32.mrf.mxu2  ;;  %3407 = vmatpush.msrb.mxu2 %v3378_v35 }
 0x604   :  { %v2865_v17 = vpop.f32.mrf.mxu3 }
 0x605   :  { %v2866_v33 = vadd.f32 %v2865_v17, %v7242_v25 }
 0x608   :  { %v3256_v34 = vpop.f32.mrf.mxu0 }
 0x609   :  { %4555 = vmatmul.msk.f32.gmra.mxu1 %vm2755_vm5, %v3256_v34  ;;  %v4562_v34 = vld [vmem:[%s7711_s7 + $0x88] sm:$0xff] }
 0x60a   :  { %v7244_v62 = vpop.f32.mrf.mxu2  ;;  %3465 = vmatpush.msrb.mxu3 %v4562_v34 }
 0x60c   :  { %v2868_v40 = vpop.f32.mrf.mxu3 }
 0x60d   :  { %v2869_v20 = vadd.f32 %v2868_v40, %v7244_v62 }
 0x610   :  { %v3259_v24 = vpop.f32.mrf.mxu0 }
 0x611   :  { %4556 = vmatmul.msk.f32.gmra.mxu1 %vm2755_vm5, %v3259_v24  ;;  %v4561_v24 = vld [vmem:[%s7711_s7 + $0x80] sm:$0xff] }
 0x612   :  { %v7258_v50 = vpop.f32.mrf.mxu2  ;;  %3466 = vmatpush.msrb.mxu3 %v4561_v24 }
 0x614   :  { %v2871_v27 = vpop.f32.mrf.mxu3 }
 0x618   :  { %v3262_v56 = vpop.f32.mrf.mxu0 }
 0x619   :  { %4557 = vmatmul.msk.f32.gmra.mxu1 %vm2755_vm5, %v3262_v56 }
 0x61a   :  { %v7284_v28 = vpop.f32.mrf.mxu2 }
 0x61c   :  { %v7396_v2 = vpop.f32.mrf.mxu3 }
 0x620   :  { %v3265_v61 = vpop.f32.mrf.mxu0 }
 0x621   :  { %4558 = vmatmul.msk.f32.gmra.mxu1 %vm2755_vm5, %v3265_v61 }
 0x622   :  { %v7301_v4 = vpop.f32.mrf.mxu2 }
 0x624   :  { %v7406_v36 = vpop.f32.mrf.mxu3 }
 0x625   :  { %v2878_v40 = vadd.f32 %v7406_v36, %v7301_v4 }
 0x628   :  { %v3268_v10 = vpop.f32.mrf.mxu0 }
 0x629   :  { %4559 = vmatmul.msk.f32.gmra.mxu1 %vm2755_vm5, %v3268_v10  ;;  %v2863_v10 = vadd.f32 %v2862_v19, %v7240_v60 }
 0x62a   :  { %v7307_v55 = vpop.f32.mrf.mxu2 }
 0x62c   :  { %v2880_v56 = vpop.f32.mrf.mxu3 }
 0x62d   :  { %v2881_v37 = vadd.f32 %v2880_v56, %v7307_v55 }
 0x630   :  { %v3271_v30 = vpop.f32.mrf.mxu0 }
 0x631   :  { %4560 = vmatmul.msk.f32.gmra.mxu1 %vm2755_vm5, %v3271_v30 }
 0x632   :  { %v7310_v53 = vpop.f32.mrf.mxu2 }
 0x634   :  { %v7434_v61 = vpop.f32.mrf.mxu3 }
 0x636   :  { %v3011_v46 = vpop.f32.mrf.mxu1 }
 0x637   :  { %v3035_v13 = vadd.f32 %v3011_v46, %v2863_v10  ;;  %v2872_v46 = vadd.f32 %v2871_v27, %v7258_v50 }
 0x63a   :  { %v3093_v45 = vpop.f32.mrf.mxu2 }
 0x63b   :  { %4520 = vmatmul.msk.f32.vlgmr.msra.gmra.mxu3 %vm2755_vm5, %v3093_v45  ;;  %v3377_v45 = vld [vmem:[%s7711_s7] sm:$0xff] }
 0x63c   :  { %3408 = vmatpush.msrb.mxu2 %v3377_v45 }
 0x63e   :  { %v3014_v14 = vpop.f32.mrf.mxu1 }
 0x642   :  { %v3096_v31 = vpop.f32.mrf.mxu2 }
 0x643   :  { %4521 = vmatmul.msk.f32.gmra.mxu3 %vm2755_vm5, %v3096_v31 }
 0x646   :  { %v3017_v6 = vpop.f32.mrf.mxu1 }
 0x647   :  { %v3037_v21 = vadd.f32 %v3017_v6, %v2869_v20 }
 0x64a   :  { %v3099_v1 = vpop.f32.mrf.mxu2 }
 0x64b   :  { %4522 = vmatmul.msk.f32.gmra.mxu3 %vm2755_vm5, %v3099_v1 }
 0x64e   :  { %v3020_v54 = vpop.f32.mrf.mxu1 }
 0x64f   :  { %v3038_v51 = vadd.f32 %v3020_v54, %v2872_v46 }
 0x652   :  { %v3102_v11 = vpop.f32.mrf.mxu2 }
 0x653   :  { %4523 = vmatmul.msk.f32.gmra.mxu3 %vm2755_vm5, %v3102_v11 }
 0x656   :  { %v7392_v23 = vpop.f32.mrf.mxu1 }
 0x65a   :  { %v3105_v29 = vpop.f32.mrf.mxu2 }
 0x65b   :  { %4524 = vmatmul.msk.f32.gmra.mxu3 %vm2755_vm5, %v3105_v29  ;;  %v3036_v29 = vadd.f32 %v3014_v14, %v2866_v33 }
 0x65e   :  { %v7394_v63 = vpop.f32.mrf.mxu1 }
 0x65f   :  { %v3040_v48 = vadd.f32 %v7394_v63, %v2878_v40  ;;  %v2884_v63 = vadd.f32 %v7434_v61, %v7310_v53 }
 0x662   :  { %v3108_v43 = vpop.f32.mrf.mxu2 }
 0x663   :  { %4525 = vmatmul.msk.f32.gmra.mxu3 %vm2755_vm5, %v3108_v43 }
 0x666   :  { %v7398_v38 = vpop.f32.mrf.mxu1 }
 0x667   :  { %v3041_v44 = vadd.f32 %v7398_v38, %v2881_v37  ;;  %v4599_v37 = vld [vmem:[%s7714_s11 + $0x78] sm:$0xff] }
 0x66a   :  { %v3111_v18 = vpop.f32.mrf.mxu2 }
 0x66b   :  { %4526 = vmatmul.msk.f32.gmra.mxu3 %vm2755_vm5, %v3111_v18  ;;  %v2875_v18 = vadd.f32 %v7396_v2, %v7284_v28 }
 0x66d   :  { %v3039_v19 = vadd.f32 %v7392_v23, %v2875_v18  ;;  %v4584_v18 = vld [vmem:[%s7712_s9 + $0x38] sm:$0xff] }
 0x66e   :  { %v7432_v31 = vpop.f32.mrf.mxu1 }
 0x66f   :  { %v3042_v24 = vadd.f32 %v7432_v31, %v2884_v63  ;;  %v4595_v63 = vld [vmem:[%s7714_s11 + $0x58] sm:$0xff] }
 0x672   :  { %v3114_v0 = vpop.f32.mrf.mxu2 }
 0x673   :  { %4527 = vmatmul.msk.f32.gmra.mxu3 %vm2755_vm5, %v3114_v0 }
 0x676   :  { %v3325_v1 = vpop.f32.mrf.mxu1 }
 0x67e   :  { %v3328_v11 = vpop.f32.mrf.mxu1 }
 0x686   :  { %v3331_v16 = vpop.f32.mrf.mxu1 }
 0x68e   :  { %v3334_v5 = vpop.f32.mrf.mxu1 }
 0x696   :  { %v3337_v62 = vpop.f32.mrf.mxu1 }
 0x69e   :  { %v3340_v54 = vpop.f32.mrf.mxu1 }
 0x6a6   :  { %v3343_v12 = vpop.f32.mrf.mxu1 }
 0x6ae   :  { %v3346_v56 = vpop.f32.mrf.mxu1 }
 0x6be   :  { %v3168_v42 = vpop.f32.mrf.mxu3 }
 0x6bf   :  { %v3192_v7 = vadd.f32 %v3168_v42, %v3035_v13 }
 0x6c1   :  { %v3349_v9 = vadd.f32 %v3325_v1, %v3192_v7 }
 0x6c3   :  { %v3361_v26 = vadd.f32 %v7440_v52, %v3349_v9 }
 0x6c5   :  { %v3369_v30 = vmax.f32 %v3361_v26, 0.0 }
 0x6c6   :  { %v3171_v49 = vpop.f32.mrf.mxu3 }
 0x6c7   :  { %v3193_v47 = vadd.f32 %v3171_v49, %v3036_v29  ;;  %3409 = vmatmul.f32.vlgmr.msrb.gmra.mxu2 %v3369_v30  ;;  %3467 = vmatmul.f32.vlgmr.msrb.gmra.mxu3 %v3369_v30 }
 0x6c9   :  { %v3350_v60 = vadd.f32 %v3328_v11, %v3193_v47 }
 0x6cb   :  { %v3362_v8 = vadd.f32 %v7440_v52, %v3350_v60 }
 0x6cd   :  { %v3370_v59 = vmax.f32 %v3362_v8, 0.0 }
 0x6ce   :  { %v3174_v3 = vpop.f32.mrf.mxu3 }
 0x6cf   :  { %v3194_v43 = vadd.f32 %v3174_v3, %v3037_v21  ;;  %3412 = vmatmul.f32.gmra.mxu2 %v3370_v59  ;;  %3470 = vmatmul.f32.gmra.mxu3 %v3370_v59 }
 0x6d1   :  { %v3351_v25 = vadd.f32 %v3331_v16, %v3194_v43 }
 0x6d3   :  { %v3363_v22 = vadd.f32 %v7440_v52, %v3351_v25 }
 0x6d5   :  { %v3371_v15 = vmax.f32 %v3363_v22, 0.0  ;;  %v3500_v22 = vld [vmem:[%s7712_s9] sm:$0xff] }
 0x6d6   :  { %v3177_v39 = vpop.f32.mrf.mxu3 }
 0x6d7   :  { %v3195_v41 = vadd.f32 %v3177_v39, %v3038_v51  ;;  %3415 = vmatmul.f32.gmra.mxu2 %v3371_v15  ;;  %3473 = vmatmul.f32.gmra.mxu3 %v3371_v15  ;;  %v4581_v51 = vld [vmem:[%s7712_s9 + $0x20] sm:$0xff]  ;;  %v3501_v15 = vld [vmem:[%s7712_s9 + $0x8] sm:$0xff] }
 0x6d8   :  { %v4582_v39 = vld [vmem:[%s7712_s9 + $0x28] sm:$0xff] }
 0x6d9   :  { %v3352_v58 = vadd.f32 %v3334_v5, %v3195_v41  ;;  %v3502_v41 = vld [vmem:[%s7712_s9 + $0x10] sm:$0xff] }
 0x6db   :  { %v3364_v14 = vadd.f32 %v7440_v52, %v3352_v58  ;;  %v3503_v58 = vld [vmem:[%s7712_s9 + $0x18] sm:$0xff] }
 0x6dd   :  { %v3372_v0 = vmax.f32 %v3364_v14, 0.0 }
 0x6de   :  { %v3180_v6 = vpop.f32.mrf.mxu3 }
 0x6df   :  { %v3196_v50 = vadd.f32 %v3180_v6, %v3039_v19  ;;  %3418 = vmatmul.f32.gmra.mxu2 %v3372_v0  ;;  %3476 = vmatmul.f32.gmra.mxu3 %v3372_v0 }
 0x6e1   :  { %v3353_v17 = vadd.f32 %v3337_v62, %v3196_v50  ;;  %v4583_v62 = vld [vmem:[%s7712_s9 + $0x30] sm:$0xff] }
 0x6e3   :  { %v3365_v27 = vadd.f32 %v7440_v52, %v3353_v17 }
 0x6e5   :  { %v3373_v57 = vmax.f32 %v3365_v27, 0.0 }
 0x6e6   :  { %v3183_v28 = vpop.f32.mrf.mxu3 }
 0x6e7   :  { %v3197_v2 = vadd.f32 %v3183_v28, %v3040_v48  ;;  %3421 = vmatmul.f32.gmra.mxu2 %v3373_v57  ;;  %3479 = vmatmul.f32.gmra.mxu3 %v3373_v57 }
 0x6e9   :  { %v3354_v23 = vadd.f32 %v3340_v54, %v3197_v2  ;;  %v4590_v2 = vld [vmem:[%s7713_s10 + $0x8] sm:$0xff] }
 0x6eb   :  { %v3366_v32 = vadd.f32 %v7440_v52, %v3354_v23  ;;  %v3595_v23 = vld [vmem:[%s7713_s10] sm:$0xff] }
 0x6ed   :  { %v3374_v35 = vmax.f32 %v3366_v32, 0.0  ;;  %v3627_v32 = vld [vmem:[%s7714_s11 + $0x38] sm:$0xff] }
 0x6ee   :  { %v3186_v34 = vpop.f32.mrf.mxu3 }
 0x6ef   :  { %v3198_v4 = vadd.f32 %v3186_v34, %v3041_v44  ;;  %3424 = vmatmul.f32.gmra.mxu2 %v3374_v35  ;;  %3482 = vmatmul.f32.gmra.mxu3 %v3374_v35  ;;  %v3626_v44 = vld [vmem:[%s7714_s11 + $0x30] sm:$0xff]  ;;  %v4597_v35 = vld [vmem:[%s7714_s11 + $0x68] sm:$0xff] }
 0x6f0   :  { %v3625_v34 = vld [vmem:[%s7714_s11 + $0x28] sm:$0xff] }
 0x6f1   :  { %v3355_v36 = vadd.f32 %v3343_v12, %v3198_v4  ;;  %v4598_v12 = vld [vmem:[%s7714_s11 + $0x70] sm:$0xff]  ;;  %v4596_v4 = vld [vmem:[%s7714_s11 + $0x60] sm:$0xff] }
 0x6f3   :  { %v3367_v45 = vadd.f32 %v7440_v52, %v3355_v36  ;;  %v3624_v36 = vld [vmem:[%s7714_s11 + $0x20] sm:$0xff] }
 0x6f5   :  { %v3375_v1 = vmax.f32 %v3367_v45, 0.0  ;;  %v3623_v45 = vld [vmem:[%s7714_s11 + $0x18] sm:$0xff] }
 0x6f6   :  { %v3189_v55 = vpop.f32.mrf.mxu3 }
 0x6f7   :  { %v3199_v11 = vadd.f32 %v3189_v55, %v3042_v24  ;;  %3427 = vmatmul.f32.gmra.mxu2 %v3375_v1  ;;  %3485 = vmatmul.f32.gmra.mxu3 %v3375_v1  ;;  %v4594_v24 = vld [vmem:[%s7714_s11 + $0x50] sm:$0xff]  ;;  %v4593_v55 = vld [vmem:[%s7714_s11 + $0x48] sm:$0xff] }
 0x6f8   :  { %v3622_v1 = vld [vmem:[%s7714_s11 + $0x10] sm:$0xff] }
 0x6f9   :  { %v3356_v38 = vadd.f32 %v3346_v56, %v3199_v11  ;;  %v3621_v56 = vld [vmem:[%s7714_s11 + $0x8] sm:$0xff]  ;;  %v4592_v11 = vld [vmem:[%s7714_s11 + $0x40] sm:$0xff] }
 0x6fb   :  { %v3368_v10 = vadd.f32 %v7440_v52, %v3356_v38  ;;  %v3620_v38 = vld [vmem:[%s7714_s11] sm:$0xff] }
 0x6fd   :  { %v3376_v13 = vmax.f32 %v3368_v10, 0.0  ;;  %v4611_v10 = vld [vmem:[%s7714_s11 + $0xb8] sm:$0xff] }
 0x6ff   :  { %3430 = vmatmul.f32.gmra.mxu2 %v3376_v13  ;;  %3488 = vmatmul.f32.gmra.mxu3 %v3376_v13  ;;  %v4610_v13 = vld [vmem:[%s7714_s11 + $0xb0] sm:$0xff] }
 0x74a   :  { %v3410_v42 = vpop.f32.mrf.mxu2  ;;  %v3468_v7 = vpop.f32.mrf.mxu3 }
 0x74b   :  { %v3492_v9 = vmax.f32 %v3410_v42, %v3468_v7  ;;  %v4622_v42 = vld [vmem:[%s7714_s11 + $0xf8] sm:$0xff]  ;;  %v4621_v7 = vld [vmem:[%s7714_s11 + $0xf0] sm:$0xff] }
 0x752   :  { %v3413_v53 = vpop.f32.mrf.mxu2  ;;  %v3471_v61 = vpop.f32.mrf.mxu3 }
 0x753   :  { %v3493_v46 = vmax.f32 %v3413_v53, %v3471_v61 }
 0x75a   :  { %v3416_v33 = vpop.f32.mrf.mxu2  ;;  %v3474_v26 = vpop.f32.mrf.mxu3 }
 0x75b   :  { %v3494_v25 = vmax.f32 %v3416_v33, %v3474_v26  ;;  %v4602_v33 = vld [vmem:[%s7713_s10 + $0x10] sm:$0xff]  ;;  %v4613_v26 = vld [vmem:[%s7713_s10 + $0x18] sm:$0xff] }
 0x762   :  { %v3419_v31 = vpop.f32.mrf.mxu2  ;;  %v3477_v16 = vpop.f32.mrf.mxu3 }
 0x763   :  { %v3495_v43 = vmax.f32 %v3419_v31, %v3477_v16  ;;  %v4608_v31 = vld [vmem:[%s7714_s11 + $0xa0] sm:$0xff]  ;;  %v4620_v16 = vld [vmem:[%s7714_s11 + $0xe8] sm:$0xff] }
 0x76a   :  { %v3422_v29 = vpop.f32.mrf.mxu2  ;;  %v3480_v30 = vpop.f32.mrf.mxu3 }
 0x76b   :  { %v3496_v5 = vmax.f32 %v3422_v29, %v3480_v30  ;;  %v4607_v29 = vld [vmem:[%s7714_s11 + $0x98] sm:$0xff]  ;;  %v4619_v30 = vld [vmem:[%s7714_s11 + $0xe0] sm:$0xff] }
 0x772   :  { %v3425_v49 = vpop.f32.mrf.mxu2  ;;  %v3483_v47 = vpop.f32.mrf.mxu3 }
 0x773   :  { %v3497_v3 = vmax.f32 %v3425_v49, %v3483_v47  ;;  %v4606_v49 = vld [vmem:[%s7714_s11 + $0x90] sm:$0xff]  ;;  %v4618_v47 = vld [vmem:[%s7714_s11 + $0xd8] sm:$0xff] }
 0x77a   :  { %v3428_v60 = vpop.f32.mrf.mxu2  ;;  %v3486_v20 = vpop.f32.mrf.mxu3 }
 0x77b   :  { %v3498_v59 = vmax.f32 %v3428_v60, %v3486_v20  ;;  %v4605_v60 = vld [vmem:[%s7714_s11 + $0x88] sm:$0xff]  ;;  %v4617_v20 = vld [vmem:[%s7714_s11 + $0xd0] sm:$0xff] }
 0x782   :  { %v3431_v8 = vpop.f32.mrf.mxu2  ;;  %v3489_v52 = vpop.f32.mrf.mxu3 }
 0x783   :  { %v3499_v21 = vmax.f32 %v3431_v8, %v3489_v52  ;;  %v4604_v8 = vld [vmem:[%s7714_s11 + $0x80] sm:$0xff]  ;;  %v4616_v52 = vld [vmem:[%s7714_s11 + $0xc8] sm:$0xff] }
 0x785   :  { %3524 = vmatpush.msra.mxu0 %v3499_v21  ;;  %3570 = vmatpush.msrb.mxu1 %v3499_v21  ;;  %v4615_v21 = vld [vmem:[%s7714_s11 + $0xc0] sm:$0xff] }
 0x787   :  { %3525 = vmatpush.msra.mxu0 %v3498_v59  ;;  %3571 = vmatpush.msrb.mxu1 %v3498_v59  ;;  %v3844_v59 = vld [vmem:[%s7715_s13 + $0x70] sm:$0xff] }
 0x789   :  { %3526 = vmatpush.msra.mxu0 %v3497_v3  ;;  %3572 = vmatpush.msrb.mxu1 %v3497_v3  ;;  %v3843_v3 = vld [vmem:[%s7715_s13 + $0x68] sm:$0xff] }
 0x78b   :  { %3527 = vmatpush.msra.mxu0 %v3496_v5  ;;  %3573 = vmatpush.msrb.mxu1 %v3496_v5  ;;  %v3842_v5 = vld [vmem:[%s7715_s13 + $0x60] sm:$0xff] }
 0x78d   :  { %3528 = vmatpush.msra.mxu0 %v3495_v43  ;;  %3574 = vmatpush.msrb.mxu1 %v3495_v43  ;;  %v3841_v43 = vld [vmem:[%s7715_s13 + $0x58] sm:$0xff] }
 0x78f   :  { %3529 = vmatpush.msra.mxu0 %v3494_v25  ;;  %3575 = vmatpush.msrb.mxu1 %v3494_v25  ;;  %v3840_v25 = vld [vmem:[%s7715_s13 + $0x50] sm:$0xff] }
 0x791   :  { %3530 = vmatpush.msra.mxu0 %v3493_v46  ;;  %3576 = vmatpush.msrb.mxu1 %v3493_v46  ;;  %v3839_v46 = vld [vmem:[%s7715_s13 + $0x48] sm:$0xff] }
 0x793   :  { %3531 = vmatpush.msra.mxu0 %v3492_v9  ;;  %3577 = vmatpush.msrb.mxu1 %v3492_v9  ;;  %v4609_v9 = vld [vmem:[%s7714_s11 + $0xa8] sm:$0xff] }
 0x794   :  { %4577 = vmatmul.msk.f32.vlgmr.msra.gmra.mxu0 %vm2266_vm3, %v3500_v22  ;;  %4585 = vmatmul.msk.f32.vlgmr.msrb.gmra.mxu1 %vm2266_vm3, %v4581_v51  ;;  %v3838_v22 = vld [vmem:[%s7715_s13 + $0x40] sm:$0xff]  ;;  %v3837_v51 = vld [vmem:[%s7715_s13 + $0x38] sm:$0xff] }
 0x795   :  { %3753 = vmatpush.msrb.mxu0 %v4611_v10  ;;  %3811 = vmatpush.msra.mxu1 %v4622_v42 }
 0x797   :  { %3754 = vmatpush.msrb.mxu0 %v4610_v13  ;;  %3812 = vmatpush.msra.mxu1 %v4621_v7 }
 0x799   :  { %3755 = vmatpush.msrb.mxu0 %v4609_v9  ;;  %3813 = vmatpush.msra.mxu1 %v4620_v16 }
 0x79b   :  { %3756 = vmatpush.msrb.mxu0 %v4608_v31  ;;  %3814 = vmatpush.msra.mxu1 %v4619_v30 }
 0x79c   :  { %4578 = vmatmul.msk.f32.gmra.mxu0 %vm2266_vm3, %v3501_v15  ;;  %4586 = vmatmul.msk.f32.gmra.mxu1 %vm2266_vm3, %v4582_v39  ;;  %v3836_v15 = vld [vmem:[%s7715_s13 + $0x30] sm:$0xff]  ;;  %v3835_v39 = vld [vmem:[%s7715_s13 + $0x28] sm:$0xff] }
 0x79d   :  { %3757 = vmatpush.msrb.mxu0 %v4607_v29  ;;  %3815 = vmatpush.msra.mxu1 %v4618_v47 }
 0x79f   :  { %3758 = vmatpush.msrb.mxu0 %v4606_v49  ;;  %3816 = vmatpush.msra.mxu1 %v4617_v20 }
 0x7a1   :  { %3759 = vmatpush.msrb.mxu0 %v4605_v60  ;;  %3817 = vmatpush.msra.mxu1 %v4616_v52 }
 0x7a3   :  { %3760 = vmatpush.msrb.mxu0 %v4604_v8  ;;  %3818 = vmatpush.msra.mxu1 %v4615_v21 }
 0x7a4   :  { %4579 = vmatmul.msk.f32.gmra.mxu0 %vm2266_vm3, %v3502_v41  ;;  %4587 = vmatmul.msk.f32.gmra.mxu1 %vm2266_vm3, %v4583_v62 }
 0x7ac   :  { %4580 = vmatmul.msk.f32.gmra.mxu0 %vm2266_vm3, %v3503_v58  ;;  %4588 = vmatmul.msk.f32.gmra.mxu1 %vm2266_vm3, %v4584_v18 }
 0x811   :  { %v3533_v14 = vpop.f32.mrf.mxu0  ;;  %v3579_v19 = vpop.f32.mrf.mxu1 }
 0x812   :  { %v3591_v28 = vmax.f32 %v3533_v14, %v3579_v19  ;;  %v3834_v19 = vld [vmem:[%s7715_s13 + $0x20] sm:$0xff] }
 0x819   :  { %v3536_v0 = vpop.f32.mrf.mxu0  ;;  %v3582_v6 = vpop.f32.mrf.mxu1 }
 0x81a   :  { %v3592_v57 = vmax.f32 %v3536_v0, %v3582_v6  ;;  %v3833_v0 = vld [vmem:[%s7715_s13 + $0x18] sm:$0xff]  ;;  %v3832_v6 = vld [vmem:[%s7715_s13 + $0x10] sm:$0xff] }
 0x821   :  { %v3539_v50 = vpop.f32.mrf.mxu0  ;;  %v3585_v17 = vpop.f32.mrf.mxu1 }
 0x822   :  { %v3593_v48 = vmax.f32 %v3539_v50, %v3585_v17  ;;  %v3831_v50 = vld [vmem:[%s7715_s13 + $0x8] sm:$0xff]  ;;  %v3830_v17 = vld [vmem:[%s7715_s13] sm:$0xff] }
 0x829   :  { %v3542_v54 = vpop.f32.mrf.mxu0  ;;  %v3588_v40 = vpop.f32.mrf.mxu1 }
 0x82a   :  { %v3594_v27 = vmax.f32 %v3542_v54, %v3588_v40  ;;  %v3884_v54 = vld [vmem:[%s7718_s15 + $0x50] sm:$0xf]  ;;  %v3883_v40 = vld [vmem:[%s7718_s15 + $0x48] sm:$0xff] }
 0x82c   :  { %3645 = vmatpush.msra.mxu3 %v3594_v27  ;;  %3612 = vmatpush.msra.mxu2 %v3594_v27 }
 0x82e   :  { %3646 = vmatpush.msra.mxu3 %v3593_v48  ;;  %3613 = vmatpush.msra.mxu2 %v3593_v48 }
 0x830   :  { %3647 = vmatpush.msra.mxu3 %v3592_v57  ;;  %3614 = vmatpush.msra.mxu2 %v3592_v57 }
 0x832   :  { %3648 = vmatpush.msra.mxu3 %v3591_v28  ;;  %3615 = vmatpush.msra.mxu2 %v3591_v28 }
 0x833   :  { %4591 = vmatmul.msk.f32.vlgmr.msra.gmra.mxu3 %vm3596_vm6, %v4590_v2  ;;  %4589 = vmatmul.msk.f32.vlgmr.msra.gmra.mxu2 %vm3596_vm6, %v3595_v23  ;;  %v3878_v2 = vld [vmem:[%s7718_s15 + $0x20] sm:$0xff]  ;;  %v3877_v23 = vld [vmem:[%s7718_s15 + $0x18] sm:$0xff] }
 0x834   :  { %3673 = vmatpush.msrb.mxu2 %v4599_v37  ;;  %3696 = vmatpush.msrb.mxu3 %v3627_v32 }
 0x836   :  { %3674 = vmatpush.msrb.mxu2 %v4598_v12  ;;  %3697 = vmatpush.msrb.mxu3 %v3626_v44  ;;  %v4632_v44 = vld [vmem:[%s7716_s12] ss:$0 sm:$0xff] }
 0x838   :  { %3675 = vmatpush.msrb.mxu2 %v4597_v35  ;;  %3698 = vmatpush.msrb.mxu3 %v3625_v34 }
 0x83a   :  { %3676 = vmatpush.msrb.mxu2 %v4596_v4  ;;  %3699 = vmatpush.msrb.mxu3 %v3624_v36  ;;  %v3876_v36 = vld [vmem:[%s7718_s15 + $0x10] sm:$0xff] }
 0x83c   :  { %3677 = vmatpush.msrb.mxu2 %v4595_v63  ;;  %3700 = vmatpush.msrb.mxu3 %v3623_v45  ;;  %v3875_v63 = vld [vmem:[%s7718_s15 + $0x8] sm:$0xff]  ;;  %v3874_v45 = vld [vmem:[%s7718_s15] sm:$0xff] }
 0x83e   :  { %3678 = vmatpush.msrb.mxu2 %v4594_v24  ;;  %3701 = vmatpush.msrb.mxu3 %v3622_v1  ;;  %v4633_v24 = vld [vmem:[%s7717_s14] ss:$0 sm:$0xff] }
 0x840   :  { %3679 = vmatpush.msrb.mxu2 %v4593_v55  ;;  %3702 = vmatpush.msrb.mxu3 %v3621_v56 }
 0x842   :  { %3680 = vmatpush.msrb.mxu2 %v4592_v11  ;;  %3703 = vmatpush.msrb.mxu3 %v3620_v38  ;;  %v4634_v11 = vld [vmem:[%s7719_s16] ss:$0 sm:$0xff] }
 0x844   :  { %3725 = vmatpush.msra.mxu2 %v3594_v27  ;;  %3783 = vmatpush.msra.mxu3 %v3594_v27  ;;  %v3882_v27 = vld [vmem:[%s7718_s15 + $0x40] sm:$0xff] }
 0x846   :  { %3726 = vmatpush.msra.mxu2 %v3593_v48  ;;  %3784 = vmatpush.msra.mxu3 %v3593_v48  ;;  %v3881_v48 = vld [vmem:[%s7718_s15 + $0x38] sm:$0xff] }
 0x848   :  { %3727 = vmatpush.msra.mxu2 %v3592_v57  ;;  %3785 = vmatpush.msra.mxu3 %v3592_v57  ;;  %v3880_v57 = vld [vmem:[%s7718_s15 + $0x30] sm:$0xff] }
 0x84a   :  { %3728 = vmatpush.msra.mxu2 %v3591_v28  ;;  %3786 = vmatpush.msra.mxu3 %v3591_v28  ;;  %v3879_v28 = vld [vmem:[%s7718_s15 + $0x28] sm:$0xff] }
 0x8b6   :  { %v3650_v53 = vpop.f32.mrf.mxu3  ;;  %v3617_v61 = vpop.f32.mrf.mxu2 }
 0x8b7   :  { %4600 = vmatmul.msk.f32.vlgmr.msrb.gmra.mxu2 %vm2266_vm3, %v3650_v53  ;;  %4601 = vmatmul.msk.f32.vlgmr.msrb.gmra.mxu3 %vm2266_vm3, %v3617_v61 }
 0x8b8   :  { %3854 = vmatpush.msrb.mxu2 %v3844_v59  ;;  %4625 = vmatpush.msk.msrb.mxu3 %vm195_vm0, %v3884_v54 }
 0x8ba   :  { %3855 = vmatpush.msrb.mxu2 %v3843_v3  ;;  %3902 = vmatpush.msrb.mxu3 %v3883_v40 }
 0x8bc   :  { %3856 = vmatpush.msrb.mxu2 %v3842_v5  ;;  %3903 = vmatpush.msrb.mxu3 %v3882_v27 }
 0x8be   :  { %3857 = vmatpush.msrb.mxu2 %v3841_v43  ;;  %3904 = vmatpush.msrb.mxu3 %v3881_v48 }
 0x8bf   :  { %4603 = vmatmul.msk.f32.vlgmr.msra.gmra.mxu2 %vm3596_vm6, %v4602_v33  ;;  %4614 = vmatmul.msk.f32.vlgmr.msra.gmra.mxu3 %vm3596_vm6, %v4613_v26 }
 0x8c0   :  { %3858 = vmatpush.msrb.mxu2 %v3840_v25  ;;  %3905 = vmatpush.msrb.mxu3 %v3880_v57 }
 0x8c2   :  { %3859 = vmatpush.msrb.mxu2 %v3839_v46  ;;  %3906 = vmatpush.msrb.mxu3 %v3879_v28 }
 0x8c4   :  { %3860 = vmatpush.msrb.mxu2 %v3838_v22  ;;  %3907 = vmatpush.msrb.mxu3 %v3878_v2 }
 0x8c6   :  { %3861 = vmatpush.msrb.mxu2 %v3837_v51  ;;  %3908 = vmatpush.msrb.mxu3 %v3877_v23 }
 0x8c8   :  { %3862 = vmatpush.msrb.mxu2 %v3836_v15  ;;  %3909 = vmatpush.msrb.mxu3 %v3876_v36 }
 0x8ca   :  { %3863 = vmatpush.msrb.mxu2 %v3835_v39  ;;  %3910 = vmatpush.msrb.mxu3 %v3875_v63 }
 0x8cc   :  { %3864 = vmatpush.msrb.mxu2 %v3834_v19  ;;  %3911 = vmatpush.msrb.mxu3 %v3874_v45 }
 0x8ce   :  { %3865 = vmatpush.msrb.mxu2 %v3833_v0 }
 0x8d0   :  { %3866 = vmatpush.msrb.mxu2 %v3832_v6 }
 0x8d2   :  { %3867 = vmatpush.msrb.mxu2 %v3831_v50 }
 0x8d4   :  { %3868 = vmatpush.msrb.mxu2 %v3830_v17 }
 0x93a   :  { %v3682_v41 = vpop.f32.mrf.mxu2  ;;  %v3705_v62 = vpop.f32.mrf.mxu3 }
 0x93b   :  { %v3706_v58 = vadd.f32 %v3705_v62, %v3682_v41 }
 0x942   :  { %v3730_v18 = vpop.f32.mrf.mxu2  ;;  %v3788_v14 = vpop.f32.mrf.mxu3 }
 0x943   :  { %4612 = vmatmul.msk.f32.vlgmr.msrb.gmra.mxu0 %vm2266_vm3, %v3730_v18  ;;  %4623 = vmatmul.msk.f32.vlgmr.msra.gmra.mxu1 %vm2266_vm3, %v3788_v14 }
 0x9c0   :  { %v3762_v37 = vpop.f32.mrf.mxu0  ;;  %v3820_v32 = vpop.f32.mrf.mxu1 }
 0x9c1   :  { %v3765_v12 = vadd.f32 %v3762_v37, %v3706_v58 }
 0x9c3   :  { %v3823_v35 = vadd.f32 %v3820_v32, %v3765_v12 }
 0x9c5   :  { %v3828_v34 = vadd.f32 %v4632_v44, %v3823_v35 }
 0x9c7   :  { %v3829_v4 = vmax.f32 %v3828_v34, 0.0 }
 0x9c9   :  { %4624 = vmatmul.msk.f32.vlgmr.msrb.gmra.mxu2 %vm3849_vm7, %v3829_v4 }
 0xa4c   :  { %v3870_v1 = vpop.f32.mrf.mxu2 }
 0xa4d   :  { %v3871_v55 = vadd.f32 %v4633_v24, %v3870_v1 }
 0xa4f   :  { %v3873_v56 = vmax.f32 %v3871_v55, 0.0 }
 0xa51   :  { %4626 = vmatmul.msk.f32.vlgmr.msrb.gmra.mxu3 %vm3889_vm8, %v3873_v56 }
 0xad4   :  { %v3913_v38 = vpop.f32.mrf.mxu3 }
 0xad5   :  { %v3914_v10 = vadd.f32 %v4634_v11, %v3913_v38 }
 0xad7   :  { %3916 = vst [vmem:[%s7720_s17] sm:$0xff] %v3914_v10 }

</bundles_post_ra>
